<compile_context>
chip_gen: v7x
topology: tpu7x:2x2x1
jax: 0.10.0
libtpu: 0.0.40
codegen_flags: <defaults>
</compile_context>

<pallas_src>
import jax
import jax.numpy as jnp
from jax.experimental import pallas as pl
from jax.experimental.pallas import tpu as pltpu

# Small synthetic shapes consistent with the module (batch=2, 8 channels,
# 16x16 spatial -> 2048 flattened features; hidden=500, out=5 as in fc1).
B = 2
C = 8
HW = 16
D_IN = C * HW * HW        # 2048
H1 = 500
H2 = 500
D_OUT = 5

# TPU-friendly padded hidden sizes (lane dims multiples of 128). The 5-wide
# final layer is left unpadded (full-array blocks are legal).
H1_P = 512
H2_P = 512

# K-tile for streaming x / w1. 1024 here so the 2048-wide test actually
# exercises the 2-step reduction grid. For the documented reference shape
# (D_IN = 80000) use tk <= 4096 on v6e/v7x and tk <= 2048 on v5e so the
# double-buffered (tk, 512) bf16 w1 tile stays inside scoped VMEM.
TK = 1024


def _siamese_mlp_kernel(x1_ref, x2_ref, w1_ref, b1_ref, w2_ref, b2_ref,
                        w3_ref, b3_ref, o1_ref, o2_ref, acc1_ref, acc2_ref):
    """K-tiled fused 3-layer MLP applied to both siamese branches.

    Grid axis 0 walks the flattened-feature (K) dimension of the first layer;
    acc{1,2}_ref hold f32 partial sums of x @ w1 per branch. On the last K
    step the biases/ReLUs and the two small residual layers run and the
    (B, 5) outputs are stored. bf16 MXU operands, f32 accumulation.
    """
    k = pl.program_id(0)

    @pl.when(k == 0)
    def _init():
        acc1_ref[...] = jnp.zeros_like(acc1_ref)
        acc2_ref[...] = jnp.zeros_like(acc2_ref)

    w1 = w1_ref[...]                                             # (tk, H1_P) bf16
    acc1_ref[...] += jnp.dot(x1_ref[...].astype(jnp.bfloat16), w1,
                             preferred_element_type=jnp.float32)
    acc2_ref[...] += jnp.dot(x2_ref[...].astype(jnp.bfloat16), w1,
                             preferred_element_type=jnp.float32)

    @pl.when(k == pl.num_programs(0) - 1)
    def _finalize():
        w2 = w2_ref[...]                                         # (H1_P, H2_P) bf16
        w3 = w3_ref[...]                                         # (H2_P, D_OUT) bf16

        def head(acc, o_ref):
            h = jnp.maximum(acc + b1_ref[...], 0.0).astype(jnp.bfloat16)
            h = jnp.dot(h, w2, preferred_element_type=jnp.float32) + b2_ref[...]
            h = jnp.maximum(h, 0.0).astype(jnp.bfloat16)
            o_ref[...] = (jnp.dot(h, w3, preferred_element_type=jnp.float32)
                          + b3_ref[...])

        head(acc1_ref[...], o1_ref)
        head(acc2_ref[...], o2_ref)


def siamese_forward(input1, input2, params, *, tk=TK):
    """Matches SiameseEfficientNet.forward: shared weights, two outputs.

    Both branches are computed in one fused pallas_call so the shared weights
    move HBM->VMEM only once; only metadata-free reshapes happen on the host.
    """
    w1, b1, w2, b2, w3, b3 = params   # bf16 weights (hidden dims padded), f32 biases
    n = input1.shape[0]
    d_in = w1.shape[0]

    # flatten (== output.view(output.size()[0], -1)) — contiguous-dim collapse,
    # so this is a metadata-only reshape on the host.
    x1 = input1.reshape(n, -1)
    x2 = input2.reshape(n, -1)
    assert x1.shape[1] == d_in and x2.shape[1] == d_in

    tk = min(tk, d_in)
    assert d_in % tk == 0, "flattened feature dim must be a multiple of tk"
    kt = d_in // tk

    def full(shape):
        return pl.BlockSpec(shape, lambda k: (0,) * len(shape))

    flops = 2 * 2 * n * (d_in * H1_P + H1_P * H2_P + H2_P * D_OUT)
    bytes_accessed = (
        2 * n * d_in * 4                           # f32 activations in
        + (w1.size + w2.size + w3.size) * 2        # bf16 weights
        + (b1.size + b2.size + b3.size) * 4        # f32 biases
        + 2 * n * D_OUT * 4                        # f32 outputs
    )

    out1, out2 = pl.pallas_call(
        _siamese_mlp_kernel,
        out_shape=(jax.ShapeDtypeStruct((n, D_OUT), jnp.float32),
                   jax.ShapeDtypeStruct((n, D_OUT), jnp.float32)),
        grid_spec=pltpu.PrefetchScalarGridSpec(
            num_scalar_prefetch=0,
            grid=(kt,),
            in_specs=[
                pl.BlockSpec((n, tk), lambda k: (0, k)),      # x1 K-chunk
                pl.BlockSpec((n, tk), lambda k: (0, k)),      # x2 K-chunk
                pl.BlockSpec((tk, H1_P), lambda k: (k, 0)),   # w1 K-chunk
                full((1, H1_P)),                              # b1 (resident)
                full((H1_P, H2_P)),                           # w2 (resident)
                full((1, H2_P)),                              # b2 (resident)
                full((H2_P, D_OUT)),                          # w3 (resident)
                full((1, D_OUT)),                             # b3 (resident)
            ],
            out_specs=(full((n, D_OUT)), full((n, D_OUT))),
            scratch_shapes=[pltpu.VMEM((n, H1_P), jnp.float32),
                            pltpu.VMEM((n, H1_P), jnp.float32)],
        ),
        compiler_params=pltpu.CompilerParams(
            dimension_semantics=("arbitrary",)),
        cost_estimate=pl.CostEstimate(flops=int(flops), transcendentals=0,
                                      bytes_accessed=int(bytes_accessed)),
    )(x1, x2, w1, b1, w2, b2, w3, b3)
    return out1, out2


def init_params(key):
    """nn.Linear-style U(-1/sqrt(fan_in), 1/sqrt(fan_in)) init, zero-padded
    on the hidden dims to TPU-friendly shapes (exactly preserves the unpadded
    math) and cast to bf16 weights (biases stay f32). The 5-wide output dim is
    left at its natural size."""
    ks = jax.random.split(key, 6)

    def linear(kw, kb, fan_in, fan_out, fan_in_p, fan_out_p):
        bound = 1.0 / jnp.sqrt(jnp.float32(fan_in))
        w = jax.random.uniform(kw, (fan_in, fan_out), jnp.float32, -bound, bound)
        b = jax.random.uniform(kb, (1, fan_out), jnp.float32, -bound, bound)
        w = jnp.pad(w, ((0, fan_in_p - fan_in), (0, fan_out_p - fan_out)))
        b = jnp.pad(b, ((0, 0), (0, fan_out_p - fan_out)))
        return w.astype(jnp.bfloat16), b

    w1, b1 = linear(ks[0], ks[1], D_IN, H1, D_IN, H1_P)
    w2, b2 = linear(ks[2], ks[3], H1, H2, H1_P, H2_P)
    w3, b3 = linear(ks[4], ks[5], H2, D_OUT, H2_P, D_OUT)
    return (w1, b1, w2, b2, w3, b3)


if __name__ == "__main__":
    key = jax.random.PRNGKey(0)
    k_params, k_x1, k_x2 = jax.random.split(key, 3)

    params = init_params(k_params)
    input1 = jax.random.normal(k_x1, (B, C, HW, HW), jnp.float32)  # NCHW
    input2 = jax.random.normal(k_x2, (B, C, HW, HW), jnp.float32)  # NCHW

    fwd = jax.jit(lambda a, b: siamese_forward(a, b, params))
    out1, out2 = fwd(input1, input2)
    jax.block_until_ready((out1, out2))

    # Pure-JAX reference mirroring the same bf16-operand / f32-accumulate math.
    def ref_once(x_nchw):
        w1, b1, w2, b2, w3, b3 = params
        h = x_nchw.reshape(x_nchw.shape[0], -1).astype(jnp.bfloat16)
        h = jnp.maximum(jnp.dot(h, w1, preferred_element_type=jnp.float32) + b1,
                        0.0).astype(jnp.bfloat16)
        h = jnp.maximum(jnp.dot(h, w2, preferred_element_type=jnp.float32) + b2,
                        0.0).astype(jnp.bfloat16)
        return jnp.dot(h, w3, preferred_element_type=jnp.float32) + b3

    r1, r2 = ref_once(input1), ref_once(input2)
    assert out1.shape == (B, D_OUT) and out2.shape == (B, D_OUT)
    assert jnp.allclose(out1, r1, atol=1e-2, rtol=1e-2)
    assert jnp.allclose(out2, r2, atol=1e-2, rtol=1e-2)

    print("KERNEL_OK")
</pallas_src>

<mosaic_0001>
module attributes {stable_mosaic.version = 11 : i64} {
  func.func @_siamese_mlp_kernel(%arg0: i32, %arg1: memref<2x1024xf32, #tpu.memory_space<vmem>>, %arg2: memref<2x1024xf32, #tpu.memory_space<vmem>>, %arg3: memref<1024x512xbf16, #tpu.memory_space<vmem>>, %arg4: memref<1x512xf32, #tpu.memory_space<vmem>>, %arg5: memref<512x512xbf16, #tpu.memory_space<vmem>>, %arg6: memref<1x512xf32, #tpu.memory_space<vmem>>, %arg7: memref<512x5xbf16, #tpu.memory_space<vmem>>, %arg8: memref<1x5xf32, #tpu.memory_space<vmem>>, %arg9: memref<2x5xf32, #tpu.memory_space<vmem>>, %arg10: memref<2x5xf32, #tpu.memory_space<vmem>>, %arg11: memref<2x512xf32, #tpu.memory_space<vmem>>, %arg12: memref<2x512xf32, #tpu.memory_space<vmem>>) attributes {dimension_semantics = [#tpu.dimension_semantics<arbitrary>], iteration_bounds = array<i64: 2>, scalar_prefetch = 0 : i64, scratch_operands = 2 : i64, tpu.core_type = #tpu.core_type<tc>, window_params = [{transform_indices = @transform_0, window_bounds = array<i64: 2, 1024>}, {transform_indices = @transform_1, window_bounds = array<i64: 2, 1024>}, {transform_indices = @transform_2, window_bounds = array<i64: 1024, 512>}, {pipeline_mode = #tpu.pipeline_mode<synchronous>, transform_indices = @transform_3, window_bounds = array<i64: 1, 512>}, {pipeline_mode = #tpu.pipeline_mode<synchronous>, transform_indices = @transform_4, window_bounds = array<i64: 512, 512>}, {pipeline_mode = #tpu.pipeline_mode<synchronous>, transform_indices = @transform_5, window_bounds = array<i64: 1, 512>}, {pipeline_mode = #tpu.pipeline_mode<synchronous>, transform_indices = @transform_6, window_bounds = array<i64: 512, 5>}, {pipeline_mode = #tpu.pipeline_mode<synchronous>, transform_indices = @transform_7, window_bounds = array<i64: 1, 5>}, {pipeline_mode = #tpu.pipeline_mode<synchronous>, transform_indices = @transform_8, window_bounds = array<i64: 2, 5>}, {pipeline_mode = #tpu.pipeline_mode<synchronous>, transform_indices = @transform_9, window_bounds = array<i64: 2, 5>}]} {
    %c0_i32 = arith.constant 0 : i32
    %0 = arith.cmpi eq, %arg0, %c0_i32 : i32
    %1 = arith.extui %0 : i1 to i32
    %c0_i32_0 = arith.constant 0 : i32
    %2 = arith.cmpi ne, %1, %c0_i32_0 : i32
    scf.if %2 {
      %cst_16 = arith.constant 0.000000e+00 : f32
      %19 = vector.broadcast %cst_16 : f32 to vector<2x512xf32>
      %c0_17 = arith.constant 0 : index
      %c0_18 = arith.constant 0 : index
      %20 = vector.load %arg11[%c0_17, %c0_18] : memref<2x512xf32, #tpu.memory_space<vmem>>, vector<2x512xf32>
      tpu.vector_store %arg11[%c0_17, %c0_18], %19 {strides = array<i32>} : memref<2x512xf32, #tpu.memory_space<vmem>>, vector<2x512xf32>,
      %cst_19 = arith.constant 0.000000e+00 : f32
      %21 = vector.broadcast %cst_19 : f32 to vector<2x512xf32>
      %c0_20 = arith.constant 0 : index
      %c0_21 = arith.constant 0 : index
      %22 = vector.load %arg12[%c0_20, %c0_21] : memref<2x512xf32, #tpu.memory_space<vmem>>, vector<2x512xf32>
      tpu.vector_store %arg12[%c0_20, %c0_21], %21 {strides = array<i32>} : memref<2x512xf32, #tpu.memory_space<vmem>>, vector<2x512xf32>,
    } else {
    }
    %c0 = arith.constant 0 : index
    %c0_1 = arith.constant 0 : index
    %3 = vector.load %arg3[%c0, %c0_1] : memref<1024x512xbf16, #tpu.memory_space<vmem>>, vector<1024x512xbf16>
    %c0_2 = arith.constant 0 : index
    %c0_3 = arith.constant 0 : index
    %4 = vector.load %arg11[%c0_2, %c0_3] : memref<2x512xf32, #tpu.memory_space<vmem>>, vector<2x512xf32>
    %c0_4 = arith.constant 0 : index
    %c0_5 = arith.constant 0 : index
    %5 = vector.load %arg1[%c0_4, %c0_5] : memref<2x1024xf32, #tpu.memory_space<vmem>>, vector<2x1024xf32>
    %6 = arith.truncf %5 : vector<2x1024xf32> to vector<2x1024xbf16>
    %cst = arith.constant dense<0.000000e+00> : vector<2x512xf32>
    %7 = tpu.matmul %6, %3, %cst {dimension_numbers = #tpu.dot_dimension_numbers<[1], [0], [0], [1], [0, 0, 1, 1], [], []>} : vector<2x1024xbf16>, vector<1024x512xbf16>, vector<2x512xf32> -> vector<2x512xf32>
    %8 = arith.addf %4, %7 : vector<2x512xf32>
    %c0_6 = arith.constant 0 : index
    %c0_7 = arith.constant 0 : index
    %9 = vector.load %arg11[%c0_6, %c0_7] : memref<2x512xf32, #tpu.memory_space<vmem>>, vector<2x512xf32>
    tpu.vector_store %arg11[%c0_6, %c0_7], %8 {strides = array<i32>} : memref<2x512xf32, #tpu.memory_space<vmem>>, vector<2x512xf32>,
    %c0_8 = arith.constant 0 : index
    %c0_9 = arith.constant 0 : index
    %10 = vector.load %arg12[%c0_8, %c0_9] : memref<2x512xf32, #tpu.memory_space<vmem>>, vector<2x512xf32>
    %c0_10 = arith.constant 0 : index
    %c0_11 = arith.constant 0 : index
    %11 = vector.load %arg2[%c0_10, %c0_11] : memref<2x1024xf32, #tpu.memory_space<vmem>>, vector<2x1024xf32>
    %12 = arith.truncf %11 : vector<2x1024xf32> to vector<2x1024xbf16>
    %cst_12 = arith.constant dense<0.000000e+00> : vector<2x512xf32>
    %13 = tpu.matmul %12, %3, %cst_12 {dimension_numbers = #tpu.dot_dimension_numbers<[1], [0], [0], [1], [0, 0, 1, 1], [], []>} : vector<2x1024xbf16>, vector<1024x512xbf16>, vector<2x512xf32> -> vector<2x512xf32>
    %14 = arith.addf %10, %13 : vector<2x512xf32>
    %c0_13 = arith.constant 0 : index
    %c0_14 = arith.constant 0 : index
    %15 = vector.load %arg12[%c0_13, %c0_14] : memref<2x512xf32, #tpu.memory_space<vmem>>, vector<2x512xf32>
    tpu.vector_store %arg12[%c0_13, %c0_14], %14 {strides = array<i32>} : memref<2x512xf32, #tpu.memory_space<vmem>>, vector<2x512xf32>,
    %c1_i32 = arith.constant 1 : i32
    %16 = arith.cmpi eq, %arg0, %c1_i32 : i32
    %17 = arith.extui %16 : i1 to i32
    %c0_i32_15 = arith.constant 0 : i32
    %18 = arith.cmpi ne, %17, %c0_i32_15 : i32
    scf.if %18 {
      %c0_16 = arith.constant 0 : index
      %c0_17 = arith.constant 0 : index
      %19 = vector.load %arg5[%c0_16, %c0_17] : memref<512x512xbf16, #tpu.memory_space<vmem>>, vector<512x512xbf16>
      %c0_18 = arith.constant 0 : index
      %c0_19 = arith.constant 0 : index
      %20 = vector.load %arg7[%c0_18, %c0_19] : memref<512x5xbf16, #tpu.memory_space<vmem>>, vector<512x5xbf16>
      %c0_20 = arith.constant 0 : index
      %c0_21 = arith.constant 0 : index
      %21 = vector.load %arg11[%c0_20, %c0_21] : memref<2x512xf32, #tpu.memory_space<vmem>>, vector<2x512xf32>
      %c0_22 = arith.constant 0 : index
      %c0_23 = arith.constant 0 : index
      %22 = vector.load %arg4[%c0_22, %c0_23] : memref<1x512xf32, #tpu.memory_space<vmem>>, vector<1x512xf32>
      %23 = vector.broadcast %22 : vector<1x512xf32> to vector<2x512xf32>
      %24 = arith.addf %21, %23 : vector<2x512xf32>
      %cst_24 = arith.constant 0.000000e+00 : f32
      %25 = vector.broadcast %cst_24 : f32 to vector<2x512xf32>
      %26 = arith.maximumf %24, %25 : vector<2x512xf32>
      %27 = arith.truncf %26 : vector<2x512xf32> to vector<2x512xbf16>
      %cst_25 = arith.constant dense<0.000000e+00> : vector<2x512xf32>
      %28 = tpu.matmul %27, %19, %cst_25 {dimension_numbers = #tpu.dot_dimension_numbers<[1], [0], [0], [1], [0, 0, 1, 1], [], []>} : vector<2x512xbf16>, vector<512x512xbf16>, vector<2x512xf32> -> vector<2x512xf32>
      %c0_26 = arith.constant 0 : index
      %c0_27 = arith.constant 0 : index
      %29 = vector.load %arg6[%c0_26, %c0_27] : memref<1x512xf32, #tpu.memory_space<vmem>>, vector<1x512xf32>
      %30 = vector.broadcast %29 : vector<1x512xf32> to vector<2x512xf32>
      %31 = arith.addf %28, %30 : vector<2x512xf32>
      %cst_28 = arith.constant 0.000000e+00 : f32
      %32 = vector.broadcast %cst_28 : f32 to vector<2x512xf32>
      %33 = arith.maximumf %31, %32 : vector<2x512xf32>
      %34 = arith.truncf %33 : vector<2x512xf32> to vector<2x512xbf16>
      %cst_29 = arith.constant dense<0.000000e+00> : vector<2x5xf32>
      %35 = tpu.matmul %34, %20, %cst_29 {dimension_numbers = #tpu.dot_dimension_numbers<[1], [0], [0], [1], [0, 0, 1, 1], [], []>} : vector<2x512xbf16>, vector<512x5xbf16>, vector<2x5xf32> -> vector<2x5xf32>
      %c0_30 = arith.constant 0 : index
      %c0_31 = arith.constant 0 : index
      %36 = vector.load %arg8[%c0_30, %c0_31] : memref<1x5xf32, #tpu.memory_space<vmem>>, vector<1x5xf32>
      %37 = vector.broadcast %36 : vector<1x5xf32> to vector<2x5xf32>
      %38 = arith.addf %35, %37 : vector<2x5xf32>
      %c0_32 = arith.constant 0 : index
      %c0_33 = arith.constant 0 : index
      %39 = vector.load %arg9[%c0_32, %c0_33] : memref<2x5xf32, #tpu.memory_space<vmem>>, vector<2x5xf32>
      tpu.vector_store %arg9[%c0_32, %c0_33], %38 {strides = array<i32>} : memref<2x5xf32, #tpu.memory_space<vmem>>, vector<2x5xf32>,
      %c0_34 = arith.constant 0 : index
      %c0_35 = arith.constant 0 : index
      %40 = vector.load %arg12[%c0_34, %c0_35] : memref<2x512xf32, #tpu.memory_space<vmem>>, vector<2x512xf32>
      %c0_36 = arith.constant 0 : index
      %c0_37 = arith.constant 0 : index
      %41 = vector.load %arg4[%c0_36, %c0_37] : memref<1x512xf32, #tpu.memory_space<vmem>>, vector<1x512xf32>
      %42 = vector.broadcast %41 : vector<1x512xf32> to vector<2x512xf32>
      %43 = arith.addf %40, %42 : vector<2x512xf32>
      %cst_38 = arith.constant 0.000000e+00 : f32
      %44 = vector.broadcast %cst_38 : f32 to vector<2x512xf32>
      %45 = arith.maximumf %43, %44 : vector<2x512xf32>
      %46 = arith.truncf %45 : vector<2x512xf32> to vector<2x512xbf16>
      %cst_39 = arith.constant dense<0.000000e+00> : vector<2x512xf32>
      %47 = tpu.matmul %46, %19, %cst_39 {dimension_numbers = #tpu.dot_dimension_numbers<[1], [0], [0], [1], [0, 0, 1, 1], [], []>} : vector<2x512xbf16>, vector<512x512xbf16>, vector<2x512xf32> -> vector<2x512xf32>
      %c0_40 = arith.constant 0 : index
      %c0_41 = arith.constant 0 : index
      %48 = vector.load %arg6[%c0_40, %c0_41] : memref<1x512xf32, #tpu.memory_space<vmem>>, vector<1x512xf32>
      %49 = vector.broadcast %48 : vector<1x512xf32> to vector<2x512xf32>
      %50 = arith.addf %47, %49 : vector<2x512xf32>
      %cst_42 = arith.constant 0.000000e+00 : f32
      %51 = vector.broadcast %cst_42 : f32 to vector<2x512xf32>
      %52 = arith.maximumf %50, %51 : vector<2x512xf32>
      %53 = arith.truncf %52 : vector<2x512xf32> to vector<2x512xbf16>
      %cst_43 = arith.constant dense<0.000000e+00> : vector<2x5xf32>
      %54 = tpu.matmul %53, %20, %cst_43 {dimension_numbers = #tpu.dot_dimension_numbers<[1], [0], [0], [1], [0, 0, 1, 1], [], []>} : vector<2x512xbf16>, vector<512x5xbf16>, vector<2x5xf32> -> vector<2x5xf32>
      %c0_44 = arith.constant 0 : index
      %c0_45 = arith.constant 0 : index
      %55 = vector.load %arg8[%c0_44, %c0_45] : memref<1x5xf32, #tpu.memory_space<vmem>>, vector<1x5xf32>
      %56 = vector.broadcast %55 : vector<1x5xf32> to vector<2x5xf32>
      %57 = arith.addf %54, %56 : vector<2x5xf32>
      %c0_46 = arith.constant 0 : index
      %c0_47 = arith.constant 0 : index
      %58 = vector.load %arg10[%c0_46, %c0_47] : memref<2x5xf32, #tpu.memory_space<vmem>>, vector<2x5xf32>
      tpu.vector_store %arg10[%c0_46, %c0_47], %57 {strides = array<i32>} : memref<2x5xf32, #tpu.memory_space<vmem>>, vector<2x5xf32>,
    } else {
    }
    return
  }
  func.func @transform_0(%arg0: i32) -> (i32, i32) {
    %c0_i32 = arith.constant 0 : i32
    %c0_i32_0 = arith.constant 0 : i32
    return %c0_i32, %arg0 : i32, i32
  }
  func.func @transform_1(%arg0: i32) -> (i32, i32) {
    %c0_i32 = arith.constant 0 : i32
    %c0_i32_0 = arith.constant 0 : i32
    return %c0_i32, %arg0 : i32, i32
  }
  func.func @transform_2(%arg0: i32) -> (i32, i32) {
    %c0_i32 = arith.constant 0 : i32
    %c0_i32_0 = arith.constant 0 : i32
    return %arg0, %c0_i32 : i32, i32
  }
  func.func @transform_3(%arg0: i32) -> (i32, i32) {
    %c0_i32 = arith.constant 0 : i32
    %c0_i32_0 = arith.constant 0 : i32
    %c0_i32_1 = arith.constant 0 : i32
    return %c0_i32, %c0_i32_0 : i32, i32
  }
  func.func @transform_4(%arg0: i32) -> (i32, i32) {
    %c0_i32 = arith.constant 0 : i32
    %c0_i32_0 = arith.constant 0 : i32
    %c0_i32_1 = arith.constant 0 : i32
    return %c0_i32, %c0_i32_0 : i32, i32
  }
  func.func @transform_5(%arg0: i32) -> (i32, i32) {
    %c0_i32 = arith.constant 0 : i32
    %c0_i32_0 = arith.constant 0 : i32
    %c0_i32_1 = arith.constant 0 : i32
    return %c0_i32, %c0_i32_0 : i32, i32
  }
  func.func @transform_6(%arg0: i32) -> (i32, i32) {
    %c0_i32 = arith.constant 0 : i32
    %c0_i32_0 = arith.constant 0 : i32
    %c0_i32_1 = arith.constant 0 : i32
    return %c0_i32, %c0_i32_0 : i32, i32
  }
  func.func @transform_7(%arg0: i32) -> (i32, i32) {
    %c0_i32 = arith.constant 0 : i32
    %c0_i32_0 = arith.constant 0 : i32
    %c0_i32_1 = arith.constant 0 : i32
    return %c0_i32, %c0_i32_0 : i32, i32
  }
  func.func @transform_8(%arg0: i32) -> (i32, i32) {
    %c0_i32 = arith.constant 0 : i32
    %c0_i32_0 = arith.constant 0 : i32
    %c0_i32_1 = arith.constant 0 : i32
    return %c0_i32, %c0_i32_0 : i32, i32
  }
  func.func @transform_9(%arg0: i32) -> (i32, i32) {
    %c0_i32 = arith.constant 0 : i32
    %c0_i32_0 = arith.constant 0 : i32
    %c0_i32_1 = arith.constant 0 : i32
    return %c0_i32, %c0_i32_0 : i32, i32
  }
}

</mosaic_0001>

<bundles_post_ra>
// kernel: _lambda_.1
= control target key start
LH: loop header
LB: loop body
LE: loop exit
PB: predicated region body
PF: predicated region fallthrough
CT: control target
= control target key end

     0   :  { %15 = vsyncpa [#allocation5], 0  ;;  %s8286_s0 = inlined_call_operand.vmem [shape: f32[2,2048], index: 0, kind: input, shape index: {}]   ;;  %s8287_s1 = inlined_call_operand.vmem [shape: f32[2,2048], index: 1, kind: input, shape index: {}]   ;;  %s8288_s2 = inlined_call_operand.vmem [shape: bf16[2048,512], index: 2, kind: input, shape index: {}]   ;;  %s8289_s3 = inlined_call_operand.vmem [shape: f32[1,512], index: 3, kind: input, shape index: {}]   ;;  %s8290_s4 = inlined_call_operand.vmem [shape: bf16[512,512], index: 4, kind: input, shape index: {}]   ;;  %s8291_s5 = inlined_call_operand.vmem [shape: f32[1,512], index: 5, kind: input, shape index: {}]   ;;  %s8292_s6 = inlined_call_operand.vmem [shape: bf16[512,5], index: 6, kind: input, shape index: {}]   ;;  %s8293_s7 = inlined_call_operand.vmem [shape: f32[1,5], index: 7, kind: input, shape index: {}]   ;;  %s8294_s8 = inlined_call_operand.hbm [shape: f32[2,5], index: 8, kind: output, shape index: {0}]   ;;  %s8295_s9 = inlined_call_operand.hbm [shape: f32[2,5], index: 9, kind: output, shape index: {1}]  }
   0x1   :  { %16 = vsyncpa [#allocation7], 0  ;;  %s6052_s30 = smov 0  }
   0x2 LB: > { %s6058_s10 = sadd.s32 4294967295, %s5996_s30   ;;  %p4542_p0 = scmp.ge.s32.totalorder %s5996_s30, 1  ;;  %s5996_s30 = sphi %s6052_s30, %s22_s30  }
   0x3   : > { %p306_p1 = scmp.lt.s32.totalorder %s5996_s30, 3 }
   0x5   : > { %p307_p2 = pnand %p4542_p0, %p306_p1 }
   0x7   : > { %310 = sbr.rel (%p307_p2) target bundleno = 1727 (0x6bf), region = 52 }
   0xe   : > { %s4543_s11 = sshll.u32 %s6058_s10, 3  ;;  %s4547_s12 = sshll.u32 %s6058_s10, 7 }
   0xf   : > { %p349_p3 = scmp.lt.s32.totalorder %s4543_s11, 15  ;;  %p361_p4 = scmp.lt.s32.totalorder %s4547_s12, 255 }
  0x10   : > { %p4550_p5 = scmp.ne.s32.totalorder %s6058_s10, 0 }
  0x11   : > { %s8823_s11 = smov (!%p349_p3, %s4543_s11), 15  ;;  %s8825_s12 = smov (!%p361_p4, %s4547_s12), 255 }
  0x12   : > { %s4544_s13 = sshll.u32 %s8823_s11, 1  ;;  %s4976_s20 = sshll.u32 %s8825_s12, 4  ;;  %v5998_v0 = vmov (!%p4550_p5), 0.0  }
  0x13   : > { %s6067_s16 = scalar_lea.vmem %s8286_s0, %s4544_s13  ;;  %s6072_s19 = scalar_lea.vmem %s8287_s1, %s4544_s13  ;;  %372 = vst [vmem:[#allocation2] sm:$0xff] (!%p4550_p5), %v5998_v0  ;;  %373 = vst [vmem:[#allocation3] sm:$0xff] (!%p4550_p5), %v5998_v0 }
  0x14   : > { %s6077_s23 = scalar_lea.vmem %s8288_s2, %s4976_s20  ;;  %371 = sbr.rel (%p4550_p5) target bundleno = 27 (0x1b), region = 56 }
  0x1b PF: > { %v5161_v1 = vld [vmem:[%s6077_s23 + $0x4] ss:$16 sps:$4 sm:$0xff]   ;;  %v5163_v2 = vld [vmem:[%s6077_s23 + $0xc] ss:$16 sps:$4 sm:$0xff]   ;;  %v5165_v3 = vld [vmem:[%s6077_s23] ss:$16 sps:$4 sm:$0xff]   ;;  %v639_v39 = vlaneseq }
  0x1c   : > { %1965 = vmatprep.subr.bf16.mxu0 %v5161_v1  ;;  %v5166_v4 = vld [vmem:[%s6077_s23 + $0x8] ss:$16 sps:$4 sm:$0xff]   ;;  %2129 = vmatprep.subr.bf16.mxu1 %v5163_v2  ;;  %v5167_v5 = vld [vmem:[%s6077_s23 + $0x24] ss:$16 sps:$4 sm:$0xff]   ;;  %v5169_v6 = vld [vmem:[%s6077_s23 + $0x2c] ss:$16 sps:$4 sm:$0xff]  }
  0x1d   : > { %1966 = vmatpush1.bf16.msra.mxu0 %v5165_v3  ;;  %2130 = vmatpush1.bf16.msra.mxu1 %v5166_v4  ;;  %v5171_v7 = vld [vmem:[%s6077_s23 + $0x20] ss:$16 sps:$4 sm:$0xff]   ;;  %v5172_v8 = vld [vmem:[%s6077_s23 + $0x28] ss:$16 sps:$4 sm:$0xff]   ;;  %v5173_v9 = vld [vmem:[%s6077_s23 + $0x44] ss:$16 sps:$4 sm:$0xff]  }
  0x1e   : > { %1967 = vmatprep.subr.bf16.mxu0 %v5167_v5  ;;  %2131 = vmatprep.subr.bf16.mxu1 %v5169_v6  ;;  %v5175_v10 = vld [vmem:[%s6077_s23 + $0x4c] ss:$16 sps:$4 sm:$0xff]   ;;  %v5177_v11 = vld [vmem:[%s6077_s23 + $0x40] ss:$16 sps:$4 sm:$0xff]   ;;  %v5178_v12 = vld [vmem:[%s6077_s23 + $0x48] ss:$16 sps:$4 sm:$0xff]  }
  0x1f   : > { %v5179_v13 = vld [vmem:[%s6077_s23 + $0x64] ss:$16 sps:$4 sm:$0xff]   ;;  %v5181_v14 = vld [vmem:[%s6077_s23 + $0x6c] ss:$16 sps:$4 sm:$0xff]   ;;  %v5183_v15 = vld [vmem:[%s6077_s23 + $0x60] ss:$16 sps:$4 sm:$0xff]  }
  0x20   : > { %v5184_v16 = vld [vmem:[%s6077_s23 + $0x68] ss:$16 sps:$4 sm:$0xff]   ;;  %v5185_v17 = vld [vmem:[%s6077_s23 + $0x84] ss:$16 sps:$4 sm:$0xff]   ;;  %v5187_v18 = vld [vmem:[%s6077_s23 + $0x8c] ss:$16 sps:$4 sm:$0xff]  }
  0x21   : > { %1968 = vmatpush1.bf16.msra.mxu0 %v5171_v7  ;;  %2132 = vmatpush1.bf16.msra.mxu1 %v5172_v8  ;;  %v5189_v19 = vld [vmem:[%s6077_s23 + $0x80] ss:$16 sps:$4 sm:$0xff]   ;;  %v5190_v20 = vld [vmem:[%s6077_s23 + $0x88] ss:$16 sps:$4 sm:$0xff]   ;;  %v5191_v21 = vld [vmem:[%s6077_s23 + $0xa4] ss:$16 sps:$4 sm:$0xff]  }
  0x22   : > { %1969 = vmatprep.subr.bf16.mxu0 %v5173_v9  ;;  %2133 = vmatprep.subr.bf16.mxu1 %v5175_v10  ;;  %v5193_v22 = vld [vmem:[%s6077_s23 + $0xac] ss:$16 sps:$4 sm:$0xff]   ;;  %v5195_v23 = vld [vmem:[%s6077_s23 + $0xa0] ss:$16 sps:$4 sm:$0xff]   ;;  %v5196_v24 = vld [vmem:[%s6077_s23 + $0xa8] ss:$16 sps:$4 sm:$0xff]  }
  0x23   : > { %v5197_v25 = vld [vmem:[%s6077_s23 + $0xc4] ss:$16 sps:$4 sm:$0xff]   ;;  %v5199_v26 = vld [vmem:[%s6077_s23 + $0xcc] ss:$16 sps:$4 sm:$0xff]   ;;  %v5201_v27 = vld [vmem:[%s6077_s23 + $0xc0] ss:$16 sps:$4 sm:$0xff]  }
  0x24   : > { %v5202_v28 = vld [vmem:[%s6077_s23 + $0xc8] ss:$16 sps:$4 sm:$0xff]   ;;  %v5203_v29 = vld [vmem:[%s6077_s23 + $0xe4] ss:$16 sps:$4 sm:$0xff]   ;;  %v5205_v30 = vld [vmem:[%s6077_s23 + $0xec] ss:$16 sps:$4 sm:$0xff]  }
  0x25   : > { %1970 = vmatpush1.bf16.msra.mxu0 %v5177_v11  ;;  %2134 = vmatpush1.bf16.msra.mxu1 %v5178_v12  ;;  %v5207_v31 = vld [vmem:[%s6077_s23 + $0xe0] ss:$16 sps:$4 sm:$0xff]   ;;  %v5208_v32 = vld [vmem:[%s6077_s23 + $0xe8] ss:$16 sps:$4 sm:$0xff]   ;;  %v5209_v33 = vld [vmem:[%s6077_s23 + $0x104] ss:$16 sps:$4 sm:$0xff]  }
  0x26   : > { %1971 = vmatprep.subr.bf16.mxu0 %v5179_v13  ;;  %2135 = vmatprep.subr.bf16.mxu1 %v5181_v14  ;;  %v5211_v34 = vld [vmem:[%s6077_s23 + $0x10c] ss:$16 sps:$4 sm:$0xff]   ;;  %v5213_v35 = vld [vmem:[%s6077_s23 + $0x100] ss:$16 sps:$4 sm:$0xff]   ;;  %v5214_v36 = vld [vmem:[%s6077_s23 + $0x108] ss:$16 sps:$4 sm:$0xff]  }
  0x27   : > { %v5999_v37 = vmov 1983009808   ;;  %v5215_v40 = vld [vmem:[%s6077_s23 + $0x124] ss:$16 sps:$4 sm:$0xff]   ;;  %v5217_v41 = vld [vmem:[%s6077_s23 + $0x12c] ss:$16 sps:$4 sm:$0xff]  }
  0x28   : > { %v637_v38 = vunpack.c.l.s4 %v5999_v37  ;;  %v5219_v42 = vld [vmem:[%s6077_s23 + $0x120] ss:$16 sps:$4 sm:$0xff]   ;;  %v6119_v44 = vshrl.u32 %v639_v39, 7  ;;  %v5220_v45 = vld [vmem:[%s6077_s23 + $0x128] ss:$16 sps:$4 sm:$0xff]   ;;  %p4807_p6 = scmp.ne.s32.totalorder %s6058_s10, 1 }
  0x29   : > { %1972 = vmatpush1.bf16.msra.mxu0 %v5183_v15  ;;  %2136 = vmatpush1.bf16.msra.mxu1 %v5184_v16  ;;  %v5221_v46 = vld [vmem:[%s6077_s23 + $0x144] ss:$16 sps:$4 sm:$0xff]   ;;  %v5223_v47 = vld [vmem:[%s6077_s23 + $0x14c] ss:$16 sps:$4 sm:$0xff]   ;;  %v5225_v48 = vld [vmem:[%s6077_s23 + $0x140] ss:$16 sps:$4 sm:$0xff]  }
  0x2a   : > { %1973 = vmatprep.subr.bf16.mxu0 %v5185_v17  ;;  %2137 = vmatprep.subr.bf16.mxu1 %v5187_v18  ;;  %v638_v43 = vunpack.c.0.s8 %v637_v38  ;;  %8472 = vst [vmem:[#allocation10_spill] sm:$0xff] %v6119_v44  ;;  %v5226_v49 = vld [vmem:[%s6077_s23 + $0x148] ss:$16 sps:$4 sm:$0xff]   ;;  %v5227_v51 = vld [vmem:[%s6077_s23 + $0x164] ss:$16 sps:$4 sm:$0xff]  }
  0x2b   : > { %v5229_v52 = vld [vmem:[%s6077_s23 + $0x16c] ss:$16 sps:$4 sm:$0xff]   ;;  %v631_v53 = vld [vmem:[%s6067_s16] sm:$0xff]  ;;  %v5232_v56 = vld [vmem:[%s6077_s23 + $0x168] ss:$16 sps:$4 sm:$0xff]  }
  0x2c   : > { %v6127_v50 = vsub.s32 %v638_v43, %v6119_v44  ;;  %v5231_v54 = vld [vmem:[%s6077_s23 + $0x160] ss:$16 sps:$4 sm:$0xff]   ;;  %v5233_v57 = vld [vmem:[%s6077_s23 + $0x184] ss:$16 sps:$4 sm:$0xff]   ;;  %v5235_v58 = vld [vmem:[%s6077_s23 + $0x18c] ss:$16 sps:$4 sm:$0xff]   ;;  %v635_v5 = vcombine.high %v631_v53, %v631_v53 }
  0x2d   : > { %1974 = vmatpush1.bf16.msra.mxu0 %v5189_v19  ;;  %2138 = vmatpush1.bf16.msra.mxu1 %v5190_v20  ;;  %v5237_v60 = vld [vmem:[%s6077_s23 + $0x180] ss:$16 sps:$4 sm:$0xff]   ;;  %v5238_v62 = vld [vmem:[%s6077_s23 + $0x188] ss:$16 sps:$4 sm:$0xff]   ;;  %v5239_v63 = vld [vmem:[%s6077_s23 + $0x1a4] ss:$16 sps:$4 sm:$0xff]  }
  0x2e   : > { %1975 = vmatprep.subr.bf16.mxu0 %v5191_v21  ;;  %2139 = vmatprep.subr.bf16.mxu1 %v5193_v22  ;;  %v642_v55 = vrot.slane %v631_v53, %v6127_v50  ;;  %v5241_v0 = vld [vmem:[%s6077_s23 + $0x1ac] ss:$16 sps:$4 sm:$0xff]   ;;  %v5243_v1 = vld [vmem:[%s6077_s23 + $0x1a0] ss:$16 sps:$4 sm:$0xff]   ;;  %v5244_v2 = vld [vmem:[%s6077_s23 + $0x1a8] ss:$16 sps:$4 sm:$0xff]   ;;  %v6150_v10 = vrot.slane %v635_v5, %v6127_v50 }
  0x2f   : > { %v5245_v3 = vld [vmem:[%s6077_s23 + $0x1c4] ss:$16 sps:$4 sm:$0xff]   ;;  %v5247_v4 = vld [vmem:[%s6077_s23 + $0x1cc] ss:$16 sps:$4 sm:$0xff]   ;;  %v5249_v6 = vld [vmem:[%s6077_s23 + $0x1c0] ss:$16 sps:$4 sm:$0xff]  }
  0x30   : > { %v650_v59 = vcombine.high %v642_v55, %v642_v55  ;;  %v5250_v7 = vld [vmem:[%s6077_s23 + $0x1c8] ss:$16 sps:$4 sm:$0xff]   ;;  %v5251_v8 = vld [vmem:[%s6077_s23 + $0x1e4] ss:$16 sps:$4 sm:$0xff]   ;;  %v5253_v9 = vld [vmem:[%s6077_s23 + $0x1ec] ss:$16 sps:$4 sm:$0xff]   ;;  %v651_v15 = vcombine.high %v6150_v10, %v6150_v10  ;;  %v677_v17 = vpack.c.bf16 %v642_v55, %v642_v55 }
  0x31   : > { %1976 = vmatpush1.bf16.msra.mxu0 %v5195_v23  ;;  %2140 = vmatpush1.bf16.msra.mxu1 %v5196_v24  ;;  %v5255_v11 = vld [vmem:[%s6077_s23 + $0x1e0] ss:$16 sps:$4 sm:$0xff]   ;;  %v5256_v12 = vld [vmem:[%s6077_s23 + $0x1e8] ss:$16 sps:$4 sm:$0xff]   ;;  %v5260_v13 = vld [vmem:[%s6077_s23 + $0x204] ss:$16 sps:$4 sm:$0xff]  }
  0x32   : > { %1977 = vmatprep.subr.bf16.mxu0 %v5197_v25  ;;  %2141 = vmatprep.subr.bf16.mxu1 %v5199_v26  ;;  %v678_v61 = vpack.c.bf16 %v650_v59, %v650_v59  ;;  %v5263_v14 = vld [vmem:[%s6077_s23 + $0x20c] ss:$16 sps:$4 sm:$0xff]   ;;  %v5258_v16 = vld [vmem:[%s6077_s23 + $0x200] ss:$16 sps:$4 sm:$0xff]   ;;  %v5261_v18 = vld [vmem:[%s6077_s23 + $0x208] ss:$16 sps:$4 sm:$0xff]   ;;  %v680_v21 = vpack.c.bf16 %v651_v15, %v651_v15 }
  0x33   : > { %v5266_v19 = vld [vmem:[%s6077_s23 + $0x224] ss:$16 sps:$4 sm:$0xff]   ;;  %v5269_v20 = vld [vmem:[%s6077_s23 + $0x22c] ss:$16 sps:$4 sm:$0xff]   ;;  %v5264_v22 = vld [vmem:[%s6077_s23 + $0x220] ss:$16 sps:$4 sm:$0xff]  }
  0x34   : > { %1997 = vmatprep.mubr.bf16.mxu0 %v678_v61  ;;  %2161 = vmatprep.mubr.bf16.mxu1 %v678_v61  ;;  %v5267_v23 = vld [vmem:[%s6077_s23 + $0x228] ss:$16 sps:$4 sm:$0xff]   ;;  %v5272_v24 = vld [vmem:[%s6077_s23 + $0x244] ss:$16 sps:$4 sm:$0xff]   ;;  %v5275_v25 = vld [vmem:[%s6077_s23 + $0x24c] ss:$16 sps:$4 sm:$0xff]  }
  0x35   : > { %1978 = vmatpush1.bf16.msra.mxu0 %v5201_v27  ;;  %2142 = vmatpush1.bf16.msra.mxu1 %v5202_v28  ;;  %v5270_v26 = vld [vmem:[%s6077_s23 + $0x240] ss:$16 sps:$4 sm:$0xff]   ;;  %v5273_v27 = vld [vmem:[%s6077_s23 + $0x248] ss:$16 sps:$4 sm:$0xff]   ;;  %v5278_v28 = vld [vmem:[%s6077_s23 + $0x264] ss:$16 sps:$4 sm:$0xff]  }
  0x36   : > { %1979 = vmatprep.subr.bf16.mxu0 %v5203_v29  ;;  %2143 = vmatprep.subr.bf16.mxu1 %v5205_v30  ;;  %v5281_v29 = vld [vmem:[%s6077_s23 + $0x26c] ss:$16 sps:$4 sm:$0xff]   ;;  %v5276_v30 = vld [vmem:[%s6077_s23 + $0x260] ss:$16 sps:$4 sm:$0xff]   ;;  %v5291_v39 = vld [vmem:[%s6077_s23 + $0x2a8] ss:$16 sps:$4 sm:$0xff]  }
  0x37   : > { %v5293_v37 = vld [vmem:[%s6077_s23 + $0x2ac] ss:$16 sps:$4 sm:$0xff]   ;;  %v5288_v38 = vld [vmem:[%s6077_s23 + $0x2a0] ss:$16 sps:$4 sm:$0xff]   ;;  %v5297_v43 = vld [vmem:[%s6077_s23 + $0x2c8] ss:$16 sps:$4 sm:$0xff]  }
  0x38   : > { %v5309_v53 = vld [vmem:[%s6077_s23 + $0x308] ss:$16 sps:$4 sm:$0xff]   ;;  %v5317_v55 = vld [vmem:[%s6077_s23 + $0x32c] ss:$16 sps:$4 sm:$0xff]   ;;  %v6227_v15 = vld [vmem:[%s6077_s23 + $0x3e4] ss:$16 sps:$4 sm:$0xff]  }
  0x39   : > { %1980 = vmatpush1.bf16.msra.mxu0 %v5207_v31  ;;  %2144 = vmatpush1.bf16.msra.mxu1 %v5208_v32  ;;  %v5279_v31 = vld [vmem:[%s6077_s23 + $0x268] ss:$16 sps:$4 sm:$0xff]   ;;  %v5284_v32 = vld [vmem:[%s6077_s23 + $0x284] ss:$16 sps:$4 sm:$0xff]   ;;  %v5323_v59 = vld [vmem:[%s6077_s23 + $0x34c] ss:$16 sps:$4 sm:$0xff]  }
  0x3a   : > { %1981 = vmatprep.subr.bf16.mxu0 %v5209_v33  ;;  %2145 = vmatprep.subr.bf16.mxu1 %v5211_v34  ;;  %v5287_v33 = vld [vmem:[%s6077_s23 + $0x28c] ss:$16 sps:$4 sm:$0xff]   ;;  %v5282_v34 = vld [vmem:[%s6077_s23 + $0x280] ss:$16 sps:$4 sm:$0xff]   ;;  %v5321_v61 = vld [vmem:[%s6077_s23 + $0x348] ss:$16 sps:$4 sm:$0xff]  }
  0x3b   : > { %v5333_v5 = vld [vmem:[%s6077_s23 + $0x388] ss:$16 sps:$4 sm:$0xff]   ;;  %v6462_v44 = vld [vmem:[%s6077_s23 + $0x5a4] ss:$16 sps:$4 sm:$0xff]  }
  0x3c   : > { %8482 = vst [vmem:[#allocation20_spill] sm:$0xff] %v6462_v44 }
  0x3d   : > { %1982 = vmatpush1.bf16.msra.mxu0 %v5213_v35  ;;  %2146 = vmatpush1.bf16.msra.mxu1 %v5214_v36  ;;  %v5285_v35 = vld [vmem:[%s6077_s23 + $0x288] ss:$16 sps:$4 sm:$0xff]   ;;  %v5290_v36 = vld [vmem:[%s6077_s23 + $0x2a4] ss:$16 sps:$4 sm:$0xff]  }
  0x3e   : > { %1983 = vmatprep.subr.bf16.mxu0 %v5215_v40  ;;  %2147 = vmatprep.subr.bf16.mxu1 %v5217_v41  ;;  %v5296_v40 = vld [vmem:[%s6077_s23 + $0x2c4] ss:$16 sps:$4 sm:$0xff]   ;;  %v5299_v41 = vld [vmem:[%s6077_s23 + $0x2cc] ss:$16 sps:$4 sm:$0xff]  }
  0x41   : > { %1984 = vmatpush1.bf16.msra.mxu0 %v5219_v42  ;;  %2148 = vmatpush1.bf16.msra.mxu1 %v5220_v45  ;;  %v5294_v42 = vld [vmem:[%s6077_s23 + $0x2c0] ss:$16 sps:$4 sm:$0xff]   ;;  %v5302_v45 = vld [vmem:[%s6077_s23 + $0x2e4] ss:$16 sps:$4 sm:$0xff]  }
  0x42   : > { %1985 = vmatprep.subr.bf16.mxu0 %v5221_v46  ;;  %2149 = vmatprep.subr.bf16.mxu1 %v5223_v47  ;;  %v5305_v46 = vld [vmem:[%s6077_s23 + $0x2ec] ss:$16 sps:$4 sm:$0xff]   ;;  %v5300_v47 = vld [vmem:[%s6077_s23 + $0x2e0] ss:$16 sps:$4 sm:$0xff]  }
  0x45   : > { %1986 = vmatpush1.bf16.msra.mxu0 %v5225_v48  ;;  %2150 = vmatpush1.bf16.msra.mxu1 %v5226_v49  ;;  %v5303_v48 = vld [vmem:[%s6077_s23 + $0x2e8] ss:$16 sps:$4 sm:$0xff]   ;;  %v5308_v49 = vld [vmem:[%s6077_s23 + $0x304] ss:$16 sps:$4 sm:$0xff]  }
  0x46   : > { %1987 = vmatprep.subr.bf16.mxu0 %v5227_v51  ;;  %2151 = vmatprep.subr.bf16.mxu1 %v5229_v52  ;;  %v5311_v51 = vld [vmem:[%s6077_s23 + $0x30c] ss:$16 sps:$4 sm:$0xff]   ;;  %v5306_v52 = vld [vmem:[%s6077_s23 + $0x300] ss:$16 sps:$4 sm:$0xff]  }
  0x49   : > { %1988 = vmatpush1.bf16.msra.mxu0 %v5231_v54  ;;  %2152 = vmatpush1.bf16.msra.mxu1 %v5232_v56  ;;  %v5314_v54 = vld [vmem:[%s6077_s23 + $0x324] ss:$16 sps:$4 sm:$0xff]   ;;  %v5312_v56 = vld [vmem:[%s6077_s23 + $0x320] ss:$16 sps:$4 sm:$0xff]  }
  0x4a   : > { %1989 = vmatprep.subr.bf16.mxu0 %v5233_v57  ;;  %2153 = vmatprep.subr.bf16.mxu1 %v5235_v58  ;;  %v5315_v57 = vld [vmem:[%s6077_s23 + $0x328] ss:$16 sps:$4 sm:$0xff]   ;;  %v5320_v58 = vld [vmem:[%s6077_s23 + $0x344] ss:$16 sps:$4 sm:$0xff]  }
  0x4d   : > { %1990 = vmatpush1.bf16.msra.mxu0 %v5237_v60  ;;  %2154 = vmatpush1.bf16.msra.mxu1 %v5238_v62  ;;  %v5318_v60 = vld [vmem:[%s6077_s23 + $0x340] ss:$16 sps:$4 sm:$0xff]   ;;  %v5326_v62 = vld [vmem:[%s6077_s23 + $0x364] ss:$16 sps:$4 sm:$0xff]  }
  0x4e   : > { %1991 = vmatprep.subr.bf16.mxu0 %v5239_v63  ;;  %2155 = vmatprep.subr.bf16.mxu1 %v5241_v0  ;;  %v5329_v63 = vld [vmem:[%s6077_s23 + $0x36c] ss:$16 sps:$4 sm:$0xff]   ;;  %v5324_v0 = vld [vmem:[%s6077_s23 + $0x360] ss:$16 sps:$4 sm:$0xff]  }
  0x51   : > { %1992 = vmatpush1.bf16.msra.mxu0 %v5243_v1  ;;  %2156 = vmatpush1.bf16.msra.mxu1 %v5244_v2  ;;  %v5327_v1 = vld [vmem:[%s6077_s23 + $0x368] ss:$16 sps:$4 sm:$0xff]   ;;  %v5332_v2 = vld [vmem:[%s6077_s23 + $0x384] ss:$16 sps:$4 sm:$0xff]  }
  0x52   : > { %1993 = vmatprep.subr.bf16.mxu0 %v5245_v3  ;;  %2157 = vmatprep.subr.bf16.mxu1 %v5247_v4  ;;  %v5335_v3 = vld [vmem:[%s6077_s23 + $0x38c] ss:$16 sps:$4 sm:$0xff]   ;;  %v5330_v4 = vld [vmem:[%s6077_s23 + $0x380] ss:$16 sps:$4 sm:$0xff]  }
  0x55   : > { %1994 = vmatpush1.bf16.msra.mxu0 %v5249_v6  ;;  %2158 = vmatpush1.bf16.msra.mxu1 %v5250_v7  ;;  %v5338_v6 = vld [vmem:[%s6077_s23 + $0x3a4] ss:$16 sps:$4 sm:$0xff]   ;;  %v5341_v7 = vld [vmem:[%s6077_s23 + $0x3ac] ss:$16 sps:$4 sm:$0xff]  }
  0x56   : > { %1995 = vmatprep.subr.bf16.mxu0 %v5251_v8  ;;  %2159 = vmatprep.subr.bf16.mxu1 %v5253_v9  ;;  %v5336_v8 = vld [vmem:[%s6077_s23 + $0x3a0] ss:$16 sps:$4 sm:$0xff]   ;;  %v5339_v9 = vld [vmem:[%s6077_s23 + $0x3a8] ss:$16 sps:$4 sm:$0xff]  }
  0x59   : > { %1996 = vmatpush1.bf16.msra.mxu0 %v5255_v11  ;;  %2160 = vmatpush1.bf16.msra.mxu1 %v5256_v12  ;;  %v6213_v11 = vld [vmem:[%s6077_s23 + $0x3c4] ss:$16 sps:$4 sm:$0xff]   ;;  %v6216_v12 = vld [vmem:[%s6077_s23 + $0x3cc] ss:$16 sps:$4 sm:$0xff]  }
  0x5a   : > { %2006 = vmatprep.subr.bf16.mxu0 %v5260_v13  ;;  %2170 = vmatprep.subr.bf16.mxu1 %v5263_v14  ;;  %v6219_v13 = vld [vmem:[%s6077_s23 + $0x3c0] ss:$16 sps:$4 sm:$0xff]   ;;  %v6222_v14 = vld [vmem:[%s6077_s23 + $0x3c8] ss:$16 sps:$4 sm:$0xff]  }
  0x5c   : > { %1998 = vmatmul.mubr.bf16.vlgmr.msra.gmra.mrb[0].mxu0 %v677_v17  ;;  %2162 = vmatmul.mubr.bf16.vlgmr.msra.gmra.mrb[0].mxu1 %v677_v17  ;;  %v6233_v17 = vld [vmem:[%s6077_s23 + $0x3e0] ss:$16 sps:$4 sm:$0xff]  }
  0x5d   : > { %2007 = vmatpush1.bf16.msra.mxu0 %v5258_v16  ;;  %2171 = vmatpush1.bf16.msra.mxu1 %v5261_v18  ;;  %v6230_v16 = vld [vmem:[%s6077_s23 + $0x3ec] ss:$16 sps:$4 sm:$0xff]   ;;  %v6238_v18 = vld [vmem:[%s6077_s23 + $0x3e8] ss:$16 sps:$4 sm:$0xff]  }
  0x5e   : > { %2008 = vmatprep.subr.bf16.mxu0 %v5266_v19  ;;  %2172 = vmatprep.subr.bf16.mxu1 %v5269_v20  ;;  %v6243_v19 = vld [vmem:[%s6077_s23 + $0x404] ss:$16 sps:$4 sm:$0xff]   ;;  %v6246_v20 = vld [vmem:[%s6077_s23 + $0x40c] ss:$16 sps:$4 sm:$0xff]  }
  0x5f   : > { %2038 = vmatprep.mubr.bf16.mxu0 %v680_v21  ;;  %2202 = vmatprep.mubr.bf16.mxu1 %v680_v21  ;;  %v6249_v21 = vld [vmem:[%s6077_s23 + $0x400] ss:$16 sps:$4 sm:$0xff]  }
  0x61   : > { %2009 = vmatpush1.bf16.msra.mxu0 %v5264_v22  ;;  %2173 = vmatpush1.bf16.msra.mxu1 %v5267_v23  ;;  %v679_v22 = vpack.c.bf16 %v6150_v10, %v6150_v10  ;;  %v6256_v23 = vld [vmem:[%s6077_s23 + $0x408] ss:$16 sps:$4 sm:$0xff]  }
  0x62   : > { %2010 = vmatprep.subr.bf16.mxu0 %v5272_v24  ;;  %2174 = vmatprep.subr.bf16.mxu1 %v5275_v25  ;;  %v6259_v24 = vld [vmem:[%s6067_s16 + $0x8] sm:$0xff]  ;;  %v6264_v25 = vld [vmem:[%s6077_s23 + $0x424] ss:$16 sps:$4 sm:$0xff]  }
  0x63   : > { %v6271_v10 = vrot.slane %v6259_v24, %v6127_v50 }
  0x65   : > { %2011 = vmatpush1.bf16.msra.mxu0 %v5270_v26  ;;  %2175 = vmatpush1.bf16.msra.mxu1 %v5273_v27  ;;  %v6267_v26 = vld [vmem:[%s6077_s23 + $0x42c] ss:$16 sps:$4 sm:$0xff]   ;;  %v667_v27 = vcombine.high %v6271_v10, %v6271_v10 }
  0x66   : > { %2012 = vmatprep.subr.bf16.mxu0 %v5278_v28  ;;  %2176 = vmatprep.subr.bf16.mxu1 %v5281_v29  ;;  %v6278_v28 = vld [vmem:[%s6077_s23 + $0x420] ss:$16 sps:$4 sm:$0xff]   ;;  %v6281_v29 = vld [vmem:[%s6077_s23 + $0x428] ss:$16 sps:$4 sm:$0xff]  }
  0x69   : > { %2013 = vmatpush1.bf16.msra.mxu0 %v5276_v30  ;;  %2177 = vmatpush1.bf16.msra.mxu1 %v5279_v31  ;;  %v6286_v30 = vld [vmem:[%s6077_s23 + $0x444] ss:$16 sps:$4 sm:$0xff]   ;;  %v6289_v31 = vld [vmem:[%s6077_s23 + $0x44c] ss:$16 sps:$4 sm:$0xff]  }
  0x6a   : > { %2014 = vmatprep.subr.bf16.mxu0 %v5284_v32  ;;  %2178 = vmatprep.subr.bf16.mxu1 %v5287_v33  ;;  %v682_v32 = vpack.c.bf16 %v667_v27, %v667_v27  ;;  %v6294_v33 = vld [vmem:[%s6077_s23 + $0x440] ss:$16 sps:$4 sm:$0xff]  }
  0x6b   : > { %v6454_v27 = vld [vmem:[%s6077_s23 + $0x580] ss:$16 sps:$4 sm:$0xff]  }
  0x6c   : > { %8480 = vst [vmem:[#allocation18_spill] sm:$0xff] %v6454_v27 }
  0x6d   : > { %2015 = vmatpush1.bf16.msra.mxu0 %v5282_v34  ;;  %2179 = vmatpush1.bf16.msra.mxu1 %v5285_v35  ;;  %v6297_v34 = vld [vmem:[%s6077_s23 + $0x448] ss:$16 sps:$4 sm:$0xff]   ;;  %v6302_v35 = vld [vmem:[%s6077_s23 + $0x464] ss:$16 sps:$4 sm:$0xff]  }
  0x6e   : > { %2016 = vmatprep.subr.bf16.mxu0 %v5290_v36  ;;  %2180 = vmatprep.subr.bf16.mxu1 %v5293_v37  ;;  %v6305_v36 = vld [vmem:[%s6077_s23 + $0x46c] ss:$16 sps:$4 sm:$0xff]   ;;  %v6310_v37 = vld [vmem:[%s6077_s23 + $0x460] ss:$16 sps:$4 sm:$0xff]  }
  0x71   : > { %2017 = vmatpush1.bf16.msra.mxu0 %v5288_v38  ;;  %2181 = vmatpush1.bf16.msra.mxu1 %v5291_v39  ;;  %v6313_v38 = vld [vmem:[%s6077_s23 + $0x468] ss:$16 sps:$4 sm:$0xff]   ;;  %v6318_v39 = vld [vmem:[%s6077_s23 + $0x484] ss:$16 sps:$4 sm:$0xff]  }
  0x72   : > { %2018 = vmatprep.subr.bf16.mxu0 %v5296_v40  ;;  %2182 = vmatprep.subr.bf16.mxu1 %v5299_v41  ;;  %v6321_v40 = vld [vmem:[%s6077_s23 + $0x48c] ss:$16 sps:$4 sm:$0xff]   ;;  %v6326_v41 = vld [vmem:[%s6077_s23 + $0x480] ss:$16 sps:$4 sm:$0xff]  }
  0x75   : > { %2019 = vmatpush1.bf16.msra.mxu0 %v5294_v42  ;;  %2183 = vmatpush1.bf16.msra.mxu1 %v5297_v43  ;;  %v6329_v42 = vld [vmem:[%s6077_s23 + $0x488] ss:$16 sps:$4 sm:$0xff]   ;;  %v6334_v43 = vld [vmem:[%s6077_s23 + $0x4a4] ss:$16 sps:$4 sm:$0xff]  }
  0x76   : > { %2020 = vmatprep.subr.bf16.mxu0 %v5302_v45  ;;  %2184 = vmatprep.subr.bf16.mxu1 %v5305_v46  ;;  %v6337_v45 = vld [vmem:[%s6077_s23 + $0x4ac] ss:$16 sps:$4 sm:$0xff]   ;;  %v6342_v46 = vld [vmem:[%s6077_s23 + $0x4a0] ss:$16 sps:$4 sm:$0xff]  }
  0x79   : > { %2021 = vmatpush1.bf16.msra.mxu0 %v5300_v47  ;;  %2185 = vmatpush1.bf16.msra.mxu1 %v5303_v48  ;;  %v6345_v47 = vld [vmem:[%s6077_s23 + $0x4a8] ss:$16 sps:$4 sm:$0xff]   ;;  %v6350_v48 = vld [vmem:[%s6077_s23 + $0x4c4] ss:$16 sps:$4 sm:$0xff]  }
  0x7a   : > { %2022 = vmatprep.subr.bf16.mxu0 %v5308_v49  ;;  %2186 = vmatprep.subr.bf16.mxu1 %v5311_v51  ;;  %v6353_v49 = vld [vmem:[%s6077_s23 + $0x4cc] ss:$16 sps:$4 sm:$0xff]   ;;  %v6358_v51 = vld [vmem:[%s6077_s23 + $0x4c0] ss:$16 sps:$4 sm:$0xff]  }
  0x7d   : > { %2023 = vmatpush1.bf16.msra.mxu0 %v5306_v52  ;;  %2187 = vmatpush1.bf16.msra.mxu1 %v5309_v53  ;;  %v6361_v52 = vld [vmem:[%s6077_s23 + $0x4c8] ss:$16 sps:$4 sm:$0xff]   ;;  %v6366_v53 = vld [vmem:[%s6077_s23 + $0x4e4] ss:$16 sps:$4 sm:$0xff]  }
  0x7e   : > { %2024 = vmatprep.subr.bf16.mxu0 %v5314_v54  ;;  %2188 = vmatprep.subr.bf16.mxu1 %v5317_v55  ;;  %v6369_v54 = vld [vmem:[%s6077_s23 + $0x4ec] ss:$16 sps:$4 sm:$0xff]   ;;  %v6374_v55 = vld [vmem:[%s6077_s23 + $0x4e0] ss:$16 sps:$4 sm:$0xff]  }
  0x81   : > { %2025 = vmatpush1.bf16.msra.mxu0 %v5312_v56  ;;  %2189 = vmatpush1.bf16.msra.mxu1 %v5315_v57  ;;  %v6377_v56 = vld [vmem:[%s6077_s23 + $0x4e8] ss:$16 sps:$4 sm:$0xff]   ;;  %v6382_v57 = vld [vmem:[%s6077_s23 + $0x504] ss:$16 sps:$4 sm:$0xff]  }
  0x82   : > { %2026 = vmatprep.subr.bf16.mxu0 %v5320_v58  ;;  %2190 = vmatprep.subr.bf16.mxu1 %v5323_v59  ;;  %v6385_v58 = vld [vmem:[%s6077_s23 + $0x50c] ss:$16 sps:$4 sm:$0xff]   ;;  %v6390_v59 = vld [vmem:[%s6077_s23 + $0x500] ss:$16 sps:$4 sm:$0xff]  }
  0x85   : > { %2027 = vmatpush1.bf16.msra.mxu0 %v5318_v60  ;;  %2191 = vmatpush1.bf16.msra.mxu1 %v5321_v61  ;;  %v6393_v60 = vld [vmem:[%s6077_s23 + $0x508] ss:$16 sps:$4 sm:$0xff]   ;;  %v6398_v61 = vld [vmem:[%s6077_s23 + $0x524] ss:$16 sps:$4 sm:$0xff]  }
  0x86   : > { %2028 = vmatprep.subr.bf16.mxu0 %v5326_v62  ;;  %2192 = vmatprep.subr.bf16.mxu1 %v5329_v63  ;;  %v6401_v62 = vld [vmem:[%s6077_s23 + $0x52c] ss:$16 sps:$4 sm:$0xff]   ;;  %v6406_v63 = vld [vmem:[%s6077_s23 + $0x520] ss:$16 sps:$4 sm:$0xff]  }
  0x89   : > { %2029 = vmatpush1.bf16.msra.mxu0 %v5324_v0  ;;  %2193 = vmatpush1.bf16.msra.mxu1 %v5327_v1  ;;  %v6409_v0 = vld [vmem:[%s6077_s23 + $0x528] ss:$16 sps:$4 sm:$0xff]   ;;  %v6414_v1 = vld [vmem:[%s6077_s23 + $0x544] ss:$16 sps:$4 sm:$0xff]  }
  0x8a   : > { %2030 = vmatprep.subr.bf16.mxu0 %v5332_v2  ;;  %2194 = vmatprep.subr.bf16.mxu1 %v5335_v3  ;;  %v6417_v2 = vld [vmem:[%s6077_s23 + $0x54c] ss:$16 sps:$4 sm:$0xff]   ;;  %v6422_v3 = vld [vmem:[%s6077_s23 + $0x540] ss:$16 sps:$4 sm:$0xff]  }
  0x8d   : > { %2031 = vmatpush1.bf16.msra.mxu0 %v5330_v4  ;;  %2195 = vmatpush1.bf16.msra.mxu1 %v5333_v5  ;;  %v6425_v4 = vld [vmem:[%s6077_s23 + $0x548] ss:$16 sps:$4 sm:$0xff]   ;;  %v6430_v5 = vld [vmem:[%s6077_s23 + $0x564] ss:$16 sps:$4 sm:$0xff]  }
  0x8e   : > { %2032 = vmatprep.subr.bf16.mxu0 %v5338_v6  ;;  %2196 = vmatprep.subr.bf16.mxu1 %v5341_v7  ;;  %8473 = vst [vmem:[#allocation11_spill] sm:$0xff] %v6425_v4  ;;  %8474 = vst [vmem:[#allocation12_spill] sm:$0xff] %v6430_v5  ;;  %v6433_v6 = vld [vmem:[%s6077_s23 + $0x56c] ss:$16 sps:$4 sm:$0xff]   ;;  %v6438_v7 = vld [vmem:[%s6077_s23 + $0x560] ss:$16 sps:$4 sm:$0xff]  }
  0x8f   : > { %8475 = vst [vmem:[#allocation13_spill] sm:$0xff] %v6433_v6  ;;  %8476 = vst [vmem:[#allocation14_spill] sm:$0xff] %v6438_v7 }
  0x91   : > { %2033 = vmatpush1.bf16.msra.mxu0 %v5336_v8  ;;  %2197 = vmatpush1.bf16.msra.mxu1 %v5339_v9  ;;  %v6441_v8 = vld [vmem:[%s6077_s23 + $0x568] ss:$16 sps:$4 sm:$0xff]   ;;  %v6446_v9 = vld [vmem:[%s6077_s23 + $0x584] ss:$16 sps:$4 sm:$0xff]  }
  0x92   : > { %2034 = vmatprep.subr.bf16.mxu0 %v6213_v11  ;;  %2198 = vmatprep.subr.bf16.mxu1 %v6216_v12  ;;  %8477 = vst [vmem:[#allocation15_spill] sm:$0xff] %v6441_v8  ;;  %8478 = vst [vmem:[#allocation16_spill] sm:$0xff] %v6446_v9 }
  0x95   : > { %2035 = vmatpush1.bf16.msra.mxu0 %v6219_v13  ;;  %2199 = vmatpush1.bf16.msra.mxu1 %v6222_v14 }
  0x96   : > { %2036 = vmatprep.subr.bf16.mxu0 %v6227_v15  ;;  %2200 = vmatprep.subr.bf16.mxu1 %v6230_v16 }
  0x99   : > { %2037 = vmatpush1.bf16.msra.mxu0 %v6233_v17  ;;  %2201 = vmatpush1.bf16.msra.mxu1 %v6238_v18 }
  0x9a   : > { %2047 = vmatprep.subr.bf16.mxu0 %v6243_v19  ;;  %2211 = vmatprep.subr.bf16.mxu1 %v6246_v20 }
  0x9c   : > { %2039 = vmatmul.mubr.bf16.vlgmr.msra.gmra.mrb[0].mxu0 %v679_v22  ;;  %2203 = vmatmul.mubr.bf16.vlgmr.msra.gmra.mrb[0].mxu1 %v679_v22  ;;  %v6449_v22 = vld [vmem:[%s6077_s23 + $0x58c] ss:$16 sps:$4 sm:$0xff]  }
  0x9d   : > { %2048 = vmatpush1.bf16.msra.mxu0 %v6249_v21  ;;  %2212 = vmatpush1.bf16.msra.mxu1 %v6256_v23  ;;  %8479 = vst [vmem:[#allocation17_spill] sm:$0xff] %v6449_v22 }
  0x9e   : > { %2049 = vmatprep.subr.bf16.mxu0 %v6264_v25  ;;  %2213 = vmatprep.subr.bf16.mxu1 %v6267_v26 }
  0x9f   : > { %2079 = vmatprep.mubr.bf16.mxu0 %v682_v32  ;;  %2243 = vmatprep.mubr.bf16.mxu1 %v682_v32  ;;  %v6457_v32 = vld [vmem:[%s6077_s23 + $0x588] ss:$16 sps:$4 sm:$0xff]  }
  0xa0   : > { %8481 = vst [vmem:[#allocation19_spill] sm:$0xff] %v6457_v32 }
  0xa1   : > { %2050 = vmatpush1.bf16.msra.mxu0 %v6278_v28  ;;  %2214 = vmatpush1.bf16.msra.mxu1 %v6281_v29 }
  0xa2   : > { %2051 = vmatprep.subr.bf16.mxu0 %v6286_v30  ;;  %2215 = vmatprep.subr.bf16.mxu1 %v6289_v31 }
  0xa5   : > { %2052 = vmatpush1.bf16.msra.mxu0 %v6294_v33  ;;  %2216 = vmatpush1.bf16.msra.mxu1 %v6297_v34 }
  0xa6   : > { %2053 = vmatprep.subr.bf16.mxu0 %v6302_v35  ;;  %2217 = vmatprep.subr.bf16.mxu1 %v6305_v36 }
  0xa9   : > { %2054 = vmatpush1.bf16.msra.mxu0 %v6310_v37  ;;  %2218 = vmatpush1.bf16.msra.mxu1 %v6313_v38 }
  0xaa   : > { %2055 = vmatprep.subr.bf16.mxu0 %v6318_v39  ;;  %2219 = vmatprep.subr.bf16.mxu1 %v6321_v40 }
  0xad   : > { %2056 = vmatpush1.bf16.msra.mxu0 %v6326_v41  ;;  %2220 = vmatpush1.bf16.msra.mxu1 %v6329_v42 }
  0xae   : > { %2057 = vmatprep.subr.bf16.mxu0 %v6334_v43  ;;  %2221 = vmatprep.subr.bf16.mxu1 %v6337_v45 }
  0xb1   : > { %2058 = vmatpush1.bf16.msra.mxu0 %v6342_v46  ;;  %2222 = vmatpush1.bf16.msra.mxu1 %v6345_v47 }
  0xb2   : > { %2059 = vmatprep.subr.bf16.mxu0 %v6350_v48  ;;  %2223 = vmatprep.subr.bf16.mxu1 %v6353_v49 }
  0xb5   : > { %2060 = vmatpush1.bf16.msra.mxu0 %v6358_v51  ;;  %2224 = vmatpush1.bf16.msra.mxu1 %v6361_v52 }
  0xb6   : > { %2061 = vmatprep.subr.bf16.mxu0 %v6366_v53  ;;  %2225 = vmatprep.subr.bf16.mxu1 %v6369_v54 }
  0xb9   : > { %2062 = vmatpush1.bf16.msra.mxu0 %v6374_v55  ;;  %2226 = vmatpush1.bf16.msra.mxu1 %v6377_v56 }
  0xba   : > { %2063 = vmatprep.subr.bf16.mxu0 %v6382_v57  ;;  %2227 = vmatprep.subr.bf16.mxu1 %v6385_v58 }
  0xbd   : > { %2064 = vmatpush1.bf16.msra.mxu0 %v6390_v59  ;;  %2228 = vmatpush1.bf16.msra.mxu1 %v6393_v60 }
  0xbe   : > { %2065 = vmatprep.subr.bf16.mxu0 %v6398_v61  ;;  %2229 = vmatprep.subr.bf16.mxu1 %v6401_v62 }
  0xc1   : > { %2066 = vmatpush1.bf16.msra.mxu0 %v6406_v63  ;;  %2230 = vmatpush1.bf16.msra.mxu1 %v6409_v0 }
  0xc2   : > { %2067 = vmatprep.subr.bf16.mxu0 %v6414_v1  ;;  %2231 = vmatprep.subr.bf16.mxu1 %v6417_v2 }
  0xc5   : > { %2068 = vmatpush1.bf16.msra.mxu0 %v6422_v3  ;;  %2232 = vmatpush1.bf16.msra.mxu1 %v6425_v4  ;;  %v6538_v4 = vld [vmem:[%s6077_s23 + $0x62c] ss:$16 sps:$4 sm:$0xff]  }
  0xc6   : > { %2069 = vmatprep.subr.bf16.mxu0 %v6430_v5  ;;  %2233 = vmatprep.subr.bf16.mxu1 %v6433_v6  ;;  %v6465_v6 = vld [vmem:[%s6077_s23 + $0x5ac] ss:$16 sps:$4 sm:$0xff]   ;;  %8499 = vst [vmem:[#allocation37_spill] sm:$0xff] %v6538_v4 }
  0xc7   : > { %8483 = vst [vmem:[#allocation21_spill] sm:$0xff] %v6465_v6  ;;  %v6499_v5 = vld [vmem:[%s6077_s23 + $0x5ec] ss:$16 sps:$4 sm:$0xff]  }
  0xc8   : > { %8491 = vst [vmem:[#allocation29_spill] sm:$0xff] %v6499_v5 }
  0xc9   : > { %2070 = vmatpush1.bf16.msra.mxu0 %v6438_v7  ;;  %2234 = vmatpush1.bf16.msra.mxu1 %v6441_v8  ;;  %v6470_v8 = vld [vmem:[%s6077_s23 + $0x5a0] ss:$16 sps:$4 sm:$0xff]   ;;  %v6473_v7 = vld [vmem:[%s6077_s23 + $0x5a8] ss:$16 sps:$4 sm:$0xff]  }
  0xca   : > { %2071 = vmatprep.subr.bf16.mxu0 %v6446_v9  ;;  %2235 = vmatprep.subr.bf16.mxu1 %v6449_v22  ;;  %8484 = vst [vmem:[#allocation22_spill] sm:$0xff] %v6470_v8  ;;  %8485 = vst [vmem:[#allocation23_spill] sm:$0xff] %v6473_v7  ;;  %v6478_v22 = vld [vmem:[%s6077_s23 + $0x5c4] ss:$16 sps:$4 sm:$0xff]   ;;  %v6481_v9 = vld [vmem:[%s6077_s23 + $0x5cc] ss:$16 sps:$4 sm:$0xff]  }
  0xcb   : > { %8486 = vst [vmem:[#allocation24_spill] sm:$0xff] %v6478_v22  ;;  %8487 = vst [vmem:[#allocation25_spill] sm:$0xff] %v6481_v9 }
  0xcd   : > { %2072 = vmatpush1.bf16.msra.mxu0 %v6454_v27  ;;  %2236 = vmatpush1.bf16.msra.mxu1 %v6457_v32  ;;  %v652_v27 = vcombine.high %v6259_v24, %v6259_v24  ;;  %v6488_v32 = vld [vmem:[%s6077_s23 + $0x5c0] ss:$16 sps:$4 sm:$0xff]  }
  0xce   : > { %2073 = vmatprep.subr.bf16.mxu0 %v6462_v44  ;;  %2237 = vmatprep.subr.bf16.mxu1 %v6465_v6  ;;  %8488 = vst [vmem:[#allocation26_spill] sm:$0xff] %v6488_v32  ;;  %v6491_v44 = vld [vmem:[%s6077_s23 + $0x5c8] ss:$16 sps:$4 sm:$0xff]   ;;  %v6496_v6 = vld [vmem:[%s6077_s23 + $0x5e4] ss:$16 sps:$4 sm:$0xff]  }
  0xcf   : > { %8489 = vst [vmem:[#allocation27_spill] sm:$0xff] %v6491_v44  ;;  %8490 = vst [vmem:[#allocation28_spill] sm:$0xff] %v6496_v6  ;;  %v6502_v24 = vrot.slane %v652_v27, %v6127_v50 }
  0xd1   : > { %2074 = vmatpush1.bf16.msra.mxu0 %v6470_v8  ;;  %2238 = vmatpush1.bf16.msra.mxu1 %v6473_v7  ;;  %v6507_v7 = vld [vmem:[%s6077_s23 + $0x5e0] ss:$16 sps:$4 sm:$0xff]   ;;  %v6518_v8 = vld [vmem:[%s6077_s23 + $0x60c] ss:$16 sps:$4 sm:$0xff]   ;;  %v668_v27 = vcombine.high %v6502_v24, %v6502_v24 }
  0xd2   : > { %2075 = vmatprep.subr.bf16.mxu0 %v6478_v22  ;;  %2239 = vmatprep.subr.bf16.mxu1 %v6481_v9  ;;  %8492 = vst [vmem:[#allocation30_spill] sm:$0xff] %v6507_v7  ;;  %v6510_v22 = vld [vmem:[%s6077_s23 + $0x5e8] ss:$16 sps:$4 sm:$0xff]   ;;  %v6515_v9 = vld [vmem:[%s6077_s23 + $0x604] ss:$16 sps:$4 sm:$0xff]   ;;  %8495 = vst [vmem:[#allocation33_spill] sm:$0xff] %v6518_v8 }
  0xd3   : > { %8493 = vst [vmem:[#allocation31_spill] sm:$0xff] %v6510_v22  ;;  %8494 = vst [vmem:[#allocation32_spill] sm:$0xff] %v6515_v9 }
  0xd5   : > { %2076 = vmatpush1.bf16.msra.mxu0 %v6488_v32  ;;  %2240 = vmatpush1.bf16.msra.mxu1 %v6491_v44  ;;  %v681_v44 = vpack.c.bf16 %v6271_v10, %v6271_v10  ;;  %v6535_v32 = vld [vmem:[%s6077_s23 + $0x624] ss:$16 sps:$4 sm:$0xff]   ;;  %v684_v10 = vpack.c.bf16 %v668_v27, %v668_v27 }
  0xd6   : > { %2077 = vmatprep.subr.bf16.mxu0 %v6496_v6  ;;  %2241 = vmatprep.subr.bf16.mxu1 %v6499_v5  ;;  %v6527_v6 = vld [vmem:[%s6077_s23 + $0x600] ss:$16 sps:$4 sm:$0xff]   ;;  %v6530_v5 = vld [vmem:[%s6077_s23 + $0x608] ss:$16 sps:$4 sm:$0xff]   ;;  %8498 = vst [vmem:[#allocation36_spill] sm:$0xff] %v6535_v32 }
  0xd7   : > { %8496 = vst [vmem:[#allocation34_spill] sm:$0xff] %v6527_v6  ;;  %8497 = vst [vmem:[#allocation35_spill] sm:$0xff] %v6530_v5  ;;  %v6551_v27 = vld [vmem:[%s6077_s23 + $0x644] ss:$16 sps:$4 sm:$0xff]  }
  0xd8   : > { %8502 = vst [vmem:[#allocation40_spill] sm:$0xff] %v6551_v27 }
  0xd9   : > { %2078 = vmatpush1.bf16.msra.mxu0 %v6507_v7  ;;  %2242 = vmatpush1.bf16.msra.mxu1 %v6510_v22  ;;  %v6543_v22 = vld [vmem:[%s6077_s23 + $0x620] ss:$16 sps:$4 sm:$0xff]   ;;  %v5552_v7 = vld [vmem:[%s6077_s23 + $0x8] ss:$16 sps:$4 sm:$0xff]  }
  0xda   : > { %2088 = vmatprep.subr.bf16.mxu0 %v6515_v9  ;;  %2252 = vmatprep.subr.bf16.mxu1 %v6518_v8  ;;  %8500 = vst [vmem:[#allocation38_spill] sm:$0xff] %v6543_v22  ;;  %v6546_v9 = vld [vmem:[%s6077_s23 + $0x628] ss:$16 sps:$4 sm:$0xff]   ;;  %v6554_v8 = vld [vmem:[%s6077_s23 + $0x64c] ss:$16 sps:$4 sm:$0xff]  }
  0xdb   : > { %8501 = vst [vmem:[#allocation39_spill] sm:$0xff] %v6546_v9  ;;  %8503 = vst [vmem:[#allocation41_spill] sm:$0xff] %v6554_v8 }
  0xdc   : > { %2080 = vmatmul.mubr.bf16.vlgmr.msra.gmra.mrb[0].mxu0 %v681_v44  ;;  %2244 = vmatmul.mubr.bf16.vlgmr.msra.gmra.mrb[0].mxu1 %v681_v44  ;;  %v6559_v44 = vld [vmem:[%s6077_s23 + $0x640] ss:$16 sps:$4 sm:$0xff]  }
  0xdd   : > { %2089 = vmatpush1.bf16.msra.mxu0 %v6527_v6  ;;  %2253 = vmatpush1.bf16.msra.mxu1 %v6530_v5  ;;  %8504 = vst [vmem:[#allocation42_spill] sm:$0xff] %v6559_v44  ;;  %v6570_v5 = vld [vmem:[%s6077_s23 + $0x66c] ss:$16 sps:$4 sm:$0xff]  }
  0xde   : > { %2090 = vmatprep.subr.bf16.mxu0 %v6535_v32  ;;  %2254 = vmatprep.subr.bf16.mxu1 %v6538_v4  ;;  %v6562_v32 = vld [vmem:[%s6077_s23 + $0x648] ss:$16 sps:$4 sm:$0xff]   ;;  %v6567_v4 = vld [vmem:[%s6077_s23 + $0x664] ss:$16 sps:$4 sm:$0xff]   ;;  %8507 = vst [vmem:[#allocation45_spill] sm:$0xff] %v6570_v5 }
  0xdf   : > { %2120 = vmatprep.mubr.bf16.mxu0 %v684_v10  ;;  %2284 = vmatprep.mubr.bf16.mxu1 %v684_v10  ;;  %8505 = vst [vmem:[#allocation43_spill] sm:$0xff] %v6562_v32  ;;  %8506 = vst [vmem:[#allocation44_spill] sm:$0xff] %v6567_v4  ;;  %v6575_v10 = vld [vmem:[%s6077_s23 + $0x660] ss:$16 sps:$4 sm:$0xff]  }
  0xe0   : > { %8508 = vst [vmem:[#allocation46_spill] sm:$0xff] %v6575_v10 }
  0xe1   : > { %2091 = vmatpush1.bf16.msra.mxu0 %v6543_v22  ;;  %2255 = vmatpush1.bf16.msra.mxu1 %v6546_v9  ;;  %v6578_v9 = vld [vmem:[%s6077_s23 + $0x668] ss:$16 sps:$4 sm:$0xff]   ;;  %v6749_v22 = vld [vmem:[%s6072_s19] sm:$0xff] }
  0xe2   : > { %2092 = vmatprep.subr.bf16.mxu0 %v6551_v27  ;;  %2256 = vmatprep.subr.bf16.mxu1 %v6554_v8  ;;  %8509 = vst [vmem:[#allocation47_spill] sm:$0xff] %v6578_v9  ;;  %v6583_v8 = vld [vmem:[%s6077_s23 + $0x684] ss:$16 sps:$4 sm:$0xff]   ;;  %v6586_v27 = vld [vmem:[%s6077_s23 + $0x68c] ss:$16 sps:$4 sm:$0xff]   ;;  %v6769_v6 = vrot.slane %v6749_v22, %v6127_v50 }
  0xe3   : > { %8510 = vst [vmem:[#allocation48_spill] sm:$0xff] %v6583_v8  ;;  %8511 = vst [vmem:[#allocation49_spill] sm:$0xff] %v6586_v27 }
  0xe5   : > { %2093 = vmatpush1.bf16.msra.mxu0 %v6559_v44  ;;  %2257 = vmatpush1.bf16.msra.mxu1 %v6562_v32  ;;  %v6591_v32 = vld [vmem:[%s6077_s23 + $0x680] ss:$16 sps:$4 sm:$0xff]   ;;  %v6594_v44 = vld [vmem:[%s6077_s23 + $0x688] ss:$16 sps:$4 sm:$0xff]  }
  0xe6   : > { %2094 = vmatprep.subr.bf16.mxu0 %v6567_v4  ;;  %2258 = vmatprep.subr.bf16.mxu1 %v6570_v5  ;;  %8512 = vst [vmem:[#allocation50_spill] sm:$0xff] %v6591_v32  ;;  %8513 = vst [vmem:[#allocation51_spill] sm:$0xff] %v6594_v44  ;;  %v6599_v5 = vld [vmem:[%s6077_s23 + $0x6a4] ss:$16 sps:$4 sm:$0xff]   ;;  %v6602_v4 = vld [vmem:[%s6077_s23 + $0x6ac] ss:$16 sps:$4 sm:$0xff]  }
  0xe7   : > { %8514 = vst [vmem:[#allocation52_spill] sm:$0xff] %v6599_v5  ;;  %8515 = vst [vmem:[#allocation53_spill] sm:$0xff] %v6602_v4 }
  0xe9   : > { %2095 = vmatpush1.bf16.msra.mxu0 %v6575_v10  ;;  %2259 = vmatpush1.bf16.msra.mxu1 %v6578_v9  ;;  %v6607_v9 = vld [vmem:[%s6077_s23 + $0x6a0] ss:$16 sps:$4 sm:$0xff]   ;;  %v6610_v10 = vld [vmem:[%s6077_s23 + $0x6a8] ss:$16 sps:$4 sm:$0xff]  }
  0xea   : > { %2096 = vmatprep.subr.bf16.mxu0 %v6583_v8  ;;  %2260 = vmatprep.subr.bf16.mxu1 %v6586_v27  ;;  %8516 = vst [vmem:[#allocation54_spill] sm:$0xff] %v6607_v9  ;;  %8517 = vst [vmem:[#allocation55_spill] sm:$0xff] %v6610_v10  ;;  %v6615_v27 = vld [vmem:[%s6077_s23 + $0x6c4] ss:$16 sps:$4 sm:$0xff]   ;;  %v6618_v8 = vld [vmem:[%s6077_s23 + $0x6cc] ss:$16 sps:$4 sm:$0xff]  }
  0xeb   : > { %8518 = vst [vmem:[#allocation56_spill] sm:$0xff] %v6615_v27  ;;  %8519 = vst [vmem:[#allocation57_spill] sm:$0xff] %v6618_v8 }
  0xed   : > { %2097 = vmatpush1.bf16.msra.mxu0 %v6591_v32  ;;  %2261 = vmatpush1.bf16.msra.mxu1 %v6594_v44  ;;  %v6623_v44 = vld [vmem:[%s6077_s23 + $0x6c0] ss:$16 sps:$4 sm:$0xff]   ;;  %v6626_v32 = vld [vmem:[%s6077_s23 + $0x6c8] ss:$16 sps:$4 sm:$0xff]  }
  0xee   : > { %2098 = vmatprep.subr.bf16.mxu0 %v6599_v5  ;;  %2262 = vmatprep.subr.bf16.mxu1 %v6602_v4  ;;  %8520 = vst [vmem:[#allocation58_spill] sm:$0xff] %v6623_v44  ;;  %8521 = vst [vmem:[#allocation59_spill] sm:$0xff] %v6626_v32  ;;  %v6631_v4 = vld [vmem:[%s6077_s23 + $0x6e4] ss:$16 sps:$4 sm:$0xff]   ;;  %v6634_v5 = vld [vmem:[%s6077_s23 + $0x6ec] ss:$16 sps:$4 sm:$0xff]  }
  0xef   : > { %8522 = vst [vmem:[#allocation60_spill] sm:$0xff] %v6631_v4  ;;  %8523 = vst [vmem:[#allocation61_spill] sm:$0xff] %v6634_v5 }
  0xf1   : > { %2099 = vmatpush1.bf16.msra.mxu0 %v6607_v9  ;;  %2263 = vmatpush1.bf16.msra.mxu1 %v6610_v10  ;;  %v6639_v10 = vld [vmem:[%s6077_s23 + $0x6e0] ss:$16 sps:$4 sm:$0xff]   ;;  %v6642_v9 = vld [vmem:[%s6077_s23 + $0x6e8] ss:$16 sps:$4 sm:$0xff]  }
  0xf2   : > { %2100 = vmatprep.subr.bf16.mxu0 %v6615_v27  ;;  %2264 = vmatprep.subr.bf16.mxu1 %v6618_v8  ;;  %8524 = vst [vmem:[#allocation62_spill] sm:$0xff] %v6639_v10  ;;  %8525 = vst [vmem:[#allocation63_spill] sm:$0xff] %v6642_v9  ;;  %v6647_v8 = vld [vmem:[%s6077_s23 + $0x704] ss:$16 sps:$4 sm:$0xff]   ;;  %v6650_v27 = vld [vmem:[%s6077_s23 + $0x70c] ss:$16 sps:$4 sm:$0xff]  }
  0xf3   : > { %8526 = vst [vmem:[#allocation64_spill] sm:$0xff] %v6647_v8  ;;  %8527 = vst [vmem:[#allocation65_spill] sm:$0xff] %v6650_v27 }
  0xf5   : > { %2101 = vmatpush1.bf16.msra.mxu0 %v6623_v44  ;;  %2265 = vmatpush1.bf16.msra.mxu1 %v6626_v32  ;;  %v6655_v32 = vld [vmem:[%s6077_s23 + $0x700] ss:$16 sps:$4 sm:$0xff]   ;;  %v6658_v44 = vld [vmem:[%s6077_s23 + $0x708] ss:$16 sps:$4 sm:$0xff]  }
  0xf6   : > { %2102 = vmatprep.subr.bf16.mxu0 %v6631_v4  ;;  %2266 = vmatprep.subr.bf16.mxu1 %v6634_v5  ;;  %8528 = vst [vmem:[#allocation66_spill] sm:$0xff] %v6655_v32  ;;  %8529 = vst [vmem:[#allocation67_spill] sm:$0xff] %v6658_v44  ;;  %v6663_v5 = vld [vmem:[%s6077_s23 + $0x724] ss:$16 sps:$4 sm:$0xff]   ;;  %v6666_v4 = vld [vmem:[%s6077_s23 + $0x72c] ss:$16 sps:$4 sm:$0xff]  }
  0xf7   : > { %8530 = vst [vmem:[#allocation68_spill] sm:$0xff] %v6663_v5  ;;  %8531 = vst [vmem:[#allocation69_spill] sm:$0xff] %v6666_v4 }
  0xf9   : > { %2103 = vmatpush1.bf16.msra.mxu0 %v6639_v10  ;;  %2267 = vmatpush1.bf16.msra.mxu1 %v6642_v9  ;;  %v6671_v9 = vld [vmem:[%s6077_s23 + $0x720] ss:$16 sps:$4 sm:$0xff]   ;;  %v6674_v10 = vld [vmem:[%s6077_s23 + $0x728] ss:$16 sps:$4 sm:$0xff]  }
  0xfa   : > { %2104 = vmatprep.subr.bf16.mxu0 %v6647_v8  ;;  %2268 = vmatprep.subr.bf16.mxu1 %v6650_v27  ;;  %8532 = vst [vmem:[#allocation70_spill] sm:$0xff] %v6671_v9  ;;  %8533 = vst [vmem:[#allocation71_spill] sm:$0xff] %v6674_v10  ;;  %v6679_v27 = vld [vmem:[%s6077_s23 + $0x744] ss:$16 sps:$4 sm:$0xff]   ;;  %v6682_v8 = vld [vmem:[%s6077_s23 + $0x74c] ss:$16 sps:$4 sm:$0xff]  }
  0xfb   : > { %8534 = vst [vmem:[#allocation72_spill] sm:$0xff] %v6679_v27  ;;  %8535 = vst [vmem:[#allocation73_spill] sm:$0xff] %v6682_v8 }
  0xfd   : > { %2105 = vmatpush1.bf16.msra.mxu0 %v6655_v32  ;;  %2269 = vmatpush1.bf16.msra.mxu1 %v6658_v44  ;;  %v6687_v44 = vld [vmem:[%s6077_s23 + $0x740] ss:$16 sps:$4 sm:$0xff]   ;;  %v6690_v32 = vld [vmem:[%s6077_s23 + $0x748] ss:$16 sps:$4 sm:$0xff]  }
  0xfe   : > { %2106 = vmatprep.subr.bf16.mxu0 %v6663_v5  ;;  %2270 = vmatprep.subr.bf16.mxu1 %v6666_v4  ;;  %8536 = vst [vmem:[#allocation74_spill] sm:$0xff] %v6687_v44  ;;  %8537 = vst [vmem:[#allocation75_spill] sm:$0xff] %v6690_v32  ;;  %v6695_v4 = vld [vmem:[%s6077_s23 + $0x764] ss:$16 sps:$4 sm:$0xff]   ;;  %v6698_v5 = vld [vmem:[%s6077_s23 + $0x76c] ss:$16 sps:$4 sm:$0xff]  }
  0xff   : > { %8538 = vst [vmem:[#allocation76_spill] sm:$0xff] %v6695_v4  ;;  %8539 = vst [vmem:[#allocation77_spill] sm:$0xff] %v6698_v5 }
 0x101   : > { %2107 = vmatpush1.bf16.msra.mxu0 %v6671_v9  ;;  %2271 = vmatpush1.bf16.msra.mxu1 %v6674_v10  ;;  %v6703_v10 = vld [vmem:[%s6077_s23 + $0x760] ss:$16 sps:$4 sm:$0xff]   ;;  %v6706_v9 = vld [vmem:[%s6077_s23 + $0x768] ss:$16 sps:$4 sm:$0xff]  }
 0x102   : > { %2108 = vmatprep.subr.bf16.mxu0 %v6679_v27  ;;  %2272 = vmatprep.subr.bf16.mxu1 %v6682_v8  ;;  %8540 = vst [vmem:[#allocation78_spill] sm:$0xff] %v6703_v10  ;;  %8541 = vst [vmem:[#allocation79_spill] sm:$0xff] %v6706_v9  ;;  %v6711_v8 = vld [vmem:[%s6077_s23 + $0x784] ss:$16 sps:$4 sm:$0xff]   ;;  %v6714_v27 = vld [vmem:[%s6077_s23 + $0x78c] ss:$16 sps:$4 sm:$0xff]  }
 0x103   : > { %8542 = vst [vmem:[#allocation80_spill] sm:$0xff] %v6711_v8  ;;  %8543 = vst [vmem:[#allocation81_spill] sm:$0xff] %v6714_v27 }
 0x105   : > { %2109 = vmatpush1.bf16.msra.mxu0 %v6687_v44  ;;  %2273 = vmatpush1.bf16.msra.mxu1 %v6690_v32  ;;  %v6719_v32 = vld [vmem:[%s6077_s23 + $0x780] ss:$16 sps:$4 sm:$0xff]   ;;  %v6722_v44 = vld [vmem:[%s6077_s23 + $0x788] ss:$16 sps:$4 sm:$0xff]  }
 0x106   : > { %2110 = vmatprep.subr.bf16.mxu0 %v6695_v4  ;;  %2274 = vmatprep.subr.bf16.mxu1 %v6698_v5  ;;  %8544 = vst [vmem:[#allocation82_spill] sm:$0xff] %v6719_v32  ;;  %8545 = vst [vmem:[#allocation83_spill] sm:$0xff] %v6722_v44  ;;  %v6727_v5 = vld [vmem:[%s6077_s23 + $0x7a4] ss:$16 sps:$4 sm:$0xff]   ;;  %v6730_v4 = vld [vmem:[%s6077_s23 + $0x7ac] ss:$16 sps:$4 sm:$0xff]  }
 0x107   : > { %8546 = vst [vmem:[#allocation84_spill] sm:$0xff] %v6727_v5  ;;  %8547 = vst [vmem:[#allocation85_spill] sm:$0xff] %v6730_v4 }
 0x109   : > { %2111 = vmatpush1.bf16.msra.mxu0 %v6703_v10  ;;  %2275 = vmatpush1.bf16.msra.mxu1 %v6706_v9  ;;  %v6735_v9 = vld [vmem:[%s6077_s23 + $0x7a0] ss:$16 sps:$4 sm:$0xff]   ;;  %v6738_v10 = vld [vmem:[%s6077_s23 + $0x7a8] ss:$16 sps:$4 sm:$0xff]  }
 0x10a   : > { %2112 = vmatprep.subr.bf16.mxu0 %v6711_v8  ;;  %2276 = vmatprep.subr.bf16.mxu1 %v6714_v27  ;;  %8548 = vst [vmem:[#allocation86_spill] sm:$0xff] %v6735_v9  ;;  %8549 = vst [vmem:[#allocation87_spill] sm:$0xff] %v6738_v10  ;;  %v6743_v27 = vld [vmem:[%s6077_s23 + $0x7c4] ss:$16 sps:$4 sm:$0xff]   ;;  %v6746_v8 = vld [vmem:[%s6077_s23 + $0x7cc] ss:$16 sps:$4 sm:$0xff]  }
 0x10b   : > { %8550 = vst [vmem:[#allocation88_spill] sm:$0xff] %v6743_v27  ;;  %8551 = vst [vmem:[#allocation89_spill] sm:$0xff] %v6746_v8 }
 0x10d   : > { %2113 = vmatpush1.bf16.msra.mxu0 %v6719_v32  ;;  %2277 = vmatpush1.bf16.msra.mxu1 %v6722_v44  ;;  %v6754_v44 = vld [vmem:[%s6077_s23 + $0x7c0] ss:$16 sps:$4 sm:$0xff]   ;;  %v6757_v32 = vld [vmem:[%s6077_s23 + $0x7c8] ss:$16 sps:$4 sm:$0xff]  }
 0x10e   : > { %2114 = vmatprep.subr.bf16.mxu0 %v6727_v5  ;;  %2278 = vmatprep.subr.bf16.mxu1 %v6730_v4  ;;  %8552 = vst [vmem:[#allocation90_spill] sm:$0xff] %v6754_v44  ;;  %8553 = vst [vmem:[#allocation91_spill] sm:$0xff] %v6757_v32  ;;  %v6762_v4 = vld [vmem:[%s6077_s23 + $0x7e4] ss:$16 sps:$4 sm:$0xff]   ;;  %v6765_v5 = vld [vmem:[%s6077_s23 + $0x7ec] ss:$16 sps:$4 sm:$0xff]  }
 0x10f   : > { %8554 = vst [vmem:[#allocation92_spill] sm:$0xff] %v6762_v4  ;;  %8555 = vst [vmem:[#allocation93_spill] sm:$0xff] %v6765_v5 }
 0x111   : > { %2115 = vmatpush1.bf16.msra.mxu0 %v6735_v9  ;;  %2279 = vmatpush1.bf16.msra.mxu1 %v6738_v10  ;;  %v6774_v10 = vld [vmem:[%s6077_s23 + $0x7e0] ss:$16 sps:$4 sm:$0xff]   ;;  %v6777_v9 = vld [vmem:[%s6077_s23 + $0x7e8] ss:$16 sps:$4 sm:$0xff]  }
 0x112   : > { %2116 = vmatprep.subr.bf16.mxu0 %v6743_v27  ;;  %2280 = vmatprep.subr.bf16.mxu1 %v6746_v8  ;;  %8556 = vst [vmem:[#allocation94_spill] sm:$0xff] %v6777_v9  ;;  %v2337_v8 = vcombine.high %v6769_v6, %v6769_v6  ;;  %v683_v27 = vpack.c.bf16 %v6502_v24, %v6502_v24  ;;  %v5553_v24 = vld [vmem:[%s6077_s23 + $0x24] ss:$16 sps:$4 sm:$0xff]  }
 0x115   : > { %2117 = vmatpush1.bf16.msra.mxu0 %v6754_v44  ;;  %2281 = vmatpush1.bf16.msra.mxu1 %v6757_v32  ;;  %v5549_v32 = vld [vmem:[%s6077_s23 + $0x4] ss:$16 sps:$4 sm:$0xff]   ;;  %v5550_v44 = vld [vmem:[%s6077_s23 + $0xc] ss:$16 sps:$4 sm:$0xff]  }
 0x116   : > { %2118 = vmatprep.subr.bf16.mxu0 %v6762_v4  ;;  %2282 = vmatprep.subr.bf16.mxu1 %v6765_v5  ;;  %v2365_v4 = vpack.c.bf16 %v2337_v8, %v2337_v8  ;;  %v5551_v5 = vld [vmem:[%s6077_s23] ss:$16 sps:$4 sm:$0xff]   ;;  %v5556_v8 = vld [vmem:[%s6077_s23 + $0x28] ss:$16 sps:$4 sm:$0xff]  }
 0x119   : > { %2119 = vmatpush1.bf16.msra.mxu0 %v6774_v10  ;;  %2283 = vmatpush1.bf16.msra.mxu1 %v6777_v9  ;;  %v5554_v9 = vld [vmem:[%s6077_s23 + $0x2c] ss:$16 sps:$4 sm:$0xff]  }
 0x11a   : > { %2372 = vmatprep.subr.bf16.mxu0 %v5549_v32  ;;  %2536 = vmatprep.subr.bf16.mxu1 %v5550_v44  ;;  %v5555_v32 = vld [vmem:[%s6077_s23 + $0x20] ss:$16 sps:$4 sm:$0xff]   ;;  %v5560_v44 = vld [vmem:[%s6077_s23 + $0x48] ss:$16 sps:$4 sm:$0xff]  }
 0x11c   : > { %2121 = vmatmul.mubr.bf16.vlgmr.msra.gmra.mrb[0].mxu0 %v683_v27  ;;  %2285 = vmatmul.mubr.bf16.vlgmr.msra.gmra.mrb[0].mxu1 %v683_v27  ;;  %v5557_v27 = vld [vmem:[%s6077_s23 + $0x44] ss:$16 sps:$4 sm:$0xff]  }
 0x11d   : > { %2373 = vmatpush1.bf16.msra.mxu0 %v5551_v5  ;;  %2537 = vmatpush1.bf16.msra.mxu1 %v5552_v7  ;;  %v5558_v5 = vld [vmem:[%s6077_s23 + $0x4c] ss:$16 sps:$4 sm:$0xff]   ;;  %v5559_v7 = vld [vmem:[%s6077_s23 + $0x40] ss:$16 sps:$4 sm:$0xff]  }
 0x11e   : > { %2374 = vmatprep.subr.bf16.mxu0 %v5553_v24  ;;  %2538 = vmatprep.subr.bf16.mxu1 %v5554_v9  ;;  %v5561_v9 = vld [vmem:[%s6077_s23 + $0x64] ss:$16 sps:$4 sm:$0xff]   ;;  %v5563_v24 = vld [vmem:[%s6077_s23 + $0x60] ss:$16 sps:$4 sm:$0xff]  }
 0x11f   : > { %2404 = vmatprep.mubr.bf16.mxu0 %v2365_v4  ;;  %2568 = vmatprep.mubr.bf16.mxu1 %v2365_v4  ;;  %v5562_v4 = vld [vmem:[%s6077_s23 + $0x6c] ss:$16 sps:$4 sm:$0xff]  }
 0x121   : > { %2375 = vmatpush1.bf16.msra.mxu0 %v5555_v32  ;;  %2539 = vmatpush1.bf16.msra.mxu1 %v5556_v8  ;;  %v5564_v32 = vld [vmem:[%s6077_s23 + $0x68] ss:$16 sps:$4 sm:$0xff]   ;;  %v5565_v8 = vld [vmem:[%s6077_s23 + $0x84] ss:$16 sps:$4 sm:$0xff]  }
 0x122   : > { %2376 = vmatprep.subr.bf16.mxu0 %v5557_v27  ;;  %2540 = vmatprep.subr.bf16.mxu1 %v5558_v5  ;;  %v5566_v27 = vld [vmem:[%s6077_s23 + $0x8c] ss:$16 sps:$4 sm:$0xff]   ;;  %v5567_v5 = vld [vmem:[%s6077_s23 + $0x80] ss:$16 sps:$4 sm:$0xff]  }
 0x125   : > { %2377 = vmatpush1.bf16.msra.mxu0 %v5559_v7  ;;  %2541 = vmatpush1.bf16.msra.mxu1 %v5560_v44  ;;  %v5568_v7 = vld [vmem:[%s6077_s23 + $0x88] ss:$16 sps:$4 sm:$0xff]   ;;  %v5569_v44 = vld [vmem:[%s6077_s23 + $0xa4] ss:$16 sps:$4 sm:$0xff]  }
 0x126   : > { %2378 = vmatprep.subr.bf16.mxu0 %v5561_v9  ;;  %2542 = vmatprep.subr.bf16.mxu1 %v5562_v4  ;;  %v5570_v9 = vld [vmem:[%s6077_s23 + $0xac] ss:$16 sps:$4 sm:$0xff]   ;;  %v5571_v4 = vld [vmem:[%s6077_s23 + $0xa0] ss:$16 sps:$4 sm:$0xff]  }
 0x129   : > { %2379 = vmatpush1.bf16.msra.mxu0 %v5563_v24  ;;  %2543 = vmatpush1.bf16.msra.mxu1 %v5564_v32  ;;  %v5572_v24 = vld [vmem:[%s6077_s23 + $0xa8] ss:$16 sps:$4 sm:$0xff]   ;;  %v5573_v32 = vld [vmem:[%s6077_s23 + $0xc4] ss:$16 sps:$4 sm:$0xff]  }
 0x12a   : > { %2380 = vmatprep.subr.bf16.mxu0 %v5565_v8  ;;  %2544 = vmatprep.subr.bf16.mxu1 %v5566_v27  ;;  %v5574_v8 = vld [vmem:[%s6077_s23 + $0xcc] ss:$16 sps:$4 sm:$0xff]   ;;  %v5575_v27 = vld [vmem:[%s6077_s23 + $0xc0] ss:$16 sps:$4 sm:$0xff]  }
 0x12d   : > { %2381 = vmatpush1.bf16.msra.mxu0 %v5567_v5  ;;  %2545 = vmatpush1.bf16.msra.mxu1 %v5568_v7  ;;  %v5576_v5 = vld [vmem:[%s6077_s23 + $0xc8] ss:$16 sps:$4 sm:$0xff]   ;;  %v5577_v7 = vld [vmem:[%s6077_s23 + $0xe4] ss:$16 sps:$4 sm:$0xff]  }
 0x12e   : > { %2382 = vmatprep.subr.bf16.mxu0 %v5569_v44  ;;  %2546 = vmatprep.subr.bf16.mxu1 %v5570_v9  ;;  %v5578_v44 = vld [vmem:[%s6077_s23 + $0xec] ss:$16 sps:$4 sm:$0xff]   ;;  %v5579_v9 = vld [vmem:[%s6077_s23 + $0xe0] ss:$16 sps:$4 sm:$0xff]  }
 0x131   : > { %2383 = vmatpush1.bf16.msra.mxu0 %v5571_v4  ;;  %2547 = vmatpush1.bf16.msra.mxu1 %v5572_v24  ;;  %v5580_v4 = vld [vmem:[%s6077_s23 + $0xe8] ss:$16 sps:$4 sm:$0xff]   ;;  %v5581_v24 = vld [vmem:[%s6077_s23 + $0x104] ss:$16 sps:$4 sm:$0xff]  }
 0x132   : > { %2384 = vmatprep.subr.bf16.mxu0 %v5573_v32  ;;  %2548 = vmatprep.subr.bf16.mxu1 %v5574_v8  ;;  %v5582_v32 = vld [vmem:[%s6077_s23 + $0x10c] ss:$16 sps:$4 sm:$0xff]   ;;  %v5583_v8 = vld [vmem:[%s6077_s23 + $0x100] ss:$16 sps:$4 sm:$0xff]  }
 0x135   : > { %2385 = vmatpush1.bf16.msra.mxu0 %v5575_v27  ;;  %2549 = vmatpush1.bf16.msra.mxu1 %v5576_v5  ;;  %v5584_v27 = vld [vmem:[%s6077_s23 + $0x108] ss:$16 sps:$4 sm:$0xff]   ;;  %v5585_v5 = vld [vmem:[%s6077_s23 + $0x124] ss:$16 sps:$4 sm:$0xff]  }
 0x136   : > { %2386 = vmatprep.subr.bf16.mxu0 %v5577_v7  ;;  %2550 = vmatprep.subr.bf16.mxu1 %v5578_v44  ;;  %v5586_v7 = vld [vmem:[%s6077_s23 + $0x12c] ss:$16 sps:$4 sm:$0xff]   ;;  %v5587_v44 = vld [vmem:[%s6077_s23 + $0x120] ss:$16 sps:$4 sm:$0xff]  }
 0x139   : > { %2387 = vmatpush1.bf16.msra.mxu0 %v5579_v9  ;;  %2551 = vmatpush1.bf16.msra.mxu1 %v5580_v4  ;;  %v5588_v9 = vld [vmem:[%s6077_s23 + $0x128] ss:$16 sps:$4 sm:$0xff]   ;;  %v5589_v4 = vld [vmem:[%s6077_s23 + $0x144] ss:$16 sps:$4 sm:$0xff]  }
 0x13a   : > { %2388 = vmatprep.subr.bf16.mxu0 %v5581_v24  ;;  %2552 = vmatprep.subr.bf16.mxu1 %v5582_v32  ;;  %v5590_v24 = vld [vmem:[%s6077_s23 + $0x14c] ss:$16 sps:$4 sm:$0xff]   ;;  %v5591_v32 = vld [vmem:[%s6077_s23 + $0x140] ss:$16 sps:$4 sm:$0xff]  }
 0x13d   : > { %2389 = vmatpush1.bf16.msra.mxu0 %v5583_v8  ;;  %2553 = vmatpush1.bf16.msra.mxu1 %v5584_v27  ;;  %v5592_v8 = vld [vmem:[%s6077_s23 + $0x148] ss:$16 sps:$4 sm:$0xff]   ;;  %v5593_v27 = vld [vmem:[%s6077_s23 + $0x164] ss:$16 sps:$4 sm:$0xff]  }
 0x13e   : > { %2390 = vmatprep.subr.bf16.mxu0 %v5585_v5  ;;  %2554 = vmatprep.subr.bf16.mxu1 %v5586_v7  ;;  %v5594_v5 = vld [vmem:[%s6077_s23 + $0x16c] ss:$16 sps:$4 sm:$0xff]   ;;  %v5595_v7 = vld [vmem:[%s6077_s23 + $0x160] ss:$16 sps:$4 sm:$0xff]  }
 0x141   : > { %2391 = vmatpush1.bf16.msra.mxu0 %v5587_v44  ;;  %2555 = vmatpush1.bf16.msra.mxu1 %v5588_v9  ;;  %v5596_v44 = vld [vmem:[%s6077_s23 + $0x168] ss:$16 sps:$4 sm:$0xff]   ;;  %v5597_v9 = vld [vmem:[%s6077_s23 + $0x184] ss:$16 sps:$4 sm:$0xff]  }
 0x142   : > { %2392 = vmatprep.subr.bf16.mxu0 %v5589_v4  ;;  %2556 = vmatprep.subr.bf16.mxu1 %v5590_v24  ;;  %v5598_v4 = vld [vmem:[%s6077_s23 + $0x18c] ss:$16 sps:$4 sm:$0xff]   ;;  %v5599_v24 = vld [vmem:[%s6077_s23 + $0x180] ss:$16 sps:$4 sm:$0xff]  }
 0x145   : > { %2393 = vmatpush1.bf16.msra.mxu0 %v5591_v32  ;;  %2557 = vmatpush1.bf16.msra.mxu1 %v5592_v8  ;;  %v5600_v32 = vld [vmem:[%s6077_s23 + $0x188] ss:$16 sps:$4 sm:$0xff]   ;;  %v5601_v8 = vld [vmem:[%s6077_s23 + $0x1a4] ss:$16 sps:$4 sm:$0xff]  }
 0x146   : > { %2394 = vmatprep.subr.bf16.mxu0 %v5593_v27  ;;  %2558 = vmatprep.subr.bf16.mxu1 %v5594_v5  ;;  %v5602_v27 = vld [vmem:[%s6077_s23 + $0x1ac] ss:$16 sps:$4 sm:$0xff]   ;;  %v2322_v5 = vcombine.high %v6749_v22, %v6749_v22  ;;  %v5609_v22 = vld [vmem:[%s6077_s23 + $0x1e4] ss:$16 sps:$4 sm:$0xff]  }
 0x149   : > { %2395 = vmatpush1.bf16.msra.mxu0 %v5595_v7  ;;  %2559 = vmatpush1.bf16.msra.mxu1 %v5596_v44  ;;  %v5603_v7 = vld [vmem:[%s6077_s23 + $0x1a0] ss:$16 sps:$4 sm:$0xff]   ;;  %v5604_v44 = vld [vmem:[%s6077_s23 + $0x1a8] ss:$16 sps:$4 sm:$0xff]  }
 0x14a   : > { %2396 = vmatprep.subr.bf16.mxu0 %v5597_v9  ;;  %2560 = vmatprep.subr.bf16.mxu1 %v5598_v4  ;;  %v5605_v9 = vld [vmem:[%s6077_s23 + $0x1c4] ss:$16 sps:$4 sm:$0xff]   ;;  %v5606_v4 = vld [vmem:[%s6077_s23 + $0x1cc] ss:$16 sps:$4 sm:$0xff]  }
 0x14d   : > { %2397 = vmatpush1.bf16.msra.mxu0 %v5599_v24  ;;  %2561 = vmatpush1.bf16.msra.mxu1 %v5600_v32  ;;  %v6848_v24 = vrot.slane %v2322_v5, %v6127_v50  ;;  %v5607_v32 = vld [vmem:[%s6077_s23 + $0x1c0] ss:$16 sps:$4 sm:$0xff]  }
 0x14e   : > { %2398 = vmatprep.subr.bf16.mxu0 %v5601_v8  ;;  %2562 = vmatprep.subr.bf16.mxu1 %v5602_v27  ;;  %v5608_v8 = vld [vmem:[%s6077_s23 + $0x1c8] ss:$16 sps:$4 sm:$0xff]   ;;  %v5610_v27 = vld [vmem:[%s6077_s23 + $0x1ec] ss:$16 sps:$4 sm:$0xff]   ;;  %v5611_v5 = vld [vmem:[%s6077_s23 + $0x1e0] ss:$16 sps:$4 sm:$0xff]  }
 0x151   : > { %2399 = vmatpush1.bf16.msra.mxu0 %v5603_v7  ;;  %2563 = vmatpush1.bf16.msra.mxu1 %v5604_v44  ;;  %v2338_v7 = vcombine.high %v6848_v24, %v6848_v24  ;;  %v2364_v44 = vpack.c.bf16 %v6769_v6, %v6769_v6  ;;  %v5616_v6 = vld [vmem:[%s6077_s23 + $0x208] ss:$16 sps:$4 sm:$0xff]  }
 0x152   : > { %2400 = vmatprep.subr.bf16.mxu0 %v5605_v9  ;;  %2564 = vmatprep.subr.bf16.mxu1 %v5606_v4  ;;  %v5612_v9 = vld [vmem:[%s6077_s23 + $0x1e8] ss:$16 sps:$4 sm:$0xff]   ;;  %v5613_v4 = vld [vmem:[%s6077_s23 + $0x204] ss:$16 sps:$4 sm:$0xff]  }
 0x155   : > { %2401 = vmatpush1.bf16.msra.mxu0 %v5607_v32  ;;  %2565 = vmatpush1.bf16.msra.mxu1 %v5608_v8  ;;  %v5614_v32 = vld [vmem:[%s6077_s23 + $0x20c] ss:$16 sps:$4 sm:$0xff]   ;;  %v2367_v8 = vpack.c.bf16 %v2338_v7, %v2338_v7  ;;  %v5620_v7 = vld [vmem:[%s6077_s23 + $0x228] ss:$16 sps:$4 sm:$0xff]  }
 0x156   : > { %2402 = vmatprep.subr.bf16.mxu0 %v5609_v22  ;;  %2566 = vmatprep.subr.bf16.mxu1 %v5610_v27  ;;  %v5615_v22 = vld [vmem:[%s6077_s23 + $0x200] ss:$16 sps:$4 sm:$0xff]   ;;  %v5617_v27 = vld [vmem:[%s6077_s23 + $0x224] ss:$16 sps:$4 sm:$0xff]  }
 0x159   : > { %2403 = vmatpush1.bf16.msra.mxu0 %v5611_v5  ;;  %2567 = vmatpush1.bf16.msra.mxu1 %v5612_v9  ;;  %v5618_v5 = vld [vmem:[%s6077_s23 + $0x22c] ss:$16 sps:$4 sm:$0xff]   ;;  %v5619_v9 = vld [vmem:[%s6077_s23 + $0x220] ss:$16 sps:$4 sm:$0xff]  }
 0x15a   : > { %2413 = vmatprep.subr.bf16.mxu0 %v5613_v4  ;;  %2577 = vmatprep.subr.bf16.mxu1 %v5614_v32  ;;  %v5622_v4 = vld [vmem:[%s6077_s23 + $0x24c] ss:$16 sps:$4 sm:$0xff]   ;;  %v5623_v32 = vld [vmem:[%s6077_s23 + $0x240] ss:$16 sps:$4 sm:$0xff]  }
 0x15c   : > { %2405 = vmatmul.mubr.bf16.vlgmr.msra.gmra.mrb[4].mxu0 %v2364_v44  ;;  %2569 = vmatmul.mubr.bf16.vlgmr.msra.gmra.mrb[4].mxu1 %v2364_v44  ;;  %v5621_v44 = vld [vmem:[%s6077_s23 + $0x244] ss:$16 sps:$4 sm:$0xff]  }
 0x15d   : > { %2414 = vmatpush1.bf16.msra.mxu0 %v5615_v22  ;;  %2578 = vmatpush1.bf16.msra.mxu1 %v5616_v6  ;;  %v5624_v22 = vld [vmem:[%s6077_s23 + $0x248] ss:$16 sps:$4 sm:$0xff]   ;;  %v5625_v6 = vld [vmem:[%s6077_s23 + $0x264] ss:$16 sps:$4 sm:$0xff]  }
 0x15e   : > { %2415 = vmatprep.subr.bf16.mxu0 %v5617_v27  ;;  %2579 = vmatprep.subr.bf16.mxu1 %v5618_v5  ;;  %v5627_v27 = vld [vmem:[%s6077_s23 + $0x260] ss:$16 sps:$4 sm:$0xff]   ;;  %v5628_v5 = vld [vmem:[%s6077_s23 + $0x268] ss:$16 sps:$4 sm:$0xff]  }
 0x15f   : > { %2445 = vmatprep.mubr.bf16.mxu0 %v2367_v8  ;;  %2609 = vmatprep.mubr.bf16.mxu1 %v2367_v8  ;;  %v5626_v8 = vld [vmem:[%s6077_s23 + $0x26c] ss:$16 sps:$4 sm:$0xff]  }
 0x161   : > { %2416 = vmatpush1.bf16.msra.mxu0 %v5619_v9  ;;  %2580 = vmatpush1.bf16.msra.mxu1 %v5620_v7  ;;  %v5629_v9 = vld [vmem:[%s6077_s23 + $0x284] ss:$16 sps:$4 sm:$0xff]   ;;  %v5630_v7 = vld [vmem:[%s6077_s23 + $0x28c] ss:$16 sps:$4 sm:$0xff]  }
 0x162   : > { %2417 = vmatprep.subr.bf16.mxu0 %v5621_v44  ;;  %2581 = vmatprep.subr.bf16.mxu1 %v5622_v4  ;;  %v5631_v44 = vld [vmem:[%s6077_s23 + $0x280] ss:$16 sps:$4 sm:$0xff]   ;;  %v5632_v4 = vld [vmem:[%s6077_s23 + $0x288] ss:$16 sps:$4 sm:$0xff]  }
 0x165   : > { %2418 = vmatpush1.bf16.msra.mxu0 %v5623_v32  ;;  %2582 = vmatpush1.bf16.msra.mxu1 %v5624_v22  ;;  %v5633_v32 = vld [vmem:[%s6077_s23 + $0x2a4] ss:$16 sps:$4 sm:$0xff]   ;;  %v5634_v22 = vld [vmem:[%s6077_s23 + $0x2ac] ss:$16 sps:$4 sm:$0xff]  }
 0x166   : > { %2419 = vmatprep.subr.bf16.mxu0 %v5625_v6  ;;  %2583 = vmatprep.subr.bf16.mxu1 %v5626_v8  ;;  %v5635_v6 = vld [vmem:[%s6077_s23 + $0x2a0] ss:$16 sps:$4 sm:$0xff]   ;;  %v5636_v8 = vld [vmem:[%s6077_s23 + $0x2a8] ss:$16 sps:$4 sm:$0xff]  }
 0x169   : > { %2420 = vmatpush1.bf16.msra.mxu0 %v5627_v27  ;;  %2584 = vmatpush1.bf16.msra.mxu1 %v5628_v5  ;;  %v5637_v27 = vld [vmem:[%s6077_s23 + $0x2c4] ss:$16 sps:$4 sm:$0xff]   ;;  %v5638_v5 = vld [vmem:[%s6077_s23 + $0x2cc] ss:$16 sps:$4 sm:$0xff]  }
 0x16a   : > { %2421 = vmatprep.subr.bf16.mxu0 %v5629_v9  ;;  %2585 = vmatprep.subr.bf16.mxu1 %v5630_v7  ;;  %v5639_v9 = vld [vmem:[%s6077_s23 + $0x2c0] ss:$16 sps:$4 sm:$0xff]   ;;  %v5640_v7 = vld [vmem:[%s6077_s23 + $0x2c8] ss:$16 sps:$4 sm:$0xff]  }
 0x16d   : > { %2422 = vmatpush1.bf16.msra.mxu0 %v5631_v44  ;;  %2586 = vmatpush1.bf16.msra.mxu1 %v5632_v4  ;;  %v5641_v44 = vld [vmem:[%s6077_s23 + $0x2e4] ss:$16 sps:$4 sm:$0xff]   ;;  %v5642_v4 = vld [vmem:[%s6077_s23 + $0x2ec] ss:$16 sps:$4 sm:$0xff]  }
 0x16e   : > { %2423 = vmatprep.subr.bf16.mxu0 %v5633_v32  ;;  %2587 = vmatprep.subr.bf16.mxu1 %v5634_v22  ;;  %v5643_v32 = vld [vmem:[%s6077_s23 + $0x2e0] ss:$16 sps:$4 sm:$0xff]   ;;  %v5644_v22 = vld [vmem:[%s6077_s23 + $0x2e8] ss:$16 sps:$4 sm:$0xff]  }
 0x171   : > { %2424 = vmatpush1.bf16.msra.mxu0 %v5635_v6  ;;  %2588 = vmatpush1.bf16.msra.mxu1 %v5636_v8  ;;  %v5645_v6 = vld [vmem:[%s6077_s23 + $0x304] ss:$16 sps:$4 sm:$0xff]   ;;  %v5646_v8 = vld [vmem:[%s6077_s23 + $0x30c] ss:$16 sps:$4 sm:$0xff]  }
 0x172   : > { %2425 = vmatprep.subr.bf16.mxu0 %v5637_v27  ;;  %2589 = vmatprep.subr.bf16.mxu1 %v5638_v5  ;;  %v5647_v27 = vld [vmem:[%s6077_s23 + $0x300] ss:$16 sps:$4 sm:$0xff]   ;;  %v5648_v5 = vld [vmem:[%s6077_s23 + $0x308] ss:$16 sps:$4 sm:$0xff]  }
 0x175   : > { %2426 = vmatpush1.bf16.msra.mxu0 %v5639_v9  ;;  %2590 = vmatpush1.bf16.msra.mxu1 %v5640_v7  ;;  %v5649_v9 = vld [vmem:[%s6077_s23 + $0x324] ss:$16 sps:$4 sm:$0xff]   ;;  %v5650_v7 = vld [vmem:[%s6077_s23 + $0x32c] ss:$16 sps:$4 sm:$0xff]  }
 0x176   : > { %2427 = vmatprep.subr.bf16.mxu0 %v5641_v44  ;;  %2591 = vmatprep.subr.bf16.mxu1 %v5642_v4  ;;  %v5651_v44 = vld [vmem:[%s6077_s23 + $0x320] ss:$16 sps:$4 sm:$0xff]   ;;  %v5652_v4 = vld [vmem:[%s6077_s23 + $0x328] ss:$16 sps:$4 sm:$0xff]  }
 0x179   : > { %2428 = vmatpush1.bf16.msra.mxu0 %v5643_v32  ;;  %2592 = vmatpush1.bf16.msra.mxu1 %v5644_v22  ;;  %v5653_v32 = vld [vmem:[%s6077_s23 + $0x344] ss:$16 sps:$4 sm:$0xff]   ;;  %v5654_v22 = vld [vmem:[%s6077_s23 + $0x34c] ss:$16 sps:$4 sm:$0xff]  }
 0x17a   : > { %2429 = vmatprep.subr.bf16.mxu0 %v5645_v6  ;;  %2593 = vmatprep.subr.bf16.mxu1 %v5646_v8  ;;  %v5655_v6 = vld [vmem:[%s6077_s23 + $0x340] ss:$16 sps:$4 sm:$0xff]   ;;  %v5656_v8 = vld [vmem:[%s6077_s23 + $0x348] ss:$16 sps:$4 sm:$0xff]  }
 0x17d   : > { %2430 = vmatpush1.bf16.msra.mxu0 %v5647_v27  ;;  %2594 = vmatpush1.bf16.msra.mxu1 %v5648_v5  ;;  %v5657_v27 = vld [vmem:[%s6077_s23 + $0x364] ss:$16 sps:$4 sm:$0xff]   ;;  %v5658_v5 = vld [vmem:[%s6077_s23 + $0x36c] ss:$16 sps:$4 sm:$0xff]  }
 0x17e   : > { %2431 = vmatprep.subr.bf16.mxu0 %v5649_v9  ;;  %2595 = vmatprep.subr.bf16.mxu1 %v5650_v7  ;;  %v5659_v9 = vld [vmem:[%s6077_s23 + $0x360] ss:$16 sps:$4 sm:$0xff]   ;;  %v5660_v7 = vld [vmem:[%s6077_s23 + $0x368] ss:$16 sps:$4 sm:$0xff]  }
 0x181   : > { %2432 = vmatpush1.bf16.msra.mxu0 %v5651_v44  ;;  %2596 = vmatpush1.bf16.msra.mxu1 %v5652_v4  ;;  %v5661_v44 = vld [vmem:[%s6077_s23 + $0x384] ss:$16 sps:$4 sm:$0xff]   ;;  %v5662_v4 = vld [vmem:[%s6077_s23 + $0x38c] ss:$16 sps:$4 sm:$0xff]  }
 0x182   : > { %2433 = vmatprep.subr.bf16.mxu0 %v5653_v32  ;;  %2597 = vmatprep.subr.bf16.mxu1 %v5654_v22  ;;  %v5663_v32 = vld [vmem:[%s6077_s23 + $0x380] ss:$16 sps:$4 sm:$0xff]   ;;  %v5664_v22 = vld [vmem:[%s6077_s23 + $0x388] ss:$16 sps:$4 sm:$0xff]  }
 0x185   : > { %2434 = vmatpush1.bf16.msra.mxu0 %v5655_v6  ;;  %2598 = vmatpush1.bf16.msra.mxu1 %v5656_v8  ;;  %v5665_v6 = vld [vmem:[%s6077_s23 + $0x3a4] ss:$16 sps:$4 sm:$0xff]   ;;  %v5666_v8 = vld [vmem:[%s6077_s23 + $0x3ac] ss:$16 sps:$4 sm:$0xff]  }
 0x186   : > { %2435 = vmatprep.subr.bf16.mxu0 %v5657_v27  ;;  %2599 = vmatprep.subr.bf16.mxu1 %v5658_v5  ;;  %v6915_v27 = vld [vmem:[%s6072_s19 + $0x8] sm:$0xff]  ;;  %v5667_v5 = vld [vmem:[%s6077_s23 + $0x3a0] ss:$16 sps:$4 sm:$0xff]  }
 0x189   : > { %2436 = vmatpush1.bf16.msra.mxu0 %v5659_v9  ;;  %2600 = vmatpush1.bf16.msra.mxu1 %v5660_v7  ;;  %v5668_v9 = vld [vmem:[%s6077_s23 + $0x3a8] ss:$16 sps:$4 sm:$0xff]   ;;  %v6923_v7 = vrot.slane %v6915_v27, %v6127_v50 }
 0x18a   : > { %2437 = vmatprep.subr.bf16.mxu0 %v5661_v44  ;;  %2601 = vmatprep.subr.bf16.mxu1 %v5662_v4 }
 0x18b   : > { %v2354_v44 = vcombine.high %v6923_v7, %v6923_v7 }
 0x18d   : > { %2438 = vmatpush1.bf16.msra.mxu0 %v5663_v32  ;;  %2602 = vmatpush1.bf16.msra.mxu1 %v5664_v22 }
 0x18e   : > { %2439 = vmatprep.subr.bf16.mxu0 %v5665_v6  ;;  %2603 = vmatprep.subr.bf16.mxu1 %v5666_v8 }
 0x191   : > { %2440 = vmatpush1.bf16.msra.mxu0 %v5667_v5  ;;  %2604 = vmatpush1.bf16.msra.mxu1 %v5668_v9  ;;  %v8600_v5 = vld [vmem:[#allocation54_spill] sm:$0xff]  ;;  %v8601_v9 = vld [vmem:[#allocation55_spill] sm:$0xff] }
 0x192   : > { %2441 = vmatprep.subr.bf16.mxu0 %v6213_v11  ;;  %2605 = vmatprep.subr.bf16.mxu1 %v6216_v12  ;;  %v2366_v11 = vpack.c.bf16 %v6848_v24, %v6848_v24  ;;  %v2369_v12 = vpack.c.bf16 %v2354_v44, %v2354_v44 }
 0x195   : > { %2442 = vmatpush1.bf16.msra.mxu0 %v6219_v13  ;;  %2606 = vmatpush1.bf16.msra.mxu1 %v6222_v14  ;;  %v8557_v13 = vld [vmem:[#allocation11_spill] sm:$0xff]  ;;  %v8558_v14 = vld [vmem:[#allocation12_spill] sm:$0xff] }
 0x196   : > { %2443 = vmatprep.subr.bf16.mxu0 %v6227_v15  ;;  %2607 = vmatprep.subr.bf16.mxu1 %v6230_v16  ;;  %v8559_v15 = vld [vmem:[#allocation13_spill] sm:$0xff]  ;;  %v8560_v16 = vld [vmem:[#allocation14_spill] sm:$0xff] }
 0x199   : > { %2444 = vmatpush1.bf16.msra.mxu0 %v6233_v17  ;;  %2608 = vmatpush1.bf16.msra.mxu1 %v6238_v18  ;;  %v8561_v17 = vld [vmem:[#allocation15_spill] sm:$0xff]  ;;  %v8562_v18 = vld [vmem:[#allocation16_spill] sm:$0xff] }
 0x19a   : > { %2454 = vmatprep.subr.bf16.mxu0 %v6243_v19  ;;  %2618 = vmatprep.subr.bf16.mxu1 %v6246_v20  ;;  %v8563_v19 = vld [vmem:[#allocation17_spill] sm:$0xff]  ;;  %v8564_v20 = vld [vmem:[#allocation18_spill] sm:$0xff] }
 0x19c   : > { %2446 = vmatmul.mubr.bf16.vlgmr.msra.gmra.mrb[4].mxu0 %v2366_v11  ;;  %2610 = vmatmul.mubr.bf16.vlgmr.msra.gmra.mrb[4].mxu1 %v2366_v11  ;;  %v8602_v11 = vld [vmem:[#allocation56_spill] sm:$0xff] }
 0x19d   : > { %2455 = vmatpush1.bf16.msra.mxu0 %v6249_v21  ;;  %2619 = vmatpush1.bf16.msra.mxu1 %v6256_v23  ;;  %v8565_v21 = vld [vmem:[#allocation19_spill] sm:$0xff]  ;;  %v8566_v23 = vld [vmem:[#allocation20_spill] sm:$0xff] }
 0x19e   : > { %2456 = vmatprep.subr.bf16.mxu0 %v6264_v25  ;;  %2620 = vmatprep.subr.bf16.mxu1 %v6267_v26  ;;  %v8567_v25 = vld [vmem:[#allocation21_spill] sm:$0xff]  ;;  %v2339_v26 = vcombine.high %v6915_v27, %v6915_v27 }
 0x19f   : > { %2486 = vmatprep.mubr.bf16.mxu0 %v2369_v12  ;;  %2650 = vmatprep.mubr.bf16.mxu1 %v2369_v12  ;;  %v8603_v12 = vld [vmem:[#allocation57_spill] sm:$0xff] }
 0x1a1   : > { %2457 = vmatpush1.bf16.msra.mxu0 %v6278_v28  ;;  %2621 = vmatpush1.bf16.msra.mxu1 %v6281_v29  ;;  %v8568_v28 = vld [vmem:[#allocation22_spill] sm:$0xff]  ;;  %v8569_v29 = vld [vmem:[#allocation23_spill] sm:$0xff] }
 0x1a2   : > { %2458 = vmatprep.subr.bf16.mxu0 %v6286_v30  ;;  %2622 = vmatprep.subr.bf16.mxu1 %v6289_v31  ;;  %v8570_v30 = vld [vmem:[#allocation24_spill] sm:$0xff]  ;;  %v8571_v31 = vld [vmem:[#allocation25_spill] sm:$0xff] }
 0x1a5   : > { %2459 = vmatpush1.bf16.msra.mxu0 %v6294_v33  ;;  %2623 = vmatpush1.bf16.msra.mxu1 %v6297_v34  ;;  %v6996_v33 = vrot.slane %v2339_v26, %v6127_v50  ;;  %v8572_v34 = vld [vmem:[#allocation26_spill] sm:$0xff]  ;;  %v8610_v26 = vld [vmem:[#allocation64_spill] sm:$0xff] }
 0x1a6   : > { %2460 = vmatprep.subr.bf16.mxu0 %v6302_v35  ;;  %2624 = vmatprep.subr.bf16.mxu1 %v6305_v36  ;;  %v8573_v35 = vld [vmem:[#allocation27_spill] sm:$0xff]  ;;  %v8574_v36 = vld [vmem:[#allocation28_spill] sm:$0xff] }
 0x1a9   : > { %2461 = vmatpush1.bf16.msra.mxu0 %v6310_v37  ;;  %2625 = vmatpush1.bf16.msra.mxu1 %v6313_v38  ;;  %v8575_v37 = vld [vmem:[#allocation29_spill] sm:$0xff]  ;;  %v2355_v38 = vcombine.high %v6996_v33, %v6996_v33 }
 0x1aa   : > { %2462 = vmatprep.subr.bf16.mxu0 %v6318_v39  ;;  %2626 = vmatprep.subr.bf16.mxu1 %v6321_v40  ;;  %v2368_v39 = vpack.c.bf16 %v6923_v7, %v6923_v7  ;;  %v8576_v40 = vld [vmem:[#allocation30_spill] sm:$0xff] }
 0x1ad   : > { %2463 = vmatpush1.bf16.msra.mxu0 %v6326_v41  ;;  %2627 = vmatpush1.bf16.msra.mxu1 %v6329_v42  ;;  %v8577_v41 = vld [vmem:[#allocation31_spill] sm:$0xff]  ;;  %v8578_v42 = vld [vmem:[#allocation32_spill] sm:$0xff] }
 0x1ae   : > { %2464 = vmatprep.subr.bf16.mxu0 %v6334_v43  ;;  %2628 = vmatprep.subr.bf16.mxu1 %v6337_v45  ;;  %v8579_v43 = vld [vmem:[#allocation33_spill] sm:$0xff]  ;;  %v2371_v45 = vpack.c.bf16 %v2355_v38, %v2355_v38 }
 0x1af   : > { %v8619_v38 = vld [vmem:[#allocation73_spill] sm:$0xff] }
 0x1b1   : > { %2465 = vmatpush1.bf16.msra.mxu0 %v6342_v46  ;;  %2629 = vmatpush1.bf16.msra.mxu1 %v6345_v47  ;;  %v8580_v46 = vld [vmem:[#allocation34_spill] sm:$0xff]  ;;  %v8581_v47 = vld [vmem:[#allocation35_spill] sm:$0xff] }
 0x1b2   : > { %2466 = vmatprep.subr.bf16.mxu0 %v6350_v48  ;;  %2630 = vmatprep.subr.bf16.mxu1 %v6353_v49  ;;  %v8582_v48 = vld [vmem:[#allocation36_spill] sm:$0xff]  ;;  %v8583_v49 = vld [vmem:[#allocation37_spill] sm:$0xff] }
 0x1b5   : > { %2467 = vmatpush1.bf16.msra.mxu0 %v6358_v51  ;;  %2631 = vmatpush1.bf16.msra.mxu1 %v6361_v52  ;;  %v8584_v51 = vld [vmem:[#allocation38_spill] sm:$0xff]  ;;  %v8585_v52 = vld [vmem:[#allocation39_spill] sm:$0xff] }
 0x1b6   : > { %2468 = vmatprep.subr.bf16.mxu0 %v6366_v53  ;;  %2632 = vmatprep.subr.bf16.mxu1 %v6369_v54  ;;  %v8586_v53 = vld [vmem:[#allocation40_spill] sm:$0xff]  ;;  %v8587_v54 = vld [vmem:[#allocation41_spill] sm:$0xff] }
 0x1b9   : > { %2469 = vmatpush1.bf16.msra.mxu0 %v6374_v55  ;;  %2633 = vmatpush1.bf16.msra.mxu1 %v6377_v56  ;;  %v8588_v55 = vld [vmem:[#allocation42_spill] sm:$0xff]  ;;  %v8589_v56 = vld [vmem:[#allocation43_spill] sm:$0xff] }
 0x1ba   : > { %2470 = vmatprep.subr.bf16.mxu0 %v6382_v57  ;;  %2634 = vmatprep.subr.bf16.mxu1 %v6385_v58  ;;  %v8590_v57 = vld [vmem:[#allocation44_spill] sm:$0xff]  ;;  %v8591_v58 = vld [vmem:[#allocation45_spill] sm:$0xff] }
 0x1bd   : > { %2471 = vmatpush1.bf16.msra.mxu0 %v6390_v59  ;;  %2635 = vmatpush1.bf16.msra.mxu1 %v6393_v60  ;;  %v8592_v59 = vld [vmem:[#allocation46_spill] sm:$0xff]  ;;  %v8593_v60 = vld [vmem:[#allocation47_spill] sm:$0xff] }
 0x1be   : > { %2472 = vmatprep.subr.bf16.mxu0 %v6398_v61  ;;  %2636 = vmatprep.subr.bf16.mxu1 %v6401_v62  ;;  %v8594_v61 = vld [vmem:[#allocation48_spill] sm:$0xff]  ;;  %v8595_v62 = vld [vmem:[#allocation49_spill] sm:$0xff] }
 0x1c1   : > { %2473 = vmatpush1.bf16.msra.mxu0 %v6406_v63  ;;  %2637 = vmatpush1.bf16.msra.mxu1 %v6409_v0  ;;  %v8596_v63 = vld [vmem:[#allocation50_spill] sm:$0xff]  ;;  %v8597_v0 = vld [vmem:[#allocation51_spill] sm:$0xff] }
 0x1c2   : > { %2474 = vmatprep.subr.bf16.mxu0 %v6414_v1  ;;  %2638 = vmatprep.subr.bf16.mxu1 %v6417_v2  ;;  %v8598_v1 = vld [vmem:[#allocation52_spill] sm:$0xff]  ;;  %v8599_v2 = vld [vmem:[#allocation53_spill] sm:$0xff] }
 0x1c5   : > { %2475 = vmatpush1.bf16.msra.mxu0 %v6422_v3  ;;  %2639 = vmatpush1.bf16.msra.mxu1 %v8557_v13 }
 0x1c6   : > { %2476 = vmatprep.subr.bf16.mxu0 %v8558_v14  ;;  %2640 = vmatprep.subr.bf16.mxu1 %v8559_v15  ;;  %v630_v15 = vld [vmem:[#allocation2] sm:$0xff] }
 0x1c9   : > { %2477 = vmatpush1.bf16.msra.mxu0 %v8560_v16  ;;  %2641 = vmatpush1.bf16.msra.mxu1 %v8561_v17  ;;  %v8604_v17 = vld [vmem:[#allocation58_spill] sm:$0xff] }
 0x1ca   : > { %2478 = vmatprep.subr.bf16.mxu0 %v8562_v18  ;;  %2642 = vmatprep.subr.bf16.mxu1 %v8563_v19  ;;  %v8605_v18 = vld [vmem:[#allocation59_spill] sm:$0xff]  ;;  %v8606_v19 = vld [vmem:[#allocation60_spill] sm:$0xff] }
 0x1cd   : > { %2479 = vmatpush1.bf16.msra.mxu0 %v8564_v20  ;;  %2643 = vmatpush1.bf16.msra.mxu1 %v8565_v21  ;;  %v8607_v20 = vld [vmem:[#allocation61_spill] sm:$0xff] }
 0x1ce   : > { %2480 = vmatprep.subr.bf16.mxu0 %v8566_v23  ;;  %2644 = vmatprep.subr.bf16.mxu1 %v8567_v25  ;;  %v8608_v23 = vld [vmem:[#allocation62_spill] sm:$0xff]  ;;  %v8609_v25 = vld [vmem:[#allocation63_spill] sm:$0xff] }
 0x1d1   : > { %2481 = vmatpush1.bf16.msra.mxu0 %v8568_v28  ;;  %2645 = vmatpush1.bf16.msra.mxu1 %v8569_v29  ;;  %v8611_v28 = vld [vmem:[#allocation65_spill] sm:$0xff]  ;;  %v8612_v29 = vld [vmem:[#allocation66_spill] sm:$0xff] }
 0x1d2   : > { %2482 = vmatprep.subr.bf16.mxu0 %v8570_v30  ;;  %2646 = vmatprep.subr.bf16.mxu1 %v8571_v31  ;;  %v8613_v30 = vld [vmem:[#allocation67_spill] sm:$0xff]  ;;  %v8614_v31 = vld [vmem:[#allocation68_spill] sm:$0xff] }
 0x1d5   : > { %2483 = vmatpush1.bf16.msra.mxu0 %v8572_v34  ;;  %2647 = vmatpush1.bf16.msra.mxu1 %v8573_v35  ;;  %v8615_v34 = vld [vmem:[#allocation69_spill] sm:$0xff]  ;;  %v8616_v35 = vld [vmem:[#allocation70_spill] sm:$0xff] }
 0x1d6   : > { %2484 = vmatprep.subr.bf16.mxu0 %v8574_v36  ;;  %2648 = vmatprep.subr.bf16.mxu1 %v8575_v37  ;;  %v8617_v36 = vld [vmem:[#allocation71_spill] sm:$0xff]  ;;  %v8618_v37 = vld [vmem:[#allocation72_spill] sm:$0xff] }
 0x1d9   : > { %2485 = vmatpush1.bf16.msra.mxu0 %v8576_v40  ;;  %2649 = vmatpush1.bf16.msra.mxu1 %v8577_v41  ;;  %v8621_v40 = vld [vmem:[#allocation75_spill] sm:$0xff]  ;;  %v8622_v41 = vld [vmem:[#allocation76_spill] sm:$0xff] }
 0x1da   : > { %2495 = vmatprep.subr.bf16.mxu0 %v8578_v42  ;;  %2659 = vmatprep.subr.bf16.mxu1 %v8579_v43  ;;  %v8623_v42 = vld [vmem:[#allocation77_spill] sm:$0xff]  ;;  %v8624_v43 = vld [vmem:[#allocation78_spill] sm:$0xff] }
 0x1dc   : > { %2487 = vmatmul.mubr.bf16.vlgmr.msra.gmra.mrb[4].mxu0 %v2368_v39  ;;  %2651 = vmatmul.mubr.bf16.vlgmr.msra.gmra.mrb[4].mxu1 %v2368_v39  ;;  %v8620_v39 = vld [vmem:[#allocation74_spill] sm:$0xff] }
 0x1dd   : > { %2496 = vmatpush1.bf16.msra.mxu0 %v8580_v46  ;;  %2660 = vmatpush1.bf16.msra.mxu1 %v8581_v47  ;;  %v8626_v46 = vld [vmem:[#allocation80_spill] sm:$0xff]  ;;  %v8627_v47 = vld [vmem:[#allocation81_spill] sm:$0xff] }
 0x1de   : > { %2497 = vmatprep.subr.bf16.mxu0 %v8582_v48  ;;  %2661 = vmatprep.subr.bf16.mxu1 %v8583_v49  ;;  %v8628_v48 = vld [vmem:[#allocation82_spill] sm:$0xff]  ;;  %v8629_v49 = vld [vmem:[#allocation83_spill] sm:$0xff] }
 0x1df   : > { %2527 = vmatprep.mubr.bf16.mxu0 %v2371_v45  ;;  %2691 = vmatprep.mubr.bf16.mxu1 %v2371_v45  ;;  %v8625_v45 = vld [vmem:[#allocation79_spill] sm:$0xff] }
 0x1e1   : > { %2498 = vmatpush1.bf16.msra.mxu0 %v8584_v51  ;;  %2662 = vmatpush1.bf16.msra.mxu1 %v8585_v52  ;;  %v8630_v51 = vld [vmem:[#allocation84_spill] sm:$0xff]  ;;  %v8631_v52 = vld [vmem:[#allocation85_spill] sm:$0xff] }
 0x1e2   : > { %2499 = vmatprep.subr.bf16.mxu0 %v8586_v53  ;;  %2663 = vmatprep.subr.bf16.mxu1 %v8587_v54  ;;  %v8632_v53 = vld [vmem:[#allocation86_spill] sm:$0xff]  ;;  %v8633_v54 = vld [vmem:[#allocation87_spill] sm:$0xff] }
 0x1e5   : > { %2500 = vmatpush1.bf16.msra.mxu0 %v8588_v55  ;;  %2664 = vmatpush1.bf16.msra.mxu1 %v8589_v56  ;;  %v8634_v55 = vld [vmem:[#allocation88_spill] sm:$0xff]  ;;  %v8635_v56 = vld [vmem:[#allocation89_spill] sm:$0xff] }
 0x1e6   : > { %2501 = vmatprep.subr.bf16.mxu0 %v8590_v57  ;;  %2665 = vmatprep.subr.bf16.mxu1 %v8591_v58  ;;  %v8636_v57 = vld [vmem:[#allocation90_spill] sm:$0xff]  ;;  %v8637_v58 = vld [vmem:[#allocation91_spill] sm:$0xff] }
 0x1e9   : > { %2502 = vmatpush1.bf16.msra.mxu0 %v8592_v59  ;;  %2666 = vmatpush1.bf16.msra.mxu1 %v8593_v60  ;;  %v8638_v59 = vld [vmem:[#allocation92_spill] sm:$0xff]  ;;  %v8639_v60 = vld [vmem:[#allocation93_spill] sm:$0xff] }
 0x1ea   : > { %2503 = vmatprep.subr.bf16.mxu0 %v8594_v61  ;;  %2667 = vmatprep.subr.bf16.mxu1 %v8595_v62  ;;  %v2370_v61 = vpack.c.bf16 %v6996_v33, %v6996_v33  ;;  %v8640_v62 = vld [vmem:[#allocation94_spill] sm:$0xff] }
 0x1ed   : > { %2504 = vmatpush1.bf16.msra.mxu0 %v8596_v63  ;;  %2668 = vmatpush1.bf16.msra.mxu1 %v8597_v0 }
 0x1ee   : > { %2505 = vmatprep.subr.bf16.mxu0 %v8598_v1  ;;  %2669 = vmatprep.subr.bf16.mxu1 %v8599_v2 }
 0x1ef   : > { %v2122_v3 = vpop.f32.mrb[0].mxu0  ;;  %v2286_v24 = vpop.f32.mrb[0].mxu1 }
 0x1f0   : > { %v2124_v4 = vpop.f32.mrb[1].mxu0  ;;  %v2288_v32 = vpop.f32.mrb[1].mxu1 }
 0x1f1   : > { %v2297_v22 = vcombine.low %v2122_v3, %v2124_v4  ;;  %v2298_v6 = vcombine.low %v2286_v24, %v2288_v32  ;;  %v2126_v8 = vpop.f32.mrb[2].mxu0  ;;  %v2290_v27 = vpop.f32.mrb[2].mxu1  ;;  %2506 = vmatpush1.bf16.msra.mxu0 %v8600_v5  ;;  %2670 = vmatpush1.bf16.msra.mxu1 %v8601_v9 }
 0x1f2   : > { %v2127_v7 = vpop.f32.mrb[3].mxu0  ;;  %v2291_v44 = vpop.f32.mrb[3].mxu1  ;;  %2507 = vmatprep.subr.bf16.mxu0 %v8602_v11  ;;  %2671 = vmatprep.subr.bf16.mxu1 %v8603_v12  ;;  %v2317_v27 = vld [vmem:[#allocation3] sm:$0xff] }
 0x1f3   : > { %v2305_v13 = vrot.slane %v2297_v22, %v6127_v50  ;;  %v2312_v14 = vrot.slane %v2298_v6, %v6127_v50 }
 0x1f5   : > { %v2313_v16 = vcombine.low %v2305_v13, %v2312_v14  ;;  %2508 = vmatpush1.bf16.msra.mxu0 %v8604_v17  ;;  %2672 = vmatpush1.bf16.msra.mxu1 %v8605_v18 }
 0x1f6   : > { %2509 = vmatprep.subr.bf16.mxu0 %v8606_v19  ;;  %2673 = vmatprep.subr.bf16.mxu1 %v8607_v20 }
 0x1f7   : > { %v2315_v21 = vadd.f32 %v2313_v16, %v630_v15 }
 0x1f9   : > { %2316 = vst [vmem:[#allocation2] sm:$0xff] %v2315_v21  ;;  %2510 = vmatpush1.bf16.msra.mxu0 %v8608_v23  ;;  %2674 = vmatpush1.bf16.msra.mxu1 %v8609_v25 }
 0x1fa   : > { %2511 = vmatprep.subr.bf16.mxu0 %v8610_v26  ;;  %2675 = vmatprep.subr.bf16.mxu1 %v8611_v28 }
 0x1fd   : > { %2512 = vmatpush1.bf16.msra.mxu0 %v8612_v29  ;;  %2676 = vmatpush1.bf16.msra.mxu1 %v8613_v30 }
 0x1fe   : > { %2513 = vmatprep.subr.bf16.mxu0 %v8614_v31  ;;  %2677 = vmatprep.subr.bf16.mxu1 %v8615_v34 }
 0x201   : > { %2514 = vmatpush1.bf16.msra.mxu0 %v8616_v35  ;;  %2678 = vmatpush1.bf16.msra.mxu1 %v8617_v36 }
 0x202   : > { %2515 = vmatprep.subr.bf16.mxu0 %v8618_v37  ;;  %2679 = vmatprep.subr.bf16.mxu1 %v8619_v38 }
 0x205   : > { %2516 = vmatpush1.bf16.msra.mxu0 %v8620_v39  ;;  %2680 = vmatpush1.bf16.msra.mxu1 %v8621_v40 }
 0x206   : > { %2517 = vmatprep.subr.bf16.mxu0 %v8622_v41  ;;  %2681 = vmatprep.subr.bf16.mxu1 %v8623_v42 }
 0x209   : > { %2518 = vmatpush1.bf16.msra.mxu0 %v8624_v43  ;;  %2682 = vmatpush1.bf16.msra.mxu1 %v8625_v45 }
 0x20a   : > { %2519 = vmatprep.subr.bf16.mxu0 %v8626_v46  ;;  %2683 = vmatprep.subr.bf16.mxu1 %v8627_v47 }
 0x20d   : > { %2520 = vmatpush1.bf16.msra.mxu0 %v8628_v48  ;;  %2684 = vmatpush1.bf16.msra.mxu1 %v8629_v49 }
 0x20e   : > { %2521 = vmatprep.subr.bf16.mxu0 %v8630_v51  ;;  %2685 = vmatprep.subr.bf16.mxu1 %v8631_v52 }
 0x211   : > { %2522 = vmatpush1.bf16.msra.mxu0 %v8632_v53  ;;  %2686 = vmatpush1.bf16.msra.mxu1 %v8633_v54 }
 0x212   : > { %2523 = vmatprep.subr.bf16.mxu0 %v8634_v55  ;;  %2687 = vmatprep.subr.bf16.mxu1 %v8635_v56 }
 0x215   : > { %2524 = vmatpush1.bf16.msra.mxu0 %v8636_v57  ;;  %2688 = vmatpush1.bf16.msra.mxu1 %v8637_v58 }
 0x216   : > { %2525 = vmatprep.subr.bf16.mxu0 %v8638_v59  ;;  %2689 = vmatprep.subr.bf16.mxu1 %v8639_v60 }
 0x219   : > { %2526 = vmatpush1.bf16.msra.mxu0 %v6774_v10  ;;  %2690 = vmatpush1.bf16.msra.mxu1 %v8640_v62 }
 0x21c   : > { %2528 = vmatmul.mubr.bf16.vlgmr.msra.gmra.mrb[4].mxu0 %v2370_v61  ;;  %2692 = vmatmul.mubr.bf16.vlgmr.msra.gmra.mrb[4].mxu1 %v2370_v61 }
 0x2ef   : > { %v2529_v63 = vpop.f32.mrb[4].mxu0  ;;  %v2693_v0 = vpop.f32.mrb[4].mxu1 }
 0x2f0   : > { %v2531_v1 = vpop.f32.mrb[5].mxu0  ;;  %v2695_v2 = vpop.f32.mrb[5].mxu1 }
 0x2f1   : > { %v2704_v3 = vcombine.low %v2529_v63, %v2531_v1  ;;  %v2705_v24 = vcombine.low %v2693_v0, %v2695_v2  ;;  %v2533_v4 = vpop.f32.mrb[6].mxu0  ;;  %v2697_v32 = vpop.f32.mrb[6].mxu1 }
 0x2f2   : > { %v2534_v22 = vpop.f32.mrb[7].mxu0  ;;  %v2698_v6 = vpop.f32.mrb[7].mxu1 }
 0x2f3   : > { %v2712_v8 = vrot.slane %v2704_v3, %v6127_v50  ;;  %v2719_v33 = vrot.slane %v2705_v24, %v6127_v50  ;;  %2727 = sbr.rel (%p4807_p6) target bundleno = 1679 (0x68f), region = 60 }
 0x2f5   : > { %v2720_v10 = vcombine.low %v2712_v8, %v2719_v33 }
 0x2f7   : > { %v2722_v5 = vadd.f32 %v2720_v10, %v2317_v27 }
 0x2f9   : > { %2723 = vst [vmem:[#allocation3] sm:$0xff] %v2722_v5 }
 0x2fa   : > { %v5669_v9 = vld [vmem:[%s8290_s4 + $0x4] ss:$16 sps:$4 sm:$0xff]   ;;  %v5671_v7 = vld [vmem:[%s8290_s4 + $0xc] ss:$16 sps:$4 sm:$0xff]   ;;  %v5673_v44 = vld [vmem:[%s8290_s4] ss:$16 sps:$4 sm:$0xff]  }
 0x2fb   : > { %3647 = vmatprep.subr.bf16.mxu0 %v5669_v9  ;;  %v5674_v11 = vld [vmem:[%s8290_s4 + $0x8] ss:$16 sps:$4 sm:$0xff]   ;;  %3729 = vmatprep.subr.bf16.mxu1 %v5671_v7  ;;  %v5675_v12 = vld [vmem:[%s8290_s4 + $0x24] ss:$16 sps:$4 sm:$0xff]   ;;  %v5677_v13 = vld [vmem:[%s8290_s4 + $0x2c] ss:$16 sps:$4 sm:$0xff]  }
 0x2fc   : > { %3648 = vmatpush1.bf16.msra.mxu0 %v5673_v44  ;;  %3730 = vmatpush1.bf16.msra.mxu1 %v5674_v11  ;;  %v5679_v14 = vld [vmem:[%s8290_s4 + $0x20] ss:$16 sps:$4 sm:$0xff]   ;;  %v5680_v15 = vld [vmem:[%s8290_s4 + $0x28] ss:$16 sps:$4 sm:$0xff]   ;;  %v5681_v16 = vld [vmem:[%s8290_s4 + $0x44] ss:$16 sps:$4 sm:$0xff]  }
 0x2fd   : > { %3649 = vmatprep.subr.bf16.mxu0 %v5675_v12  ;;  %3731 = vmatprep.subr.bf16.mxu1 %v5677_v13  ;;  %v5683_v17 = vld [vmem:[%s8290_s4 + $0x4c] ss:$16 sps:$4 sm:$0xff]   ;;  %v5685_v18 = vld [vmem:[%s8290_s4 + $0x40] ss:$16 sps:$4 sm:$0xff]   ;;  %v5686_v19 = vld [vmem:[%s8290_s4 + $0x48] ss:$16 sps:$4 sm:$0xff]  }
 0x2fe   : > { %v5687_v20 = vld [vmem:[%s8290_s4 + $0x64] ss:$16 sps:$4 sm:$0xff]   ;;  %v5689_v21 = vld [vmem:[%s8290_s4 + $0x6c] ss:$16 sps:$4 sm:$0xff]   ;;  %v5691_v23 = vld [vmem:[%s8290_s4 + $0x60] ss:$16 sps:$4 sm:$0xff]  }
 0x2ff   : > { %v5692_v25 = vld [vmem:[%s8290_s4 + $0x68] ss:$16 sps:$4 sm:$0xff]   ;;  %v5693_v26 = vld [vmem:[%s8290_s4 + $0x84] ss:$16 sps:$4 sm:$0xff]   ;;  %v5695_v28 = vld [vmem:[%s8290_s4 + $0x8c] ss:$16 sps:$4 sm:$0xff]  }
 0x300   : > { %3650 = vmatpush1.bf16.msra.mxu0 %v5679_v14  ;;  %3732 = vmatpush1.bf16.msra.mxu1 %v5680_v15  ;;  %v5697_v29 = vld [vmem:[%s8290_s4 + $0x80] ss:$16 sps:$4 sm:$0xff]   ;;  %v5698_v30 = vld [vmem:[%s8290_s4 + $0x88] ss:$16 sps:$4 sm:$0xff]   ;;  %v5699_v31 = vld [vmem:[%s8290_s4 + $0xa4] ss:$16 sps:$4 sm:$0xff]  }
 0x301   : > { %3651 = vmatprep.subr.bf16.mxu0 %v5681_v16  ;;  %3733 = vmatprep.subr.bf16.mxu1 %v5683_v17  ;;  %v5701_v34 = vld [vmem:[%s8290_s4 + $0xac] ss:$16 sps:$4 sm:$0xff]   ;;  %v5703_v35 = vld [vmem:[%s8290_s4 + $0xa0] ss:$16 sps:$4 sm:$0xff]   ;;  %v5704_v36 = vld [vmem:[%s8290_s4 + $0xa8] ss:$16 sps:$4 sm:$0xff]  }
 0x302   : > { %v5705_v37 = vld [vmem:[%s8290_s4 + $0xc4] ss:$16 sps:$4 sm:$0xff]   ;;  %v5707_v38 = vld [vmem:[%s8290_s4 + $0xcc] ss:$16 sps:$4 sm:$0xff]   ;;  %v5709_v39 = vld [vmem:[%s8290_s4 + $0xc0] ss:$16 sps:$4 sm:$0xff]  }
 0x303   : > { %v5710_v40 = vld [vmem:[%s8290_s4 + $0xc8] ss:$16 sps:$4 sm:$0xff]   ;;  %v5711_v41 = vld [vmem:[%s8290_s4 + $0xe4] ss:$16 sps:$4 sm:$0xff]   ;;  %v5713_v42 = vld [vmem:[%s8290_s4 + $0xec] ss:$16 sps:$4 sm:$0xff]  }
 0x304   : > { %3652 = vmatpush1.bf16.msra.mxu0 %v5685_v18  ;;  %3734 = vmatpush1.bf16.msra.mxu1 %v5686_v19  ;;  %v5715_v43 = vld [vmem:[%s8290_s4 + $0xe0] ss:$16 sps:$4 sm:$0xff]   ;;  %v5716_v45 = vld [vmem:[%s8290_s4 + $0xe8] ss:$16 sps:$4 sm:$0xff]   ;;  %v5717_v46 = vld [vmem:[%s8290_s4 + $0x104] ss:$16 sps:$4 sm:$0xff]  }
 0x305   : > { %3653 = vmatprep.subr.bf16.mxu0 %v5687_v20  ;;  %3735 = vmatprep.subr.bf16.mxu1 %v5689_v21  ;;  %v5719_v47 = vld [vmem:[%s8290_s4 + $0x10c] ss:$16 sps:$4 sm:$0xff]   ;;  %v5721_v48 = vld [vmem:[%s8290_s4 + $0x100] ss:$16 sps:$4 sm:$0xff]   ;;  %v5722_v49 = vld [vmem:[%s8290_s4 + $0x108] ss:$16 sps:$4 sm:$0xff]  }
 0x306   : > { %v5723_v51 = vld [vmem:[%s8290_s4 + $0x124] ss:$16 sps:$4 sm:$0xff]   ;;  %v7193_v52 = vld [vmem:[%s8290_s4 + $0x12c] ss:$16 sps:$4 sm:$0xff]   ;;  %v7198_v53 = vld [vmem:[%s8290_s4 + $0x120] ss:$16 sps:$4 sm:$0xff]  }
 0x307   : > { %v7203_v54 = vld [vmem:[%s8290_s4 + $0x128] ss:$16 sps:$4 sm:$0xff]   ;;  %v7208_v55 = vld [vmem:[%s8290_s4 + $0x144] ss:$16 sps:$4 sm:$0xff]   ;;  %v7214_v56 = vld [vmem:[%s8290_s4 + $0x14c] ss:$16 sps:$4 sm:$0xff]  }
 0x308   : > { %3654 = vmatpush1.bf16.msra.mxu0 %v5691_v23  ;;  %3736 = vmatpush1.bf16.msra.mxu1 %v5692_v25  ;;  %v7219_v57 = vld [vmem:[%s8290_s4 + $0x140] ss:$16 sps:$4 sm:$0xff]   ;;  %v7224_v58 = vld [vmem:[%s8290_s4 + $0x148] ss:$16 sps:$4 sm:$0xff]   ;;  %v7234_v61 = vld [vmem:[%s8290_s4 + $0x164] ss:$16 sps:$4 sm:$0xff]  }
 0x309   : > { %3655 = vmatprep.subr.bf16.mxu0 %v5693_v26  ;;  %3737 = vmatprep.subr.bf16.mxu1 %v5695_v28  ;;  %v8641_v59 = vld [vmem:[#allocation10_spill] sm:$0xff]  ;;  %v7247_v0 = vld [vmem:[%s8290_s4 + $0x16c] ss:$16 sps:$4 sm:$0xff]   ;;  %v2921_v2 = vld [vmem:[%s8289_s3] sm:$0xf]  ;;  %vm4098_vm0 = vcmask 33792  }
 0x30a   : > { %v7227_v60 = vsub.s32 0, %v8641_v59  ;;  %v7237_v62 = vsub.s32 1, %v8641_v59  ;;  %v7240_v63 = vsub.s32 2, %v8641_v59  ;;  %v7250_v1 = vsub.s32 3, %v8641_v59  ;;  %v7260_v3 = vld [vmem:[%s8290_s4 + $0x160] ss:$16 sps:$4 sm:$0xff]  }
 0x30b   : > { %v7265_v24 = vld [vmem:[%s8290_s4 + $0x168] ss:$16 sps:$4 sm:$0xff]   ;;  %v7275_v6 = vld [vmem:[%s8290_s4 + $0x184] ss:$16 sps:$4 sm:$0xff]   ;;  %v7280_v8 = vld [vmem:[%s8290_s4 + $0x18c] ss:$16 sps:$4 sm:$0xff]  }
 0x30c   : > { %3656 = vmatpush1.bf16.msra.mxu0 %v5697_v29  ;;  %3738 = vmatpush1.bf16.msra.mxu1 %v5698_v30  ;;  %8642 = vst [vmem:[#allocation95_spill] sm:$0xff] %v7227_v60  ;;  %8643 = vst [vmem:[#allocation96_spill] sm:$0xff] %v7237_v62  ;;  %v2926_v4 = vrot.slane %v2921_v2, %v7227_v60  ;;  %v2930_v32 = vrot.slane %v2921_v2, %v7237_v62  ;;  %v7288_v5 = vld [vmem:[%s8290_s4 + $0x180] ss:$16 sps:$4 sm:$0xff]   ;;  %v7293_v9 = vld [vmem:[%s8290_s4 + $0x188] ss:$16 sps:$4 sm:$0xff]  }
 0x30d   : > { %3657 = vmatprep.subr.bf16.mxu0 %v5699_v31  ;;  %3739 = vmatprep.subr.bf16.mxu1 %v5701_v34  ;;  %8644 = vst [vmem:[#allocation97_spill] sm:$0xff] %v7240_v63  ;;  %8645 = vst [vmem:[#allocation98_spill] sm:$0xff] %v7250_v1  ;;  %v2934_v22 = vrot.slane %v2921_v2, %v7240_v63  ;;  %v2938_v33 = vrot.slane %v2921_v2, %v7250_v1  ;;  %v7301_v44 = vld [vmem:[%s8290_s4 + $0x1a4] ss:$16 sps:$4 sm:$0xff]   ;;  %v7306_v11 = vld [vmem:[%s8290_s4 + $0x1ac] ss:$16 sps:$4 sm:$0xff]  }
 0x30e   : > { %v2939_v27 = vcombine.low %v2926_v4, %v2930_v32  ;;  %v2920_v13 = vld [vmem:[#allocation2] sm:$0xff]  ;;  %v7319_v16 = vld [vmem:[%s8290_s4 + $0x1a8] ss:$16 sps:$4 sm:$0xff]   ;;  %v7331_v18 = vld [vmem:[%s8290_s4 + $0x1cc] ss:$16 sps:$4 sm:$0xff]  }
 0x30f   : > { %v2940_v10 = vcombine.low %v2934_v22, %v2938_v33  ;;  %v7314_v15 = vld [vmem:[%s8290_s4 + $0x1a0] ss:$16 sps:$4 sm:$0xff]   ;;  %v7326_v17 = vld [vmem:[%s8290_s4 + $0x1c4] ss:$16 sps:$4 sm:$0xff]   ;;  %v7343_v23 = vld [vmem:[%s8290_s4 + $0x1c8] ss:$16 sps:$4 sm:$0xff]  }
 0x310   : > { %3658 = vmatpush1.bf16.msra.mxu0 %v5703_v35  ;;  %3740 = vmatpush1.bf16.msra.mxu1 %v5704_v36  ;;  %v2947_v7 = vrot.slane %v2939_v27, %v6127_v50  ;;  %v7338_v21 = vld [vmem:[%s8290_s4 + $0x1c0] ss:$16 sps:$4 sm:$0xff]   ;;  %v7350_v25 = vld [vmem:[%s8290_s4 + $0x1e4] ss:$16 sps:$4 sm:$0xff]   ;;  %v7355_v26 = vld [vmem:[%s8290_s4 + $0x1ec] ss:$16 sps:$4 sm:$0xff]  }
 0x311   : > { %3659 = vmatprep.subr.bf16.mxu0 %v5705_v37  ;;  %3741 = vmatprep.subr.bf16.mxu1 %v5707_v38  ;;  %v2954_v12 = vrot.slane %v2940_v10, %v6127_v50  ;;  %v7366_v34 = vld [vmem:[%s8290_s4 + $0x1e0] ss:$16 sps:$4 sm:$0xff]   ;;  %v7371_v35 = vld [vmem:[%s8290_s4 + $0x1e8] ss:$16 sps:$4 sm:$0xff]   ;;  %v7378_v37 = vld [vmem:[%s8290_s4 + $0x204] ss:$16 sps:$4 sm:$0xff]  }
 0x312   : > { %v7383_v38 = vld [vmem:[%s8290_s4 + $0x20c] ss:$16 sps:$4 sm:$0xff]   ;;  %v7440_v59 = vld [vmem:[%s8290_s4 + $0x240] ss:$16 sps:$4 sm:$0xff]   ;;  %v7445_v2 = vld [vmem:[%s8290_s4 + $0x248] ss:$16 sps:$4 sm:$0xff]  }
 0x313   : > { %v2955_v14 = vcombine.low %v2947_v7, %v2954_v12  ;;  %8646 = vst [vmem:[#allocation99_spill] sm:$0xff] %v7440_v59  ;;  %8647 = vst [vmem:[#allocation100_spill] sm:$0xff] %v7445_v2  ;;  %v7452_v4 = vld [vmem:[%s8290_s4 + $0x264] ss:$16 sps:$4 sm:$0xff]   ;;  %v7457_v32 = vld [vmem:[%s8290_s4 + $0x26c] ss:$16 sps:$4 sm:$0xff]  }
 0x314   : > { %3660 = vmatpush1.bf16.msra.mxu0 %v5709_v39  ;;  %3742 = vmatpush1.bf16.msra.mxu1 %v5710_v40  ;;  %8648 = vst [vmem:[#allocation101_spill] sm:$0xff] %v7452_v4  ;;  %8649 = vst [vmem:[#allocation102_spill] sm:$0xff] %v7457_v32  ;;  %v7464_v22 = vld [vmem:[%s8290_s4 + $0x260] ss:$16 sps:$4 sm:$0xff]   ;;  %v7469_v33 = vld [vmem:[%s8290_s4 + $0x268] ss:$16 sps:$4 sm:$0xff]  }
 0x315   : > { %3661 = vmatprep.subr.bf16.mxu0 %v5711_v41  ;;  %3743 = vmatprep.subr.bf16.mxu1 %v5713_v42  ;;  %v2957_v19 = vadd.f32 %v2955_v14, %v2920_v13  ;;  %v7392_v41 = vld [vmem:[%s8290_s4 + $0x200] ss:$16 sps:$4 sm:$0xff]   ;;  %v7397_v42 = vld [vmem:[%s8290_s4 + $0x208] ss:$16 sps:$4 sm:$0xff]   ;;  %8650 = vst [vmem:[#allocation103_spill] sm:$0xff] %v7464_v22  ;;  %8651 = vst [vmem:[#allocation104_spill] sm:$0xff] %v7469_v33 }
 0x316   : > { %v7476_v27 = vld [vmem:[%s8290_s4 + $0x284] ss:$16 sps:$4 sm:$0xff]   ;;  %v7481_v10 = vld [vmem:[%s8290_s4 + $0x28c] ss:$16 sps:$4 sm:$0xff]   ;;  %v7488_v7 = vld [vmem:[%s8290_s4 + $0x280] ss:$16 sps:$4 sm:$0xff]  }
 0x317   : > { %v2958_v20 = vmax.f32 %v2957_v19, 0.0  ;;  %8652 = vst [vmem:[#allocation105_spill] sm:$0xff] %v7476_v27  ;;  %8653 = vst [vmem:[#allocation106_spill] sm:$0xff] %v7481_v10  ;;  %v7493_v12 = vld [vmem:[%s8290_s4 + $0x288] ss:$16 sps:$4 sm:$0xff]  }
 0x318   : > { %3662 = vmatpush1.bf16.msra.mxu0 %v5715_v43  ;;  %3744 = vmatpush1.bf16.msra.mxu1 %v5716_v45  ;;  %v7404_v43 = vld [vmem:[%s8290_s4 + $0x224] ss:$16 sps:$4 sm:$0xff]   ;;  %v7409_v45 = vld [vmem:[%s8290_s4 + $0x22c] ss:$16 sps:$4 sm:$0xff]   ;;  %8654 = vst [vmem:[#allocation107_spill] sm:$0xff] %v7488_v7  ;;  %8655 = vst [vmem:[#allocation108_spill] sm:$0xff] %v7493_v12 }
 0x319   : > { %3663 = vmatprep.subr.bf16.mxu0 %v5717_v46  ;;  %3745 = vmatprep.subr.bf16.mxu1 %v5719_v47  ;;  %v2967_v28 = vrot.slane %v2958_v20, %v6127_v50  ;;  %v2960_v29 = vcombine.high %v2958_v20, %v2958_v20  ;;  %v7416_v47 = vld [vmem:[%s8290_s4 + $0x220] ss:$16 sps:$4 sm:$0xff]   ;;  %v7500_v13 = vld [vmem:[%s8290_s4 + $0x2a4] ss:$16 sps:$4 sm:$0xff]   ;;  %v7505_v14 = vld [vmem:[%s8290_s4 + $0x2ac] ss:$16 sps:$4 sm:$0xff]  }
 0x31a   : > { %8656 = vst [vmem:[#allocation109_spill] sm:$0xff] %v7500_v13  ;;  %8657 = vst [vmem:[#allocation110_spill] sm:$0xff] %v7505_v14  ;;  %v7512_v19 = vld [vmem:[%s8290_s4 + $0x2a0] ss:$16 sps:$4 sm:$0xff]   ;;  %v7517_v20 = vld [vmem:[%s8290_s4 + $0x2a8] ss:$16 sps:$4 sm:$0xff]  }
 0x31b   : > { %v2975_v30 = vcombine.high %v2967_v28, %v2967_v28  ;;  %v7359_v31 = vrot.slane %v2960_v29, %v6127_v50  ;;  %v2981_v40 = vpack.c.bf16 %v2967_v28, %v2967_v28  ;;  %8658 = vst [vmem:[#allocation111_spill] sm:$0xff] %v7512_v19  ;;  %8659 = vst [vmem:[#allocation112_spill] sm:$0xff] %v7517_v20  ;;  %v7524_v28 = vld [vmem:[%s8290_s4 + $0x2c4] ss:$16 sps:$4 sm:$0xff]   ;;  %v7529_v29 = vld [vmem:[%s8290_s4 + $0x2cc] ss:$16 sps:$4 sm:$0xff]  }
 0x31c   : > { %3664 = vmatpush1.bf16.msra.mxu0 %v5721_v48  ;;  %3746 = vmatpush1.bf16.msra.mxu1 %v5722_v49  ;;  %v7421_v48 = vld [vmem:[%s8290_s4 + $0x228] ss:$16 sps:$4 sm:$0xff]   ;;  %v7428_v49 = vld [vmem:[%s8290_s4 + $0x244] ss:$16 sps:$4 sm:$0xff]   ;;  %8660 = vst [vmem:[#allocation113_spill] sm:$0xff] %v7524_v28  ;;  %8661 = vst [vmem:[#allocation114_spill] sm:$0xff] %v7529_v29 }
 0x31d   : > { %3665 = vmatprep.subr.bf16.mxu0 %v5723_v51  ;;  %3747 = vmatprep.subr.bf16.mxu1 %v7193_v52  ;;  %v2982_v36 = vpack.c.bf16 %v2975_v30, %v2975_v30  ;;  %v2976_v39 = vcombine.high %v7359_v31, %v7359_v31  ;;  %v7433_v51 = vld [vmem:[%s8290_s4 + $0x24c] ss:$16 sps:$4 sm:$0xff]   ;;  %v7534_v30 = vld [vmem:[%s8290_s4 + $0x2c0] ss:$16 sps:$4 sm:$0xff]  }
 0x31e   : > { %8662 = vst [vmem:[#allocation115_spill] sm:$0xff] %v7534_v30 }
 0x31f   : > { %3679 = vmatprep.mubr.bf16.mxu0 %v2982_v36  ;;  %3761 = vmatprep.mubr.bf16.mxu1 %v2982_v36  ;;  %v2984_v46 = vpack.c.bf16 %v2976_v39, %v2976_v39  ;;  %v7539_v36 = vld [vmem:[%s8290_s4 + $0x2c8] ss:$16 sps:$4 sm:$0xff]   ;;  %v7546_v39 = vld [vmem:[%s8290_s4 + $0x2e4] ss:$16 sps:$4 sm:$0xff]  }
 0x320   : > { %3666 = vmatpush1.bf16.msra.mxu0 %v7198_v53  ;;  %3748 = vmatpush1.bf16.msra.mxu1 %v7203_v54  ;;  %8663 = vst [vmem:[#allocation116_spill] sm:$0xff] %v7539_v36  ;;  %8664 = vst [vmem:[#allocation117_spill] sm:$0xff] %v7546_v39 }
 0x321   : > { %3667 = vmatprep.subr.bf16.mxu0 %v7208_v55  ;;  %3749 = vmatprep.subr.bf16.mxu1 %v7214_v56 }
 0x324   : > { %3668 = vmatpush1.bf16.msra.mxu0 %v7219_v57  ;;  %3750 = vmatpush1.bf16.msra.mxu1 %v7224_v58 }
 0x325   : > { %3669 = vmatprep.subr.bf16.mxu0 %v7234_v61  ;;  %3751 = vmatprep.subr.bf16.mxu1 %v7247_v0 }
 0x328   : > { %3670 = vmatpush1.bf16.msra.mxu0 %v7260_v3  ;;  %3752 = vmatpush1.bf16.msra.mxu1 %v7265_v24 }
 0x329   : > { %3671 = vmatprep.subr.bf16.mxu0 %v7275_v6  ;;  %3753 = vmatprep.subr.bf16.mxu1 %v7280_v8 }
 0x32c   : > { %3672 = vmatpush1.bf16.msra.mxu0 %v7288_v5  ;;  %3754 = vmatpush1.bf16.msra.mxu1 %v7293_v9 }
 0x32d   : > { %3673 = vmatprep.subr.bf16.mxu0 %v7301_v44  ;;  %3755 = vmatprep.subr.bf16.mxu1 %v7306_v11 }
 0x330   : > { %3674 = vmatpush1.bf16.msra.mxu0 %v7314_v15  ;;  %3756 = vmatpush1.bf16.msra.mxu1 %v7319_v16 }
 0x331   : > { %3675 = vmatprep.subr.bf16.mxu0 %v7326_v17  ;;  %3757 = vmatprep.subr.bf16.mxu1 %v7331_v18 }
 0x334   : > { %3676 = vmatpush1.bf16.msra.mxu0 %v7338_v21  ;;  %3758 = vmatpush1.bf16.msra.mxu1 %v7343_v23 }
 0x335   : > { %3677 = vmatprep.subr.bf16.mxu0 %v7350_v25  ;;  %3759 = vmatprep.subr.bf16.mxu1 %v7355_v26 }
 0x338   : > { %3678 = vmatpush1.bf16.msra.mxu0 %v7366_v34  ;;  %3760 = vmatpush1.bf16.msra.mxu1 %v7371_v35 }
 0x339   : > { %3688 = vmatprep.subr.bf16.mxu0 %v7378_v37  ;;  %3770 = vmatprep.subr.bf16.mxu1 %v7383_v38 }
 0x33b   : > { %3680 = vmatmul.mubr.bf16.vlgmr.msra.gmra.mrb[0].mxu0 %v2981_v40  ;;  %3762 = vmatmul.mubr.bf16.vlgmr.msra.gmra.mrb[0].mxu1 %v2981_v40  ;;  %v7553_v40 = vld [vmem:[%s8290_s4 + $0x2ec] ss:$16 sps:$4 sm:$0xff]  }
 0x33c   : > { %3689 = vmatpush1.bf16.msra.mxu0 %v7392_v41  ;;  %3771 = vmatpush1.bf16.msra.mxu1 %v7397_v42  ;;  %8665 = vst [vmem:[#allocation118_spill] sm:$0xff] %v7553_v40 }
 0x33d   : > { %3690 = vmatprep.subr.bf16.mxu0 %v7404_v43  ;;  %3772 = vmatprep.subr.bf16.mxu1 %v7409_v45 }
 0x33e   : > { %3720 = vmatprep.mubr.bf16.mxu0 %v2984_v46  ;;  %3802 = vmatprep.mubr.bf16.mxu1 %v2984_v46  ;;  %v7558_v46 = vld [vmem:[%s8290_s4 + $0x2e0] ss:$16 sps:$4 sm:$0xff]  }
 0x33f   : > { %8666 = vst [vmem:[#allocation119_spill] sm:$0xff] %v7558_v46 }
 0x340   : > { %3691 = vmatpush1.bf16.msra.mxu0 %v7416_v47  ;;  %3773 = vmatpush1.bf16.msra.mxu1 %v7421_v48 }
 0x341   : > { %3692 = vmatprep.subr.bf16.mxu0 %v7428_v49  ;;  %3774 = vmatprep.subr.bf16.mxu1 %v7433_v51 }
 0x344   : > { %3693 = vmatpush1.bf16.msra.mxu0 %v7440_v59  ;;  %3775 = vmatpush1.bf16.msra.mxu1 %v7445_v2 }
 0x345   : > { %3694 = vmatprep.subr.bf16.mxu0 %v7452_v4  ;;  %3776 = vmatprep.subr.bf16.mxu1 %v7457_v32 }
 0x348   : > { %3695 = vmatpush1.bf16.msra.mxu0 %v7464_v22  ;;  %3777 = vmatpush1.bf16.msra.mxu1 %v7469_v33 }
 0x349   : > { %3696 = vmatprep.subr.bf16.mxu0 %v7476_v27  ;;  %3778 = vmatprep.subr.bf16.mxu1 %v7481_v10 }
 0x34c   : > { %3697 = vmatpush1.bf16.msra.mxu0 %v7488_v7  ;;  %3779 = vmatpush1.bf16.msra.mxu1 %v7493_v12  ;;  %v2985_v12 = vld [vmem:[%s8291_s5] sm:$0xf] }
 0x34d   : > { %3698 = vmatprep.subr.bf16.mxu0 %v7500_v13  ;;  %3780 = vmatprep.subr.bf16.mxu1 %v7505_v14  ;;  %v7709_v14 = vld [vmem:[%s8290_s4 + $0x3a8] ss:$16 sps:$4 sm:$0xff]   ;;  %v2990_v10 = vrot.slane %v2985_v12, %v7227_v60  ;;  %v2998_v27 = vrot.slane %v2985_v12, %v7240_v63 }
 0x34e   : > { %8691 = vst [vmem:[#allocation144_spill] sm:$0xff] %v7709_v14 }
 0x350   : > { %3699 = vmatpush1.bf16.msra.mxu0 %v7512_v19  ;;  %3781 = vmatpush1.bf16.msra.mxu1 %v7517_v20  ;;  %v7563_v20 = vld [vmem:[%s8290_s4 + $0x2e8] ss:$16 sps:$4 sm:$0xff]   ;;  %v7704_v19 = vld [vmem:[%s8290_s4 + $0x3a0] ss:$16 sps:$4 sm:$0xff]  }
 0x351   : > { %3700 = vmatprep.subr.bf16.mxu0 %v7524_v28  ;;  %3782 = vmatprep.subr.bf16.mxu1 %v7529_v29  ;;  %8667 = vst [vmem:[#allocation120_spill] sm:$0xff] %v7563_v20  ;;  %v7570_v29 = vld [vmem:[%s8290_s4 + $0x304] ss:$16 sps:$4 sm:$0xff]   ;;  %v7577_v28 = vld [vmem:[%s8290_s4 + $0x30c] ss:$16 sps:$4 sm:$0xff]   ;;  %8690 = vst [vmem:[#allocation143_spill] sm:$0xff] %v7704_v19 }
 0x352   : > { %8668 = vst [vmem:[#allocation121_spill] sm:$0xff] %v7570_v29  ;;  %8669 = vst [vmem:[#allocation122_spill] sm:$0xff] %v7577_v28 }
 0x354   : > { %3701 = vmatpush1.bf16.msra.mxu0 %v7534_v30  ;;  %3783 = vmatpush1.bf16.msra.mxu1 %v7539_v36  ;;  %v7582_v30 = vld [vmem:[%s8290_s4 + $0x300] ss:$16 sps:$4 sm:$0xff]   ;;  %v7587_v36 = vld [vmem:[%s8290_s4 + $0x308] ss:$16 sps:$4 sm:$0xff]  }
 0x355   : > { %3702 = vmatprep.subr.bf16.mxu0 %v7546_v39  ;;  %3784 = vmatprep.subr.bf16.mxu1 %v7553_v40  ;;  %8670 = vst [vmem:[#allocation123_spill] sm:$0xff] %v7582_v30  ;;  %8671 = vst [vmem:[#allocation124_spill] sm:$0xff] %v7587_v36  ;;  %v7594_v40 = vld [vmem:[%s8290_s4 + $0x324] ss:$16 sps:$4 sm:$0xff]   ;;  %v7601_v39 = vld [vmem:[%s8290_s4 + $0x32c] ss:$16 sps:$4 sm:$0xff]  }
 0x356   : > { %8672 = vst [vmem:[#allocation125_spill] sm:$0xff] %v7594_v40  ;;  %8673 = vst [vmem:[#allocation126_spill] sm:$0xff] %v7601_v39 }
 0x358   : > { %3703 = vmatpush1.bf16.msra.mxu0 %v7558_v46  ;;  %3785 = vmatpush1.bf16.msra.mxu1 %v7563_v20  ;;  %v7606_v46 = vld [vmem:[%s8290_s4 + $0x320] ss:$16 sps:$4 sm:$0xff]   ;;  %v7611_v20 = vld [vmem:[%s8290_s4 + $0x328] ss:$16 sps:$4 sm:$0xff]  }
 0x359   : > { %3704 = vmatprep.subr.bf16.mxu0 %v7570_v29  ;;  %3786 = vmatprep.subr.bf16.mxu1 %v7577_v28  ;;  %8674 = vst [vmem:[#allocation127_spill] sm:$0xff] %v7606_v46  ;;  %8675 = vst [vmem:[#allocation128_spill] sm:$0xff] %v7611_v20  ;;  %v7618_v28 = vld [vmem:[%s8290_s4 + $0x344] ss:$16 sps:$4 sm:$0xff]   ;;  %v7625_v29 = vld [vmem:[%s8290_s4 + $0x34c] ss:$16 sps:$4 sm:$0xff]  }
 0x35a   : > { %8676 = vst [vmem:[#allocation129_spill] sm:$0xff] %v7618_v28  ;;  %8677 = vst [vmem:[#allocation130_spill] sm:$0xff] %v7625_v29 }
 0x35c   : > { %3705 = vmatpush1.bf16.msra.mxu0 %v7582_v30  ;;  %3787 = vmatpush1.bf16.msra.mxu1 %v7587_v36  ;;  %v7630_v30 = vld [vmem:[%s8290_s4 + $0x340] ss:$16 sps:$4 sm:$0xff]   ;;  %v7635_v36 = vld [vmem:[%s8290_s4 + $0x348] ss:$16 sps:$4 sm:$0xff]  }
 0x35d   : > { %3706 = vmatprep.subr.bf16.mxu0 %v7594_v40  ;;  %3788 = vmatprep.subr.bf16.mxu1 %v7601_v39  ;;  %8678 = vst [vmem:[#allocation131_spill] sm:$0xff] %v7630_v30  ;;  %8679 = vst [vmem:[#allocation132_spill] sm:$0xff] %v7635_v36  ;;  %v7642_v39 = vld [vmem:[%s8290_s4 + $0x364] ss:$16 sps:$4 sm:$0xff]   ;;  %v7649_v40 = vld [vmem:[%s8290_s4 + $0x36c] ss:$16 sps:$4 sm:$0xff]  }
 0x35e   : > { %8680 = vst [vmem:[#allocation133_spill] sm:$0xff] %v7642_v39  ;;  %8681 = vst [vmem:[#allocation134_spill] sm:$0xff] %v7649_v40 }
 0x360   : > { %3707 = vmatpush1.bf16.msra.mxu0 %v7606_v46  ;;  %3789 = vmatpush1.bf16.msra.mxu1 %v7611_v20  ;;  %v7654_v46 = vld [vmem:[%s8290_s4 + $0x360] ss:$16 sps:$4 sm:$0xff]   ;;  %v7659_v20 = vld [vmem:[%s8290_s4 + $0x368] ss:$16 sps:$4 sm:$0xff]  }
 0x361   : > { %3708 = vmatprep.subr.bf16.mxu0 %v7618_v28  ;;  %3790 = vmatprep.subr.bf16.mxu1 %v7625_v29  ;;  %8682 = vst [vmem:[#allocation135_spill] sm:$0xff] %v7654_v46  ;;  %8683 = vst [vmem:[#allocation136_spill] sm:$0xff] %v7659_v20  ;;  %v7666_v29 = vld [vmem:[%s8290_s4 + $0x384] ss:$16 sps:$4 sm:$0xff]   ;;  %v7673_v28 = vld [vmem:[%s8290_s4 + $0x38c] ss:$16 sps:$4 sm:$0xff]  }
 0x362   : > { %8684 = vst [vmem:[#allocation137_spill] sm:$0xff] %v7666_v29  ;;  %8685 = vst [vmem:[#allocation138_spill] sm:$0xff] %v7673_v28 }
 0x364   : > { %3709 = vmatpush1.bf16.msra.mxu0 %v7630_v30  ;;  %3791 = vmatpush1.bf16.msra.mxu1 %v7635_v36  ;;  %v7678_v30 = vld [vmem:[%s8290_s4 + $0x380] ss:$16 sps:$4 sm:$0xff]   ;;  %v7683_v36 = vld [vmem:[%s8290_s4 + $0x388] ss:$16 sps:$4 sm:$0xff]  }
 0x365   : > { %3710 = vmatprep.subr.bf16.mxu0 %v7642_v39  ;;  %3792 = vmatprep.subr.bf16.mxu1 %v7649_v40  ;;  %8686 = vst [vmem:[#allocation139_spill] sm:$0xff] %v7678_v30  ;;  %8687 = vst [vmem:[#allocation140_spill] sm:$0xff] %v7683_v36  ;;  %v7688_v39 = vld [vmem:[%s8290_s4 + $0x3a4] ss:$16 sps:$4 sm:$0xff]   ;;  %v7693_v40 = vld [vmem:[%s8290_s4 + $0x3ac] ss:$16 sps:$4 sm:$0xff]  }
 0x366   : > { %8688 = vst [vmem:[#allocation141_spill] sm:$0xff] %v7688_v39  ;;  %8689 = vst [vmem:[#allocation142_spill] sm:$0xff] %v7693_v40 }
 0x368   : > { %3711 = vmatpush1.bf16.msra.mxu0 %v7654_v46  ;;  %3793 = vmatpush1.bf16.msra.mxu1 %v7659_v20 }
 0x369   : > { %3712 = vmatprep.subr.bf16.mxu0 %v7666_v29  ;;  %3794 = vmatprep.subr.bf16.mxu1 %v7673_v28  ;;  %v2983_v28 = vpack.c.bf16 %v7359_v31, %v7359_v31  ;;  %v7790_v31 = vld [vmem:[%s8292_s6 + $0x48] sm:$0xff]  }
 0x36a   : > { %8704 = vst [vmem:[#allocation157_spill] sm:$0xff] %v7790_v31 }
 0x36c   : > { %3713 = vmatpush1.bf16.msra.mxu0 %v7678_v30  ;;  %3795 = vmatpush1.bf16.msra.mxu1 %v7683_v36  ;;  %v7716_v30 = vld [vmem:[%s8290_s4 + $0x3c4] ss:$16 sps:$4 sm:$0xff]   ;;  %v7721_v36 = vld [vmem:[%s8290_s4 + $0x3cc] ss:$16 sps:$4 sm:$0xff]  }
 0x36d   : > { %3714 = vmatprep.subr.bf16.mxu0 %v7688_v39  ;;  %3796 = vmatprep.subr.bf16.mxu1 %v7693_v40  ;;  %8692 = vst [vmem:[#allocation145_spill] sm:$0xff] %v7716_v30  ;;  %8693 = vst [vmem:[#allocation146_spill] sm:$0xff] %v7721_v36  ;;  %v7728_v39 = vld [vmem:[%s8290_s4 + $0x3c0] ss:$16 sps:$4 sm:$0xff]   ;;  %v7733_v40 = vld [vmem:[%s8290_s4 + $0x3c8] ss:$16 sps:$4 sm:$0xff]  }
 0x36e   : > { %8694 = vst [vmem:[#allocation147_spill] sm:$0xff] %v7728_v39  ;;  %8695 = vst [vmem:[#allocation148_spill] sm:$0xff] %v7733_v40 }
 0x370   : > { %3715 = vmatpush1.bf16.msra.mxu0 %v7704_v19  ;;  %3797 = vmatpush1.bf16.msra.mxu1 %v7709_v14  ;;  %v7740_v19 = vld [vmem:[%s8290_s4 + $0x3e4] ss:$16 sps:$4 sm:$0xff]   ;;  %v7745_v14 = vld [vmem:[%s8290_s4 + $0x3ec] ss:$16 sps:$4 sm:$0xff]  }
 0x371   : > { %3716 = vmatprep.subr.bf16.mxu0 %v7716_v30  ;;  %3798 = vmatprep.subr.bf16.mxu1 %v7721_v36  ;;  %8696 = vst [vmem:[#allocation149_spill] sm:$0xff] %v7740_v19  ;;  %8697 = vst [vmem:[#allocation150_spill] sm:$0xff] %v7745_v14  ;;  %v7752_v30 = vld [vmem:[%s8290_s4 + $0x3e0] ss:$16 sps:$4 sm:$0xff]   ;;  %v7757_v36 = vld [vmem:[%s8290_s4 + $0x3e8] ss:$16 sps:$4 sm:$0xff]  }
 0x372   : > { %8698 = vst [vmem:[#allocation151_spill] sm:$0xff] %v7752_v30  ;;  %8699 = vst [vmem:[#allocation152_spill] sm:$0xff] %v7757_v36 }
 0x374   : > { %3717 = vmatpush1.bf16.msra.mxu0 %v7728_v39  ;;  %3799 = vmatpush1.bf16.msra.mxu1 %v7733_v40  ;;  %v7764_v39 = vld [vmem:[%s8292_s6 + $0x40] sm:$0xff]  }
 0x375   : > { %3718 = vmatprep.subr.bf16.mxu0 %v7740_v19  ;;  %3800 = vmatprep.subr.bf16.mxu1 %v7745_v14  ;;  %8700 = vst [vmem:[#allocation153_spill] sm:$0xff] %v7764_v39  ;;  %v7769_v40 = vld [vmem:[%s8292_s6 + $0xc0] sm:$0xff]  }
 0x376   : > { %8701 = vst [vmem:[#allocation154_spill] sm:$0xff] %v7769_v40  ;;  %v7778_v14 = vld [vmem:[%s8292_s6] sm:$0xff]  }
 0x377   : > { %8702 = vst [vmem:[#allocation155_spill] sm:$0xff] %v7778_v14  ;;  %v7783_v19 = vld [vmem:[%s8292_s6 + $0x80] sm:$0xff]  }
 0x378   : > { %3719 = vmatpush1.bf16.msra.mxu0 %v7752_v30  ;;  %3801 = vmatpush1.bf16.msra.mxu1 %v7757_v36  ;;  %8703 = vst [vmem:[#allocation156_spill] sm:$0xff] %v7783_v19  ;;  %v7795_v36 = vld [vmem:[%s8292_s6 + $0xc8] sm:$0xff]  }
 0x379   : > { %4977 = vmatprep.subr.bf16.mxu0 %v7764_v39  ;;  %4999 = vmatprep.subr.bf16.mxu1 %v7769_v40  ;;  %8705 = vst [vmem:[#allocation158_spill] sm:$0xff] %v7795_v36  ;;  %v7802_v40 = vld [vmem:[%s8292_s6 + $0x8] sm:$0xff]  }
 0x37a   : > { %8706 = vst [vmem:[#allocation159_spill] sm:$0xff] %v7802_v40  ;;  %v7807_v39 = vld [vmem:[%s8292_s6 + $0x88] sm:$0xff]  }
 0x37b   : > { %3721 = vmatmul.mubr.bf16.vlgmr.msra.gmra.mrb[0].mxu0 %v2983_v28  ;;  %3803 = vmatmul.mubr.bf16.vlgmr.msra.gmra.mrb[0].mxu1 %v2983_v28  ;;  %8707 = vst [vmem:[#allocation160_spill] sm:$0xff] %v7807_v39  ;;  %v7814_v28 = vld [vmem:[%s8292_s6 + $0x50] sm:$0xff]  }
 0x37c   : > { %4978 = vmatpush3.bf16.msra.mxu0 %v7778_v14  ;;  %5000 = vmatpush3.bf16.msra.mxu1 %v7783_v19  ;;  %8708 = vst [vmem:[#allocation161_spill] sm:$0xff] %v7814_v28  ;;  %v7819_v19 = vld [vmem:[%s8292_s6 + $0xd0] sm:$0xff]  }
 0x37d   : > { %4979 = vmatprep.subr.bf16.mxu0 %v7790_v31  ;;  %5001 = vmatprep.subr.bf16.mxu1 %v7795_v36  ;;  %8709 = vst [vmem:[#allocation162_spill] sm:$0xff] %v7819_v19  ;;  %v7826_v31 = vld [vmem:[%s8292_s6 + $0x10] sm:$0xff]  }
 0x37e   : > { %8710 = vst [vmem:[#allocation163_spill] sm:$0xff] %v7826_v31  ;;  %v7831_v36 = vld [vmem:[%s8292_s6 + $0x90] sm:$0xff]  }
 0x37f   : > { %8711 = vst [vmem:[#allocation164_spill] sm:$0xff] %v7831_v36 }
 0x380   : > { %4980 = vmatpush3.bf16.msra.mxu0 %v7802_v40  ;;  %5002 = vmatpush3.bf16.msra.mxu1 %v7807_v39  ;;  %v7838_v40 = vld [vmem:[%s8292_s6 + $0x58] sm:$0xff]  }
 0x381   : > { %4981 = vmatprep.subr.bf16.mxu0 %v7814_v28  ;;  %5003 = vmatprep.subr.bf16.mxu1 %v7819_v19  ;;  %8712 = vst [vmem:[#allocation165_spill] sm:$0xff] %v7838_v40  ;;  %v7843_v39 = vld [vmem:[%s8292_s6 + $0xd8] sm:$0xff]  }
 0x382   : > { %8713 = vst [vmem:[#allocation166_spill] sm:$0xff] %v7843_v39  ;;  %v7850_v28 = vld [vmem:[%s8292_s6 + $0x18] sm:$0xff]  }
 0x383   : > { %8714 = vst [vmem:[#allocation167_spill] sm:$0xff] %v7850_v28  ;;  %v7855_v19 = vld [vmem:[%s8292_s6 + $0x98] sm:$0xff]  }
 0x384   : > { %4982 = vmatpush3.bf16.msra.mxu0 %v7826_v31  ;;  %5004 = vmatpush3.bf16.msra.mxu1 %v7831_v36  ;;  %8715 = vst [vmem:[#allocation168_spill] sm:$0xff] %v7855_v19  ;;  %v7862_v31 = vld [vmem:[%s8292_s6 + $0x60] sm:$0xff]  }
 0x385   : > { %4983 = vmatprep.subr.bf16.mxu0 %v7838_v40  ;;  %5005 = vmatprep.subr.bf16.mxu1 %v7843_v39  ;;  %8716 = vst [vmem:[#allocation169_spill] sm:$0xff] %v7862_v31  ;;  %v7867_v36 = vld [vmem:[%s8292_s6 + $0xe0] sm:$0xff]  }
 0x386   : > { %8717 = vst [vmem:[#allocation170_spill] sm:$0xff] %v7867_v36  ;;  %v7874_v40 = vld [vmem:[%s8292_s6 + $0x20] sm:$0xff]  }
 0x387   : > { %8718 = vst [vmem:[#allocation171_spill] sm:$0xff] %v7874_v40  ;;  %v7879_v39 = vld [vmem:[%s8292_s6 + $0xa0] sm:$0xff]  }
 0x388   : > { %4984 = vmatpush3.bf16.msra.mxu0 %v7850_v28  ;;  %5006 = vmatpush3.bf16.msra.mxu1 %v7855_v19  ;;  %8719 = vst [vmem:[#allocation172_spill] sm:$0xff] %v7879_v39  ;;  %v7886_v28 = vld [vmem:[%s8292_s6 + $0x68] sm:$0xff]  }
 0x389   : > { %4985 = vmatprep.subr.bf16.mxu0 %v7862_v31  ;;  %5007 = vmatprep.subr.bf16.mxu1 %v7867_v36  ;;  %8720 = vst [vmem:[#allocation173_spill] sm:$0xff] %v7886_v28  ;;  %v7891_v19 = vld [vmem:[%s8292_s6 + $0xe8] sm:$0xff]  }
 0x38a   : > { %8721 = vst [vmem:[#allocation174_spill] sm:$0xff] %v7891_v19  ;;  %v7898_v31 = vld [vmem:[%s8292_s6 + $0x28] sm:$0xff]  }
 0x38b   : > { %8722 = vst [vmem:[#allocation175_spill] sm:$0xff] %v7898_v31  ;;  %v7903_v36 = vld [vmem:[%s8292_s6 + $0xa8] sm:$0xff]  }
 0x38c   : > { %4986 = vmatpush3.bf16.msra.mxu0 %v7874_v40  ;;  %5008 = vmatpush3.bf16.msra.mxu1 %v7879_v39  ;;  %8723 = vst [vmem:[#allocation176_spill] sm:$0xff] %v7903_v36  ;;  %v7912_v39 = vld [vmem:[%s8292_s6 + $0x70] sm:$0xff]  }
 0x38d   : > { %4987 = vmatprep.subr.bf16.mxu0 %v7886_v28  ;;  %5009 = vmatprep.subr.bf16.mxu1 %v7891_v19  ;;  %8724 = vst [vmem:[#allocation177_spill] sm:$0xff] %v7912_v39  ;;  %v7917_v40 = vld [vmem:[%s8292_s6 + $0xf0] sm:$0xff]   ;;  %v7941_v19 = vld [vmem:[%s8292_s6 + $0xf8] sm:$0xff]  }
 0x38e   : > { %8725 = vst [vmem:[#allocation178_spill] sm:$0xff] %v7917_v40  ;;  %v7922_v28 = vld [vmem:[%s8292_s6 + $0x30] sm:$0xff]   ;;  %8729 = vst [vmem:[#allocation182_spill] sm:$0xff] %v7941_v19 }
 0x38f   : > { %8726 = vst [vmem:[#allocation179_spill] sm:$0xff] %v7922_v28 }
 0x390   : > { %4988 = vmatpush3.bf16.msra.mxu0 %v7898_v31  ;;  %5010 = vmatpush3.bf16.msra.mxu1 %v7903_v36  ;;  %v7927_v31 = vld [vmem:[%s8292_s6 + $0xb0] sm:$0xff]   ;;  %v7936_v36 = vld [vmem:[%s8292_s6 + $0x78] sm:$0xff]  }
 0x391   : > { %8727 = vst [vmem:[#allocation180_spill] sm:$0xff] %v7927_v31  ;;  %4989 = vmatprep.subr.bf16.mxu0 %v7912_v39  ;;  %5011 = vmatprep.subr.bf16.mxu1 %v7917_v40  ;;  %8728 = vst [vmem:[#allocation181_spill] sm:$0xff] %v7936_v36  ;;  %v7946_v39 = vld [vmem:[%s8292_s6 + $0x38] sm:$0xff]  }
 0x392   : > { %8730 = vst [vmem:[#allocation183_spill] sm:$0xff] %v7946_v39  ;;  %v5894_v40 = vld [vmem:[%s8290_s4 + $0xc] ss:$16 sps:$4 sm:$0xff]  }
 0x394   : > { %4990 = vmatpush3.bf16.msra.mxu0 %v7922_v28  ;;  %5012 = vmatpush3.bf16.msra.mxu1 %v7927_v31  ;;  %v7951_v28 = vld [vmem:[%s8292_s6 + $0xb8] sm:$0xff]   ;;  %v5893_v31 = vld [vmem:[%s8290_s4 + $0x4] ss:$16 sps:$4 sm:$0xff]  }
 0x395   : > { %8731 = vst [vmem:[#allocation184_spill] sm:$0xff] %v7951_v28  ;;  %4991 = vmatprep.subr.bf16.mxu0 %v7936_v36  ;;  %5013 = vmatprep.subr.bf16.mxu1 %v7941_v19  ;;  %v4101_v36 = vld [vmem:[%s8289_s3] sm:$0xf] }
 0x396   : > { %v4106_v19 = vrot.slane %v4101_v36, %v7227_v60  ;;  %v4118_v14 = vrot.slane %v4101_v36, %v7250_v1 }
 0x398   : > { %4992 = vmatpush3.bf16.msra.mxu0 %v7946_v39  ;;  %5014 = vmatpush3.bf16.msra.mxu1 %v7951_v28  ;;  %v4110_v39 = vrot.slane %v4101_v36, %v7237_v62  ;;  %v4114_v28 = vrot.slane %v4101_v36, %v7240_v63 }
 0x399   : > { %4187 = vmatprep.subr.bf16.mxu0 %v5893_v31  ;;  %4269 = vmatprep.subr.bf16.mxu1 %v5894_v40  ;;  %v4100_v40 = vld [vmem:[#allocation3] sm:$0xff] }
 0x39a   : > { %v4119_v30 = vcombine.low %v4106_v19, %v4110_v39  ;;  %v4120_v29 = vcombine.low %v4114_v28, %v4118_v14  ;;  %v2994_v19 = vrot.slane %v2985_v12, %v7237_v62  ;;  %v3002_v14 = vrot.slane %v2985_v12, %v7250_v1 }
 0x39c   : > { %v4127_v31 = vrot.slane %v4119_v30, %v6127_v50  ;;  %v4134_v20 = vrot.slane %v4120_v29, %v6127_v50 }
 0x39e   : > { %v4135_v46 = vcombine.low %v4127_v31, %v4134_v20 }
 0x3a0   : > { %v4137_v13 = vadd.f32 %v4135_v46, %v4100_v40 }
 0x3a2   : > { %v7975_v7 = vmax.f32 %v4137_v13, 0.0 }
 0x3a4   : > { %v7983_v20 = vrot.slane %v7975_v7, %v6127_v50 }
 0x3a6   : > { %v4155_v1 = vcombine.high %v7983_v20, %v7983_v20 }
 0x44e   : > { %v3722_v30 = vpop.f32.mrb[0].mxu0  ;;  %v3804_v36 = vpop.f32.mrb[0].mxu1 }
 0x44f   : > { %v5113_v29 = vadd.f32 %v3722_v30, %v2990_v10  ;;  %v5115_v39 = vadd.f32 %v3804_v36, %v2998_v27  ;;  %v3724_v46 = vpop.f32.mrb[1].mxu0  ;;  %v3806_v28 = vpop.f32.mrb[1].mxu1  ;;  %v4162_v27 = vpack.c.bf16 %v4155_v1, %v4155_v1  ;;  %v5899_v1 = vld [vmem:[%s8290_s4 + $0x20] ss:$16 sps:$4 sm:$0xff]   ;;  %v5908_v36 = vld [vmem:[%s8290_s4 + $0x68] ss:$16 sps:$4 sm:$0xff]  }
 0x450   : > { %v5114_v13 = vadd.f32 %v3724_v46, %v2994_v19  ;;  %v5116_v31 = vadd.f32 %v3806_v28, %v3002_v14  ;;  %v3726_v40 = vpop.f32.mrb[2].mxu0  ;;  %v3808_v60 = vpop.f32.mrb[2].mxu1  ;;  %v5905_v19 = vld [vmem:[%s8290_s4 + $0x64] ss:$16 sps:$4 sm:$0xff]   ;;  %v5906_v14 = vld [vmem:[%s8290_s4 + $0x6c] ss:$16 sps:$4 sm:$0xff]  }
 0x451   : > { %v3811_v33 = vmax.f32 %v5113_v29, 0.0  ;;  %v3813_v63 = vmax.f32 %v5115_v39, 0.0  ;;  %v3727_v22 = vpop.f32.mrb[3].mxu0  ;;  %v3809_v62 = vpop.f32.mrb[3].mxu1  ;;  %v5895_v60 = vld [vmem:[%s8290_s4] ss:$16 sps:$4 sm:$0xff]  }
 0x452   : > { %v3812_v32 = vmax.f32 %v5114_v13, 0.0  ;;  %v3814_v12 = vmax.f32 %v5116_v31, 0.0  ;;  %v5896_v62 = vld [vmem:[%s8290_s4 + $0x8] ss:$16 sps:$4 sm:$0xff]   ;;  %v5903_v22 = vld [vmem:[%s8290_s4 + $0x40] ss:$16 sps:$4 sm:$0xff]  }
 0x453   : > { %v3815_v59 = vpack.c.bf16 %v3811_v33, %v3811_v33  ;;  %v3817_v10 = vpack.c.bf16 %v3813_v63, %v3813_v63  ;;  %v5898_v63 = vld [vmem:[%s8290_s4 + $0x2c] ss:$16 sps:$4 sm:$0xff]   ;;  %v5904_v33 = vld [vmem:[%s8290_s4 + $0x48] ss:$16 sps:$4 sm:$0xff]   ;;  %v5907_v30 = vld [vmem:[%s8290_s4 + $0x60] ss:$16 sps:$4 sm:$0xff]  }
 0x454   : > { %v3816_v4 = vpack.c.bf16 %v3812_v32, %v3812_v32  ;;  %v3818_v2 = vpack.c.bf16 %v3814_v12, %v3814_v12  ;;  %v5897_v32 = vld [vmem:[%s8290_s4 + $0x24] ss:$16 sps:$4 sm:$0xff]   ;;  %v5910_v39 = vld [vmem:[%s8290_s4 + $0x8c] ss:$16 sps:$4 sm:$0xff]   ;;  %v5911_v46 = vld [vmem:[%s8290_s4 + $0x80] ss:$16 sps:$4 sm:$0xff]  }
 0x455   : > { %v5909_v29 = vld [vmem:[%s8290_s4 + $0x84] ss:$16 sps:$4 sm:$0xff]   ;;  %v5912_v28 = vld [vmem:[%s8290_s4 + $0x88] ss:$16 sps:$4 sm:$0xff]   ;;  %v5914_v31 = vld [vmem:[%s8290_s4 + $0xac] ss:$16 sps:$4 sm:$0xff]  }
 0x456   : > { %4050 = vmatprep.mubr.bf16.mxu0 %v3816_v4  ;;  %4090 = vmatprep.mubr.bf16.mxu1 %v3818_v2  ;;  %v5901_v2 = vld [vmem:[%s8290_s4 + $0x44] ss:$16 sps:$4 sm:$0xff]   ;;  %v5902_v4 = vld [vmem:[%s8290_s4 + $0x4c] ss:$16 sps:$4 sm:$0xff]   ;;  %v5915_v40 = vld [vmem:[%s8290_s4 + $0xa0] ss:$16 sps:$4 sm:$0xff]  }
 0x457   : > { %4051 = vmatmul.mubr.bf16.vlgmr.msra.gmra.mrb[4].mxu0 %v3815_v59  ;;  %4091 = vmatmul.mubr.bf16.vlgmr.msra.gmra.mrb[4].mxu1 %v3817_v10  ;;  %v5900_v59 = vld [vmem:[%s8290_s4 + $0x28] ss:$16 sps:$4 sm:$0xff]   ;;  %v5913_v13 = vld [vmem:[%s8290_s4 + $0xa4] ss:$16 sps:$4 sm:$0xff]  }
 0x458   : > { %4188 = vmatpush1.bf16.msra.mxu0 %v5895_v60  ;;  %4270 = vmatpush1.bf16.msra.mxu1 %v5896_v62  ;;  %v5916_v12 = vld [vmem:[%s8290_s4 + $0xa8] ss:$16 sps:$4 sm:$0xff]   ;;  %v5917_v10 = vld [vmem:[%s8290_s4 + $0xc4] ss:$16 sps:$4 sm:$0xff]   ;;  %v5919_v60 = vld [vmem:[%s8290_s4 + $0xc0] ss:$16 sps:$4 sm:$0xff]  }
 0x459   : > { %4189 = vmatprep.subr.bf16.mxu0 %v5897_v32  ;;  %4271 = vmatprep.subr.bf16.mxu1 %v5898_v63  ;;  %v5920_v62 = vld [vmem:[%s8290_s4 + $0xc8] ss:$16 sps:$4 sm:$0xff]   ;;  %v5921_v32 = vld [vmem:[%s8290_s4 + $0xe4] ss:$16 sps:$4 sm:$0xff]   ;;  %v5922_v63 = vld [vmem:[%s8290_s4 + $0xec] ss:$16 sps:$4 sm:$0xff]  }
 0x45a   : > { %4219 = vmatprep.mubr.bf16.mxu0 %v4162_v27  ;;  %4301 = vmatprep.mubr.bf16.mxu1 %v4162_v27  ;;  %v5918_v27 = vld [vmem:[%s8290_s4 + $0xcc] ss:$16 sps:$4 sm:$0xff]  }
 0x45c   : > { %4190 = vmatpush1.bf16.msra.mxu0 %v5899_v1  ;;  %4272 = vmatpush1.bf16.msra.mxu1 %v5900_v59  ;;  %v5923_v1 = vld [vmem:[%s8290_s4 + $0xe0] ss:$16 sps:$4 sm:$0xff]   ;;  %v5924_v59 = vld [vmem:[%s8290_s4 + $0xe8] ss:$16 sps:$4 sm:$0xff]  }
 0x45d   : > { %4191 = vmatprep.subr.bf16.mxu0 %v5901_v2  ;;  %4273 = vmatprep.subr.bf16.mxu1 %v5902_v4  ;;  %v5925_v2 = vld [vmem:[%s8290_s4 + $0x104] ss:$16 sps:$4 sm:$0xff]   ;;  %v5926_v4 = vld [vmem:[%s8290_s4 + $0x10c] ss:$16 sps:$4 sm:$0xff]  }
 0x460   : > { %4192 = vmatpush1.bf16.msra.mxu0 %v5903_v22  ;;  %4274 = vmatpush1.bf16.msra.mxu1 %v5904_v33  ;;  %v5927_v22 = vld [vmem:[%s8290_s4 + $0x100] ss:$16 sps:$4 sm:$0xff]   ;;  %v5928_v33 = vld [vmem:[%s8290_s4 + $0x108] ss:$16 sps:$4 sm:$0xff]  }
 0x461   : > { %4193 = vmatprep.subr.bf16.mxu0 %v5905_v19  ;;  %4275 = vmatprep.subr.bf16.mxu1 %v5906_v14  ;;  %v5929_v19 = vld [vmem:[%s8290_s4 + $0x124] ss:$16 sps:$4 sm:$0xff]  }
 0x462   : > { %v8767_v14 = vld [vmem:[#allocation134_spill] sm:$0xff] }
 0x464   : > { %4194 = vmatpush1.bf16.msra.mxu0 %v5907_v30  ;;  %4276 = vmatpush1.bf16.msra.mxu1 %v5908_v36  ;;  %v8768_v30 = vld [vmem:[#allocation135_spill] sm:$0xff]  ;;  %v8769_v36 = vld [vmem:[#allocation136_spill] sm:$0xff] }
 0x465   : > { %4195 = vmatprep.subr.bf16.mxu0 %v5909_v29  ;;  %4277 = vmatprep.subr.bf16.mxu1 %v5910_v39  ;;  %v8770_v29 = vld [vmem:[#allocation137_spill] sm:$0xff]  ;;  %v8771_v39 = vld [vmem:[#allocation138_spill] sm:$0xff] }
 0x468   : > { %4196 = vmatpush1.bf16.msra.mxu0 %v5911_v46  ;;  %4278 = vmatpush1.bf16.msra.mxu1 %v5912_v28  ;;  %v8772_v46 = vld [vmem:[#allocation139_spill] sm:$0xff]  ;;  %v8773_v28 = vld [vmem:[#allocation140_spill] sm:$0xff] }
 0x469   : > { %4197 = vmatprep.subr.bf16.mxu0 %v5913_v13  ;;  %4279 = vmatprep.subr.bf16.mxu1 %v5914_v31  ;;  %v8774_v13 = vld [vmem:[#allocation141_spill] sm:$0xff]  ;;  %v8775_v31 = vld [vmem:[#allocation142_spill] sm:$0xff] }
 0x46c   : > { %4198 = vmatpush1.bf16.msra.mxu0 %v5915_v40  ;;  %4280 = vmatpush1.bf16.msra.mxu1 %v5916_v12  ;;  %v8776_v40 = vld [vmem:[#allocation143_spill] sm:$0xff]  ;;  %v8777_v12 = vld [vmem:[#allocation144_spill] sm:$0xff] }
 0x46d   : > { %4199 = vmatprep.subr.bf16.mxu0 %v5917_v10  ;;  %4281 = vmatprep.subr.bf16.mxu1 %v5918_v27  ;;  %v8778_v10 = vld [vmem:[#allocation145_spill] sm:$0xff]  ;;  %v8779_v27 = vld [vmem:[#allocation146_spill] sm:$0xff] }
 0x470   : > { %4200 = vmatpush1.bf16.msra.mxu0 %v5919_v60  ;;  %4282 = vmatpush1.bf16.msra.mxu1 %v5920_v62  ;;  %v8780_v60 = vld [vmem:[#allocation147_spill] sm:$0xff]  ;;  %v8781_v62 = vld [vmem:[#allocation148_spill] sm:$0xff] }
 0x471   : > { %4201 = vmatprep.subr.bf16.mxu0 %v5921_v32  ;;  %4283 = vmatprep.subr.bf16.mxu1 %v5922_v63  ;;  %v8782_v32 = vld [vmem:[#allocation149_spill] sm:$0xff]  ;;  %v8783_v63 = vld [vmem:[#allocation150_spill] sm:$0xff] }
 0x474   : > { %4202 = vmatpush1.bf16.msra.mxu0 %v5923_v1  ;;  %4284 = vmatpush1.bf16.msra.mxu1 %v5924_v59  ;;  %v8784_v59 = vld [vmem:[#allocation151_spill] sm:$0xff] }
 0x475   : > { %4203 = vmatprep.subr.bf16.mxu0 %v5925_v2  ;;  %4285 = vmatprep.subr.bf16.mxu1 %v5926_v4  ;;  %v8785_v2 = vld [vmem:[#allocation152_spill] sm:$0xff]  ;;  %v8786_v4 = vld [vmem:[#allocation153_spill] sm:$0xff] }
 0x478   : > { %4204 = vmatpush1.bf16.msra.mxu0 %v5927_v22  ;;  %4286 = vmatpush1.bf16.msra.mxu1 %v5928_v33  ;;  %v8787_v22 = vld [vmem:[#allocation154_spill] sm:$0xff]  ;;  %v8788_v33 = vld [vmem:[#allocation155_spill] sm:$0xff] }
 0x479   : > { %4205 = vmatprep.subr.bf16.mxu0 %v5929_v19  ;;  %4287 = vmatprep.subr.bf16.mxu1 %v7193_v52  ;;  %v4140_v52 = vcombine.high %v7975_v7, %v7975_v7  ;;  %v8765_v7 = vld [vmem:[#allocation132_spill] sm:$0xff] }
 0x47a   : > { %v8789_v19 = vld [vmem:[#allocation156_spill] sm:$0xff] }
 0x47c   : > { %4206 = vmatpush1.bf16.msra.mxu0 %v7198_v53  ;;  %4288 = vmatpush1.bf16.msra.mxu1 %v7203_v54  ;;  %v8116_v53 = vrot.slane %v4140_v52, %v6127_v50  ;;  %v8790_v52 = vld [vmem:[#allocation157_spill] sm:$0xff] }
 0x47d   : > { %4207 = vmatprep.subr.bf16.mxu0 %v7208_v55  ;;  %4289 = vmatprep.subr.bf16.mxu1 %v7214_v56  ;;  %v4161_v55 = vpack.c.bf16 %v7983_v20, %v7983_v20  ;;  %v8732_v56 = vld [vmem:[#allocation99_spill] sm:$0xff]  ;;  %v8766_v20 = vld [vmem:[#allocation133_spill] sm:$0xff] }
 0x47e   : > { %v4156_v54 = vcombine.high %v8116_v53, %v8116_v53  ;;  %v4163_v1 = vpack.c.bf16 %v8116_v53, %v8116_v53  ;;  %v8793_v53 = vld [vmem:[#allocation160_spill] sm:$0xff] }
 0x480   : > { %4208 = vmatpush1.bf16.msra.mxu0 %v7219_v57  ;;  %4290 = vmatpush1.bf16.msra.mxu1 %v7224_v58  ;;  %v4164_v50 = vpack.c.bf16 %v4156_v54, %v4156_v54  ;;  %v8733_v57 = vld [vmem:[#allocation100_spill] sm:$0xff]  ;;  %v8734_v58 = vld [vmem:[#allocation101_spill] sm:$0xff]  ;;  %v8791_v54 = vld [vmem:[#allocation158_spill] sm:$0xff] }
 0x481   : > { %4209 = vmatprep.subr.bf16.mxu0 %v7234_v61  ;;  %4291 = vmatprep.subr.bf16.mxu1 %v7247_v0  ;;  %v8735_v61 = vld [vmem:[#allocation102_spill] sm:$0xff]  ;;  %v8736_v0 = vld [vmem:[#allocation103_spill] sm:$0xff] }
 0x484   : > { %4210 = vmatpush1.bf16.msra.mxu0 %v7260_v3  ;;  %4292 = vmatpush1.bf16.msra.mxu1 %v7265_v24  ;;  %v8737_v3 = vld [vmem:[#allocation104_spill] sm:$0xff]  ;;  %v8738_v24 = vld [vmem:[#allocation105_spill] sm:$0xff] }
 0x485   : > { %4211 = vmatprep.subr.bf16.mxu0 %v7275_v6  ;;  %4293 = vmatprep.subr.bf16.mxu1 %v7280_v8  ;;  %v8739_v6 = vld [vmem:[#allocation106_spill] sm:$0xff]  ;;  %v8740_v8 = vld [vmem:[#allocation107_spill] sm:$0xff] }
 0x488   : > { %4212 = vmatpush1.bf16.msra.mxu0 %v7288_v5  ;;  %4294 = vmatpush1.bf16.msra.mxu1 %v7293_v9  ;;  %v8741_v5 = vld [vmem:[#allocation108_spill] sm:$0xff]  ;;  %v8742_v9 = vld [vmem:[#allocation109_spill] sm:$0xff] }
 0x489   : > { %4213 = vmatprep.subr.bf16.mxu0 %v7301_v44  ;;  %4295 = vmatprep.subr.bf16.mxu1 %v7306_v11  ;;  %v8743_v44 = vld [vmem:[#allocation110_spill] sm:$0xff]  ;;  %v8744_v11 = vld [vmem:[#allocation111_spill] sm:$0xff] }
 0x48c   : > { %4214 = vmatpush1.bf16.msra.mxu0 %v7314_v15  ;;  %4296 = vmatpush1.bf16.msra.mxu1 %v7319_v16  ;;  %v8745_v15 = vld [vmem:[#allocation112_spill] sm:$0xff]  ;;  %v8746_v16 = vld [vmem:[#allocation113_spill] sm:$0xff] }
 0x48d   : > { %4215 = vmatprep.subr.bf16.mxu0 %v7326_v17  ;;  %4297 = vmatprep.subr.bf16.mxu1 %v7331_v18  ;;  %v8747_v17 = vld [vmem:[#allocation114_spill] sm:$0xff]  ;;  %v8748_v18 = vld [vmem:[#allocation115_spill] sm:$0xff] }
 0x490   : > { %4216 = vmatpush1.bf16.msra.mxu0 %v7338_v21  ;;  %4298 = vmatpush1.bf16.msra.mxu1 %v7343_v23  ;;  %v8749_v21 = vld [vmem:[#allocation116_spill] sm:$0xff]  ;;  %v8750_v23 = vld [vmem:[#allocation117_spill] sm:$0xff] }
 0x491   : > { %4217 = vmatprep.subr.bf16.mxu0 %v7350_v25  ;;  %4299 = vmatprep.subr.bf16.mxu1 %v7355_v26  ;;  %v8751_v25 = vld [vmem:[#allocation118_spill] sm:$0xff]  ;;  %v8752_v26 = vld [vmem:[#allocation119_spill] sm:$0xff] }
 0x494   : > { %4218 = vmatpush1.bf16.msra.mxu0 %v7366_v34  ;;  %4300 = vmatpush1.bf16.msra.mxu1 %v7371_v35  ;;  %v8753_v34 = vld [vmem:[#allocation120_spill] sm:$0xff]  ;;  %v8754_v35 = vld [vmem:[#allocation121_spill] sm:$0xff] }
 0x495   : > { %4228 = vmatprep.subr.bf16.mxu0 %v7378_v37  ;;  %4310 = vmatprep.subr.bf16.mxu1 %v7383_v38  ;;  %v8755_v37 = vld [vmem:[#allocation122_spill] sm:$0xff]  ;;  %v8756_v38 = vld [vmem:[#allocation123_spill] sm:$0xff] }
 0x497   : > { %4220 = vmatmul.mubr.bf16.vlgmr.msra.gmra.mrb[8].mxu0 %v4161_v55  ;;  %4302 = vmatmul.mubr.bf16.vlgmr.msra.gmra.mrb[8].mxu1 %v4161_v55  ;;  %v8792_v55 = vld [vmem:[#allocation159_spill] sm:$0xff] }
 0x498   : > { %4229 = vmatpush1.bf16.msra.mxu0 %v7392_v41  ;;  %4311 = vmatpush1.bf16.msra.mxu1 %v7397_v42  ;;  %v8757_v41 = vld [vmem:[#allocation124_spill] sm:$0xff]  ;;  %v8758_v42 = vld [vmem:[#allocation125_spill] sm:$0xff] }
 0x499   : > { %4230 = vmatprep.subr.bf16.mxu0 %v7404_v43  ;;  %4312 = vmatprep.subr.bf16.mxu1 %v7409_v45  ;;  %v8759_v43 = vld [vmem:[#allocation126_spill] sm:$0xff]  ;;  %v8760_v45 = vld [vmem:[#allocation127_spill] sm:$0xff] }
 0x49a   : > { %4260 = vmatprep.mubr.bf16.mxu0 %v4164_v50  ;;  %4342 = vmatprep.mubr.bf16.mxu1 %v4164_v50  ;;  %v8794_v50 = vld [vmem:[#allocation161_spill] sm:$0xff] }
 0x49c   : > { %4231 = vmatpush1.bf16.msra.mxu0 %v7416_v47  ;;  %4313 = vmatpush1.bf16.msra.mxu1 %v7421_v48  ;;  %v8761_v47 = vld [vmem:[#allocation128_spill] sm:$0xff]  ;;  %v8762_v48 = vld [vmem:[#allocation129_spill] sm:$0xff] }
 0x49d   : > { %4232 = vmatprep.subr.bf16.mxu0 %v7428_v49  ;;  %4314 = vmatprep.subr.bf16.mxu1 %v7433_v51  ;;  %v8763_v49 = vld [vmem:[#allocation130_spill] sm:$0xff]  ;;  %v8764_v51 = vld [vmem:[#allocation131_spill] sm:$0xff] }
 0x4a0   : > { %4233 = vmatpush1.bf16.msra.mxu0 %v8732_v56  ;;  %4315 = vmatpush1.bf16.msra.mxu1 %v8733_v57  ;;  %v8795_v56 = vld [vmem:[#allocation162_spill] sm:$0xff]  ;;  %v8796_v57 = vld [vmem:[#allocation163_spill] sm:$0xff] }
 0x4a1   : > { %4234 = vmatprep.subr.bf16.mxu0 %v8734_v58  ;;  %4316 = vmatprep.subr.bf16.mxu1 %v8735_v61  ;;  %v8797_v58 = vld [vmem:[#allocation164_spill] sm:$0xff]  ;;  %v8798_v61 = vld [vmem:[#allocation165_spill] sm:$0xff] }
 0x4a4   : > { %4235 = vmatpush1.bf16.msra.mxu0 %v8736_v0  ;;  %4317 = vmatpush1.bf16.msra.mxu1 %v8737_v3  ;;  %v8799_v0 = vld [vmem:[#allocation166_spill] sm:$0xff]  ;;  %v8800_v3 = vld [vmem:[#allocation167_spill] sm:$0xff] }
 0x4a5   : > { %4236 = vmatprep.subr.bf16.mxu0 %v8738_v24  ;;  %4318 = vmatprep.subr.bf16.mxu1 %v8739_v6  ;;  %v8801_v24 = vld [vmem:[#allocation168_spill] sm:$0xff]  ;;  %v8802_v6 = vld [vmem:[#allocation169_spill] sm:$0xff] }
 0x4a8   : > { %4237 = vmatpush1.bf16.msra.mxu0 %v8740_v8  ;;  %4319 = vmatpush1.bf16.msra.mxu1 %v8741_v5  ;;  %v8803_v8 = vld [vmem:[#allocation170_spill] sm:$0xff]  ;;  %v8804_v5 = vld [vmem:[#allocation171_spill] sm:$0xff] }
 0x4a9   : > { %4238 = vmatprep.subr.bf16.mxu0 %v8742_v9  ;;  %4320 = vmatprep.subr.bf16.mxu1 %v8743_v44  ;;  %v8805_v9 = vld [vmem:[#allocation172_spill] sm:$0xff]  ;;  %v8806_v44 = vld [vmem:[#allocation173_spill] sm:$0xff] }
 0x4ac   : > { %4239 = vmatpush1.bf16.msra.mxu0 %v8744_v11  ;;  %4321 = vmatpush1.bf16.msra.mxu1 %v8745_v15  ;;  %v8807_v11 = vld [vmem:[#allocation174_spill] sm:$0xff]  ;;  %v8808_v15 = vld [vmem:[#allocation175_spill] sm:$0xff] }
 0x4ad   : > { %4240 = vmatprep.subr.bf16.mxu0 %v8746_v16  ;;  %4322 = vmatprep.subr.bf16.mxu1 %v8747_v17  ;;  %v8809_v16 = vld [vmem:[#allocation176_spill] sm:$0xff]  ;;  %v8810_v17 = vld [vmem:[#allocation177_spill] sm:$0xff] }
 0x4b0   : > { %4241 = vmatpush1.bf16.msra.mxu0 %v8748_v18  ;;  %4323 = vmatpush1.bf16.msra.mxu1 %v8749_v21  ;;  %v8811_v18 = vld [vmem:[#allocation178_spill] sm:$0xff]  ;;  %v8812_v21 = vld [vmem:[#allocation179_spill] sm:$0xff] }
 0x4b1   : > { %4242 = vmatprep.subr.bf16.mxu0 %v8750_v23  ;;  %4324 = vmatprep.subr.bf16.mxu1 %v8751_v25  ;;  %v8813_v23 = vld [vmem:[#allocation180_spill] sm:$0xff]  ;;  %v8814_v25 = vld [vmem:[#allocation181_spill] sm:$0xff] }
 0x4b4   : > { %4243 = vmatpush1.bf16.msra.mxu0 %v8752_v26  ;;  %4325 = vmatpush1.bf16.msra.mxu1 %v8753_v34  ;;  %v8815_v26 = vld [vmem:[#allocation182_spill] sm:$0xff]  ;;  %v8816_v34 = vld [vmem:[#allocation183_spill] sm:$0xff] }
 0x4b5   : > { %4244 = vmatprep.subr.bf16.mxu0 %v8754_v35  ;;  %4326 = vmatprep.subr.bf16.mxu1 %v8755_v37  ;;  %v8817_v35 = vld [vmem:[#allocation184_spill] sm:$0xff] }
 0x4b8   : > { %4245 = vmatpush1.bf16.msra.mxu0 %v8756_v38  ;;  %4327 = vmatpush1.bf16.msra.mxu1 %v8757_v41  ;;  %v4936_v41 = vld [vmem:[%s8293_s7] ss:$0 sm:$0xff] }
 0x4b9   : > { %4246 = vmatprep.subr.bf16.mxu0 %v8758_v42  ;;  %4328 = vmatprep.subr.bf16.mxu1 %v8759_v43 }
 0x4bc   : > { %4247 = vmatpush1.bf16.msra.mxu0 %v8760_v45  ;;  %4329 = vmatpush1.bf16.msra.mxu1 %v8761_v47 }
 0x4bd   : > { %4248 = vmatprep.subr.bf16.mxu0 %v8762_v48  ;;  %4330 = vmatprep.subr.bf16.mxu1 %v8763_v49 }
 0x4c0   : > { %4249 = vmatpush1.bf16.msra.mxu0 %v8764_v51  ;;  %4331 = vmatpush1.bf16.msra.mxu1 %v8765_v7 }
 0x4c1   : > { %4250 = vmatprep.subr.bf16.mxu0 %v8766_v20  ;;  %4332 = vmatprep.subr.bf16.mxu1 %v8767_v14 }
 0x4c4   : > { %4251 = vmatpush1.bf16.msra.mxu0 %v8768_v30  ;;  %4333 = vmatpush1.bf16.msra.mxu1 %v8769_v36  ;;  %v4165_v30 = vld [vmem:[%s8291_s5] sm:$0xf] }
 0x4c5   : > { %4252 = vmatprep.subr.bf16.mxu0 %v8770_v29  ;;  %4334 = vmatprep.subr.bf16.mxu1 %v8771_v39  ;;  %v8818_v36 = vld [vmem:[#allocation95_spill] sm:$0xff]  ;;  %v8819_v39 = vld [vmem:[#allocation97_spill] sm:$0xff] }
 0x4c6   : > { %v4170_v29 = vrot.slane %v4165_v30, %v8818_v36 }
 0x4c8   : > { %4253 = vmatpush1.bf16.msra.mxu0 %v8772_v46  ;;  %4335 = vmatpush1.bf16.msra.mxu1 %v8773_v28  ;;  %v4178_v46 = vrot.slane %v4165_v30, %v8819_v39  ;;  %v8820_v28 = vld [vmem:[#allocation96_spill] sm:$0xff] }
 0x4c9   : > { %4254 = vmatprep.subr.bf16.mxu0 %v8774_v13  ;;  %4336 = vmatprep.subr.bf16.mxu1 %v8775_v31  ;;  %v4174_v13 = vrot.slane %v4165_v30, %v8820_v28  ;;  %v8821_v31 = vld [vmem:[#allocation98_spill] sm:$0xff] }
 0x4cc   : > { %4255 = vmatpush1.bf16.msra.mxu0 %v8776_v40  ;;  %4337 = vmatpush1.bf16.msra.mxu1 %v8777_v12  ;;  %v4182_v40 = vrot.slane %v4165_v30, %v8821_v31 }
 0x4cd   : > { %4256 = vmatprep.subr.bf16.mxu0 %v8778_v10  ;;  %4338 = vmatprep.subr.bf16.mxu1 %v8779_v27 }
 0x4d0   : > { %4257 = vmatpush1.bf16.msra.mxu0 %v8780_v60  ;;  %4339 = vmatpush1.bf16.msra.mxu1 %v8781_v62 }
 0x4d1   : > { %4258 = vmatprep.subr.bf16.mxu0 %v8782_v32  ;;  %4340 = vmatprep.subr.bf16.mxu1 %v8783_v63 }
 0x4d4   : > { %4259 = vmatpush1.bf16.msra.mxu0 %v8784_v59  ;;  %4341 = vmatpush1.bf16.msra.mxu1 %v8785_v2 }
 0x4d5   : > { %5021 = vmatprep.subr.bf16.mxu0 %v8786_v4  ;;  %5043 = vmatprep.subr.bf16.mxu1 %v8787_v22 }
 0x4d7   : > { %4261 = vmatmul.mubr.bf16.vlgmr.msra.gmra.mrb[8].mxu0 %v4163_v1  ;;  %4343 = vmatmul.mubr.bf16.vlgmr.msra.gmra.mrb[8].mxu1 %v4163_v1 }
 0x4d8   : > { %5022 = vmatpush3.bf16.msra.mxu0 %v8788_v33  ;;  %5044 = vmatpush3.bf16.msra.mxu1 %v8789_v19 }
 0x4d9   : > { %5023 = vmatprep.subr.bf16.mxu0 %v8790_v52  ;;  %5045 = vmatprep.subr.bf16.mxu1 %v8791_v54 }
 0x4dc   : > { %5024 = vmatpush3.bf16.msra.mxu0 %v8792_v55  ;;  %5046 = vmatpush3.bf16.msra.mxu1 %v8793_v53 }
 0x4dd   : > { %5025 = vmatprep.subr.bf16.mxu0 %v8794_v50  ;;  %5047 = vmatprep.subr.bf16.mxu1 %v8795_v56 }
 0x4e0   : > { %5026 = vmatpush3.bf16.msra.mxu0 %v8796_v57  ;;  %5048 = vmatpush3.bf16.msra.mxu1 %v8797_v58 }
 0x4e1   : > { %5027 = vmatprep.subr.bf16.mxu0 %v8798_v61  ;;  %5049 = vmatprep.subr.bf16.mxu1 %v8799_v0 }
 0x4e4   : > { %5028 = vmatpush3.bf16.msra.mxu0 %v8800_v3  ;;  %5050 = vmatpush3.bf16.msra.mxu1 %v8801_v24 }
 0x4e5   : > { %5029 = vmatprep.subr.bf16.mxu0 %v8802_v6  ;;  %5051 = vmatprep.subr.bf16.mxu1 %v8803_v8 }
 0x4e8   : > { %5030 = vmatpush3.bf16.msra.mxu0 %v8804_v5  ;;  %5052 = vmatpush3.bf16.msra.mxu1 %v8805_v9 }
 0x4e9   : > { %5031 = vmatprep.subr.bf16.mxu0 %v8806_v44  ;;  %5053 = vmatprep.subr.bf16.mxu1 %v8807_v11 }
 0x4ec   : > { %5032 = vmatpush3.bf16.msra.mxu0 %v8808_v15  ;;  %5054 = vmatpush3.bf16.msra.mxu1 %v8809_v16 }
 0x4ed   : > { %5033 = vmatprep.subr.bf16.mxu0 %v8810_v17  ;;  %5055 = vmatprep.subr.bf16.mxu1 %v8811_v18 }
 0x4f0   : > { %5034 = vmatpush3.bf16.msra.mxu0 %v8812_v21  ;;  %5056 = vmatpush3.bf16.msra.mxu1 %v8813_v23 }
 0x4f1   : > { %5035 = vmatprep.subr.bf16.mxu0 %v8814_v25  ;;  %5057 = vmatprep.subr.bf16.mxu1 %v8815_v26 }
 0x4f4   : > { %5036 = vmatpush3.bf16.msra.mxu0 %v8816_v34  ;;  %5058 = vmatpush3.bf16.msra.mxu1 %v8817_v35 }
 0x52a   : > { %v4993_v37 = vpop.f32.mrb[4].mxu0  ;;  %v5015_v38 = vpop.f32.mrb[4].mxu1 }
 0x52b   : > { %v4994_v42 = vpop.f32.mrb[5].mxu0  ;;  %v5016_v43 = vpop.f32.mrb[5].mxu1 }
 0x52c   : > { %v4995_v45 = vadd.f32 %v4994_v42, %v4993_v37  ;;  %v5017_v47 = vadd.f32 %v5016_v43, %v5015_v38  ;;  %v4996_v48 = vpop.f32.mrb[6].mxu0  ;;  %v5018_v49 = vpop.f32.mrb[6].mxu1 }
 0x52d   : > { %v4997_v51 = vpop.f32.mrb[7].mxu0  ;;  %v5019_v7 = vpop.f32.mrb[7].mxu1 }
 0x52e   : > { %v4053_v20 = vadd.f32 %v4995_v45, %v4936_v41 }
 0x530   : > { %v4093_v14 = vadd.f32 %v5017_v47, %v4053_v20 }
 0x532   : > { %4099 = vst.msk [vmem:[#allocation4] sm:$0x3] %vm4098_vm0, %v4093_v14 }
 0x5aa   : > { %v4262_v12 = vpop.f32.mrb[8].mxu0  ;;  %v4344_v10 = vpop.f32.mrb[8].mxu1 }
 0x5ab   : > { %v5117_v27 = vadd.f32 %v4262_v12, %v4170_v29  ;;  %v5119_v60 = vadd.f32 %v4344_v10, %v4178_v46  ;;  %v4264_v62 = vpop.f32.mrb[9].mxu0  ;;  %v4346_v32 = vpop.f32.mrb[9].mxu1 }
 0x5ac   : > { %v5118_v63 = vadd.f32 %v4264_v62, %v4174_v13  ;;  %v5120_v1 = vadd.f32 %v4346_v32, %v4182_v40  ;;  %v4266_v59 = vpop.f32.mrb[10].mxu0  ;;  %v4348_v2 = vpop.f32.mrb[10].mxu1 }
 0x5ad   : > { %v4351_v4 = vmax.f32 %v5117_v27, 0.0  ;;  %v4353_v22 = vmax.f32 %v5119_v60, 0.0  ;;  %v4267_v33 = vpop.f32.mrb[11].mxu0  ;;  %v4349_v19 = vpop.f32.mrb[11].mxu1 }
 0x5ae   : > { %v4352_v52 = vmax.f32 %v5118_v63, 0.0  ;;  %v4354_v54 = vmax.f32 %v5120_v1, 0.0 }
 0x5af   : > { %v4355_v50 = vpack.c.bf16 %v4351_v4, %v4351_v4  ;;  %v4357_v56 = vpack.c.bf16 %v4353_v22, %v4353_v22 }
 0x5b0   : > { %v4356_v55 = vpack.c.bf16 %v4352_v52, %v4352_v52  ;;  %v4358_v53 = vpack.c.bf16 %v4354_v54, %v4354_v54 }
 0x5b2   : > { %4398 = vmatprep.mubr.bf16.mxu0 %v4356_v55  ;;  %4438 = vmatprep.mubr.bf16.mxu1 %v4358_v53 }
 0x5b3   : > { %4399 = vmatmul.mubr.bf16.vlgmr.msra.gmra.mrb[12].mxu0 %v4355_v50  ;;  %4439 = vmatmul.mubr.bf16.vlgmr.msra.gmra.mrb[12].mxu1 %v4357_v56 }
 0x686   : > { %v5037_v57 = vpop.f32.mrb[12].mxu0  ;;  %v5059_v58 = vpop.f32.mrb[12].mxu1 }
 0x687   : > { %v5038_v61 = vpop.f32.mrb[13].mxu0  ;;  %v5060_v0 = vpop.f32.mrb[13].mxu1 }
 0x688   : > { %v5039_v3 = vadd.f32 %v5038_v61, %v5037_v57  ;;  %v5061_v24 = vadd.f32 %v5060_v0, %v5059_v58  ;;  %v5040_v6 = vpop.f32.mrb[14].mxu0  ;;  %v5062_v8 = vpop.f32.mrb[14].mxu1 }
 0x689   : > { %v5041_v5 = vpop.f32.mrb[15].mxu0  ;;  %v5063_v9 = vpop.f32.mrb[15].mxu1 }
 0x68a   : > { %v4401_v44 = vadd.f32 %v5039_v3, %v4936_v41 }
 0x68c   : > { %v4441_v11 = vadd.f32 %v5061_v24, %v4401_v44 }
 0x68e   : > { %4446 = vst.msk [vmem:[#allocation6] sm:$0x3] %vm4098_vm0, %v4441_v11 }
 0x68f PF: > { %p5145_p7 = scmp.eq.s32.totalorder %s6058_s10, 1  ;;  %s6000_s29 = smov [#allocation4]  }
 0x690   : > { %s4454_s11 = sshll.u32 %s6000_s29, 4  ;;  %s6001_s12 = smov [#allocation6]   ;;  %s4455_s11 = int_to_ptr.vmem [resolvable:$true] %s4454_s11 }
 0x691   : > { %s4465_s13 = sshll.u32 %s6001_s12, 4  ;;  %s5930_s14 = scalar_lea.vmem %s4455_s11, 32  ;;  %s4466_s13 = int_to_ptr.vmem [resolvable:$true] %s4465_s13 }
 0x692   : > { %p5931_p8 = scmp.ne.s32.totalorder %s4455_s11, %s5930_s14  ;;  %p5937_p11 = scmp.lt.s32.totalorder %s4455_s11, %s4455_s11 }
 0x693   : > { %p5938_p12 = scmp.lt.s32.totalorder %s5930_s14, %s5930_s14 }
 0x694   : > { %p5932_p9 = pnand %p5931_p8, %p5145_p7 }
 0x695   : > { %p5939_p13 = por %p5938_p12, %p5937_p11 }
 0x696   : > { %p5933_p10 = pneg %p5932_p9 }
 0x698   : > { %p5940_p0 = pnand %p5939_p13, %p5933_p10 }
 0x69a   : > { %5943 = shalt.err (!%p5940_p0)
}
 0x69b   : > { %s5944_s17 = scalar_lea.hbm %s8294_s8, 32 }
 0x69c   : > { %p5945_p1 = scmp.ne.s32.totalorder %s8294_s8, %s5944_s17  ;;  %p5950_p4 = scmp.lt.u32.totalorder %s5944_s17, %s8294_s8 }
 0x69e   : > { %p5946_p2 = pnand %p5945_p1, %p5145_p7 }
 0x6a0   : > { %p5947_p3 = pneg %p5946_p2 }
 0x6a2   : > { %p5952_p5 = pnand %p5950_p4, %p5947_p3 }
 0x6a4   : > { %5955 = shalt.err (!%p5952_p5)
}
 0x6a5   : > { %5138 = dma.vmem_to_hbm [thread:$0]  (%p5145_p7), %s4455_s11, 32, %s8294_s8, [#allocation5]  }
 0x6a6   : > { %s5956_s24 = scalar_lea.vmem %s4466_s13, 32  ;;  %p5963_p10 = scmp.lt.s32.totalorder %s4466_s13, %s4466_s13 }
 0x6a7   : > { %p5957_p6 = scmp.ne.s32.totalorder %s4466_s13, %s5956_s24  ;;  %p5964_p11 = scmp.lt.s32.totalorder %s5956_s24, %s5956_s24 }
 0x6a9   : > { %p5958_p8 = pnand %p5957_p6, %p5145_p7  ;;  %p5965_p12 = por %p5964_p11, %p5963_p10 }
 0x6ab   : > { %p5959_p9 = pneg %p5958_p8 }
 0x6ad   : > { %p5966_p13 = pnand %p5965_p12, %p5959_p9 }
 0x6af   : > { %5969 = shalt.err (!%p5966_p13)
}
 0x6b0   : > { %s5970_s27 = scalar_lea.hbm %s8295_s9, 32 }
 0x6b1   : > { %p5971_p0 = scmp.ne.s32.totalorder %s8295_s9, %s5970_s27  ;;  %p5976_p3 = scmp.lt.u32.totalorder %s5970_s27, %s8295_s9 }
 0x6b3   : > { %p5972_p1 = pnand %p5971_p0, %p5145_p7 }
 0x6b5   : > { %p5973_p2 = pneg %p5972_p1 }
 0x6b7   : > { %p5978_p4 = pnand %p5976_p3, %p5973_p2 }
 0x6b9   : > { %5981 = shalt.err (!%p5978_p4)
}
 0x6ba   : > { %5140 = dma.vmem_to_hbm [thread:$0]  (%p5145_p7), %s4466_s13, 32, %s8295_s9, [#allocation7]  }
 0x6bb   : > { %5987 = dma.done.wait (%p5145_p7), [#allocation5], 32  }
 0x6bc   : > { %5989 = vsyncadd (%p5145_p7), [#allocation5], 4294967264 }
 0x6bd   : > { %5991 = dma.done.wait (%p5145_p7), [#allocation7], 32  }
 0x6be   : > { %5993 = vsyncadd (%p5145_p7), [#allocation7], 4294967264 }
 0x6bf PF: > { %s22_s30 = sadd.s32 1, %s5996_s30  }
 0x6c0   : > { %p19_p5 = scmp.ge.s32.totalorder %s22_s30, 4  }
 0x6c2   :  { %21 = sbr.rel (!%p19_p5) target bundleno = 2 (0x2), region = 101 }
 0x6c9   :  { %4482 = vsyncpa [#allocation5], 1 }
 0x6ca   :  { %4484 = vsyncpa [#allocation5 + $0x1], 1 }
 0x6cb   :  { %4485 = vsyncpa [#allocation7], 1 }

</bundles_post_ra>
